<compile_context>
chip_gen: v6e
topology: v6e:2x2x1
jax: 0.10.0
libtpu: 0.0.40
codegen_flags: <defaults>
</compile_context>

<pallas_src>
import functools

import numpy as np
import jax
import jax.numpy as jnp
from jax import lax
from jax.experimental import pallas as pl
from jax.experimental.pallas import tpu as pltpu

_PAD = 8  # zeroed rows ahead of the data region in the causal-shift scratch


# ----------------------------- Pallas kernel -------------------------------

def _fused_block_kernel(x_ref, s0_ref, t0_ref, w0_ref, b0_ref,
                        s1_ref, t1_ref, w1_ref, bout_ref,
                        o_ref, xpad_ref, ypad_ref, pre_ref,
                        *, depth, cdtype):
    """One (batch-block x depth) row slab per grid step; all stages fused in VMEM.

    Rows = (batch, depth) flattened into the M/sublane dim; lanes = channels-last
    (H, W, C) flattened.
      x_ref     (Mb, H*W*Cin)                 f32
      w0_ref    (3*H*W*Cin, H*W*Cout)         cdtype   conv0 taps, kd stacked along K
      w1_ref    (3*H*W*Cout + H*W*Cin, HWOH)  cdtype   pool-folded conv1 taps +
                                                       pool-folded 1x1x1 residual
      bout_ref  (1, HWOH)                     f32      conv1+residual bias
      o_ref     (Mb//2, HWOH)                 f32
      xpad/ypad (Mb+_PAD, ...)                f32      scratch for causal depth shifts
      pre_ref   (Mb, HWOH)                    f32      scratch for the depth pair-sum
    """
    f32 = jnp.float32
    x = x_ref[...]
    m = x.shape[0]
    half = m // 2

    # Batch is folded into M, so causal zero-fill is per sample: (row % depth) < shift.
    row = lax.broadcasted_iota(jnp.int32, (m, 1), 0)
    didx = row % depth

    def causal_parts(v, pad_ref):
        """[tap kd=0 (depth shift 2), kd=1 (shift 1), kd=2 (no shift)] of v."""
        pad_ref[pl.ds(0, _PAD), :] = jnp.zeros((_PAD, v.shape[1]), f32)
        pad_ref[pl.ds(_PAD, m), :] = v
        parts = []
        for s in (2, 1):                      # causal pad (2, 0): out[d] uses in[d-2+kd]
            shifted = pad_ref[pl.ds(_PAD - s, m), :]
            parts.append(jnp.where(didx < s, 0.0, shifted))
        parts.append(v)
        return parts

    # BN0 (inference) ................................................ VPU, f32
    xb = x * s0_ref[...] + t0_ref[...]

    # ConvSkew0: 3 causal depth taps as ONE long-K MXU matmul ........ MXU
    cat0 = jnp.concatenate(causal_parts(xb, xpad_ref), axis=-1).astype(cdtype)
    a0 = jnp.dot(cat0, w0_ref[...], preferred_element_type=f32) + b0_ref[...]

    # BN1 + ReLU ..................................................... VPU, f32
    y = jnp.maximum(a0 * s1_ref[...] + t1_ref[...], 0.0)

    # ConvSkew1 (2x2 in-plane pooling folded into its taps) fused with the
    # pool-folded 1x1x1 residual conv: one long-K matmul ............. MXU
    cat1 = jnp.concatenate(causal_parts(y, ypad_ref) + [x], axis=-1).astype(cdtype)
    pre_ref[...] = jnp.dot(cat1, w1_ref[...], preferred_element_type=f32)

    # Remaining 2x depth pooling = pair-sum of adjacent rows (strided VMEM
    # reads + VPU add), then the combined bias (constant per channel, so it
    # commutes with average pooling).
    pooled = (pre_ref[pl.ds(0, half, stride=2), :]
              + pre_ref[pl.ds(1, half, stride=2), :])
    o_ref[...] = (pooled + bout_ref[...]).astype(o_ref.dtype)


# ------------------------- host-side constant prep -------------------------

def _bn_scale_shift(gamma, beta, mean, var, eps):
    scale = gamma / np.sqrt(var + eps)
    return scale, beta - mean * scale


def _toeplitz_hw(w_conv, H, W):
    """(Cout, Cin, 3, 3, 3) -> (3, H*W*Cin, H*W*Cout) per-depth-tap matrices.

    The zero structure reproduces spatial zero-padding of 1 exactly.
    """
    Cout, Cin = w_conv.shape[:2]
    T = np.zeros((3, H * W * Cin, H * W * Cout), w_conv.dtype)
    for kd in range(3):
        for h in range(H):
            for w in range(W):
                k0 = (h * W + w) * Cout
                for kh in range(3):
                    hp = h + kh - 1
                    if not 0 <= hp < H:
                        continue
                    for kw in range(3):
                        wp = w + kw - 1
                        if not 0 <= wp < W:
                            continue
                        j0 = (hp * W + wp) * Cin
                        T[kd, j0:j0 + Cin, k0:k0 + Cout] = w_conv[:, :, kd, kh, kw].T
    return T


def _hw_pool_matrix(H, W, C):
    """(H*W*C, (H//2)*(W//2)*C) 2x2 in-plane average-pool matrix (includes the 1/8)."""
    P = np.zeros((H * W * C, (H // 2) * (W // 2) * C))
    eye8 = np.eye(C) / 8.0
    for h in range(H):
        for w in range(W):
            j0 = (h * W + w) * C
            k0 = ((h // 2) * (W // 2) + (w // 2)) * C
            P[j0:j0 + C, k0:k0 + C] = eye8
    return P


def _tile_row(vec, reps):
    return np.tile(np.asarray(vec, np.float64), reps).reshape(1, -1).astype(np.float32)


def _const_spec(arr):
    zeros = (0,) * arr.ndim
    return pl.BlockSpec(arr.shape, lambda i, _z=zeros: _z)


def _prepare_constants(params, D, H, W, Cin, Cout, eps, compute_dtype):
    p = {k: np.asarray(v, np.float64) for k, v in params.items()}
    HWI, HWO = H * W * Cin, H * W * Cout
    HWOH = (H // 2) * (W // 2) * Cout

    s0, t0 = _bn_scale_shift(p["bn0_gamma"], p["bn0_beta"], p["bn0_mean"], p["bn0_var"], eps)
    s1, t1 = _bn_scale_shift(p["bn1_gamma"], p["bn1_beta"], p["bn1_mean"], p["bn1_var"], eps)

    T0 = _toeplitz_hw(p["conv0_w"], H, W)                     # (3, HWI, HWO)
    T1 = _toeplitz_hw(p["conv1_w"], H, W)                     # (3, HWO, HWO)
    P = _hw_pool_matrix(H, W, Cout)                           # (HWO, HWOH), holds the 1/8

    w0 = T0.reshape(3 * HWI, HWO)                             # kd stacked along K
    t1p = np.matmul(T1, P).reshape(3 * HWO, HWOH)             # pool folded into conv1 taps
    wres = p["conv_res_w"][:, :, 0, 0, 0]                     # (Cout, Cin)
    wres_bd = np.kron(np.eye(H * W), wres.T)                  # block-diagonal 1x1x1 conv
    w1 = np.concatenate([t1p, wres_bd @ P], axis=0)           # residual folded along K

    bout = np.tile(p["conv1_b"] + p["conv_res_b"], (H // 2) * (W // 2)).reshape(1, -1)

    return [
        jnp.asarray(_tile_row(s0, H * W)), jnp.asarray(_tile_row(t0, H * W)),   # BN0
        jnp.asarray(w0.astype(np.float32), dtype=compute_dtype),                # conv0 taps
        jnp.asarray(_tile_row(p["conv0_b"], H * W)),                            # conv0 bias
        jnp.asarray(_tile_row(s1, H * W)), jnp.asarray(_tile_row(t1, H * W)),   # BN1
        jnp.asarray(w1.astype(np.float32), dtype=compute_dtype),                # conv1+res (+pool)
        jnp.asarray(bout.astype(np.float32)),                                   # out bias
    ]


def _pick_batch_block(N, D, target_rows=32):
    """Fold batch into the MXU M dimension; keep output blocks (8,128)-legal and
    >= 2 grid steps (megacore) when N allows."""
    half = D // 2
    divisors = [c for c in range(1, N + 1) if N % c == 0]
    ok = [c for c in divisors if (c * half) % 8 == 0 or c == N]
    fitting = [c for c in ok if c * D <= target_rows] or [min(ok)]
    best = max(fitting)
    if N // best < 2:
        smaller = [c for c in ok if c < best and N // c >= 2]
        if smaller:
            best = max(smaller)
    return best


# ------------------------------- forward -----------------------------------

def first_block_encoder_forward_cl(x_ndhwc, params, *, eps=1e-5,
                                   compute_dtype=jnp.bfloat16, batch_block=None):
    """Channels-last entry point (no boundary transposes): (N, D, H, W, Cin) ->
    (N, D//2, H//2, W//2, Cout)."""
    N, D, H, W, Cin = x_ndhwc.shape
    Cout = int(np.asarray(params["conv_res_w"]).shape[0])
    assert D % 2 == 0 and H % 2 == 0 and W % 2 == 0
    HWI, HWO = H * W * Cin, H * W * Cout
    HWOH = (H // 2) * (W // 2) * Cout

    nb = batch_block if batch_block is not None else _pick_batch_block(N, D)
    assert N % nb == 0
    mb = nb * D

    consts = _prepare_constants(params, D, H, W, Cin, Cout, eps, compute_dtype)
    x_rows = x_ndhwc.reshape(N * D, HWI).astype(jnp.float32)

    kernel = functools.partial(_fused_block_kernel, depth=D, cdtype=compute_dtype)

    # Useful (non-structural-zero) work only: dense conv flops + epilogue adds.
    flops = int(2 * N * D * H * W * Cout * (27 * Cin + 27 * Cout + Cin)
                + 3 * N * D * H * W * Cout)
    bytes_accessed = int(4 * N * D * HWI + 4 * (N * D // 2) * HWOH
                         + sum(int(c.size) * c.dtype.itemsize for c in consts))

    out = pl.pallas_call(
        kernel,
        out_shape=jax.ShapeDtypeStruct((N * (D // 2), HWOH), jnp.float32),
        grid=(N // nb,),
        in_specs=[pl.BlockSpec((mb, HWI), lambda i: (i, 0))]
                 + [_const_spec(c) for c in consts],
        out_specs=pl.BlockSpec((nb * (D // 2), HWOH), lambda i: (i, 0)),
        scratch_shapes=[pltpu.VMEM((mb + _PAD, HWI), jnp.float32),
                        pltpu.VMEM((mb + _PAD, HWO), jnp.float32),
                        pltpu.VMEM((mb, HWOH), jnp.float32)],
        compiler_params=pltpu.CompilerParams(
            dimension_semantics=("parallel",),
            vmem_limit_bytes=32 * 1024 * 1024),
        cost_estimate=pl.CostEstimate(flops=flops, transcendentals=0,
                                      bytes_accessed=bytes_accessed),
    )(x_rows, *consts)

    return out.reshape(N, D // 2, H // 2, W // 2, Cout)


def first_block_encoder_forward(x_ncdhw, params, *, eps=1e-5,
                                compute_dtype=jnp.bfloat16, batch_block=None):
    """NCDHW wrapper for PyTorch parity (prefer the channels-last entry point to
    avoid the two boundary transposes)."""
    x_cl = jnp.transpose(x_ncdhw, (0, 2, 3, 4, 1))
    y_cl = first_block_encoder_forward_cl(x_cl, params, eps=eps,
                                          compute_dtype=compute_dtype,
                                          batch_block=batch_block)
    return jnp.transpose(y_cl, (0, 4, 1, 2, 3))


# --------------------------- pure-JAX reference ----------------------------

def reference_forward(x, p, eps=1e-5):
    def conv3d(xx, w, b, padding):
        y = lax.conv_general_dilated(
            xx, w, window_strides=(1, 1, 1), padding=padding,
            dimension_numbers=("NCDHW", "OIDHW", "NCDHW"),
            precision=lax.Precision.HIGHEST)
        return y + b.reshape(1, -1, 1, 1, 1)

    def bn(xx, g, b, m, v):
        rs = lambda a: a.reshape(1, -1, 1, 1, 1)
        return (xx - rs(m)) / jnp.sqrt(rs(v) + eps) * rs(g) + rs(b)

    def downsample(xx):
        return lax.reduce_window(xx, 0.0, lax.add, (1, 1, 2, 2, 2),
                                 (1, 1, 2, 2, 2), "VALID") / 8.0

    residual = downsample(conv3d(x, p["conv_res_w"], p["conv_res_b"],
                                 [(0, 0), (0, 0), (0, 0)]))
    out = bn(x, p["bn0_gamma"], p["bn0_beta"], p["bn0_mean"], p["bn0_var"])
    out = conv3d(out, p["conv0_w"], p["conv0_b"], [(2, 0), (1, 1), (1, 1)])
    out = bn(out, p["bn1_gamma"], p["bn1_beta"], p["bn1_mean"], p["bn1_var"])
    out = jnp.maximum(out, 0.0)
    out = conv3d(out, p["conv1_w"], p["conv1_b"], [(2, 0), (1, 1), (1, 1)])
    out = downsample(out)
    return out + residual


# --------------------------------- main ------------------------------------

if __name__ == "__main__":
    N, Cin, Cout, D, H, W = 4, 4, 8, 8, 8, 8
    key = jax.random.PRNGKey(0)
    ks = jax.random.split(key, 16)

    params = {
        "conv_res_w": 0.2 * jax.random.normal(ks[0], (Cout, Cin, 1, 1, 1), jnp.float32),
        "conv_res_b": 0.1 * jax.random.normal(ks[1], (Cout,), jnp.float32),
        "bn0_gamma": jax.random.uniform(ks[2], (Cin,), jnp.float32, 0.8, 1.2),
        "bn0_beta": 0.1 * jax.random.normal(ks[3], (Cin,), jnp.float32),
        "bn0_mean": 0.1 * jax.random.normal(ks[4], (Cin,), jnp.float32),
        "bn0_var": jax.random.uniform(ks[5], (Cin,), jnp.float32, 0.5, 1.5),
        "conv0_w": 0.2 * jax.random.normal(ks[6], (Cout, Cin, 3, 3, 3), jnp.float32),
        "conv0_b": 0.1 * jax.random.normal(ks[7], (Cout,), jnp.float32),
        "bn1_gamma": jax.random.uniform(ks[8], (Cout,), jnp.float32, 0.8, 1.2),
        "bn1_beta": 0.1 * jax.random.normal(ks[9], (Cout,), jnp.float32),
        "bn1_mean": 0.1 * jax.random.normal(ks[10], (Cout,), jnp.float32),
        "bn1_var": jax.random.uniform(ks[11], (Cout,), jnp.float32, 0.5, 1.5),
        "conv1_w": 0.2 * jax.random.normal(ks[12], (Cout, Cout, 3, 3, 3), jnp.float32),
        "conv1_b": 0.1 * jax.random.normal(ks[13], (Cout,), jnp.float32),
    }

    x = jax.random.normal(ks[14], (N, Cin, D, H, W), jnp.float32)

    y_ref = jax.block_until_ready(reference_forward(x, params))

    # Exactness of the fused / folded formulation (f32 weights, multi-pass MXU).
    y32 = jax.block_until_ready(
        first_block_encoder_forward(x, params, compute_dtype=jnp.float32))
    assert y32.shape == (N, Cout, D // 2, H // 2, W // 2)
    np.testing.assert_allclose(np.asarray(y32), np.asarray(y_ref),
                               rtol=1e-3, atol=1e-3)

    # Production path: bf16 MXU inputs / weights with f32 accumulation.
    ybf = jax.block_until_ready(first_block_encoder_forward(x, params))
    assert ybf.shape == (N, Cout, D // 2, H // 2, W // 2)
    rel = (np.linalg.norm(np.asarray(ybf) - np.asarray(y_ref))
           / np.linalg.norm(np.asarray(y_ref)))
    assert rel < 2e-2, f"bf16 relative L2 error too high: {rel}"

    print("KERNEL_OK")
</pallas_src>

<mosaic_0001>
module attributes {stable_mosaic.version = 11 : i64} {
  func.func @_fused_block_kernel(%arg0: i32, %arg1: memref<16x256xf32, #tpu.memory_space<vmem>>, %arg2: memref<1x256xf32, #tpu.memory_space<vmem>>, %arg3: memref<1x256xf32, #tpu.memory_space<vmem>>, %arg4: memref<768x512xf32, #tpu.memory_space<vmem>>, %arg5: memref<1x512xf32, #tpu.memory_space<vmem>>, %arg6: memref<1x512xf32, #tpu.memory_space<vmem>>, %arg7: memref<1x512xf32, #tpu.memory_space<vmem>>, %arg8: memref<1792x128xf32, #tpu.memory_space<vmem>>, %arg9: memref<1x128xf32, #tpu.memory_space<vmem>>, %arg10: memref<8x128xf32, #tpu.memory_space<vmem>>, %arg11: memref<24x256xf32, #tpu.memory_space<vmem>>, %arg12: memref<24x512xf32, #tpu.memory_space<vmem>>, %arg13: memref<16x128xf32, #tpu.memory_space<vmem>>) attributes {dimension_semantics = [#tpu.dimension_semantics<parallel>], iteration_bounds = array<i64: 2>, scalar_prefetch = 0 : i64, scratch_operands = 3 : i64, tpu.core_type = #tpu.core_type<tc>, window_params = [{transform_indices = @transform_0, window_bounds = array<i64: 16, 256>}, {pipeline_mode = #tpu.pipeline_mode<synchronous>, transform_indices = @transform_1, window_bounds = array<i64: 1, 256>}, {pipeline_mode = #tpu.pipeline_mode<synchronous>, transform_indices = @transform_2, window_bounds = array<i64: 1, 256>}, {pipeline_mode = #tpu.pipeline_mode<synchronous>, transform_indices = @transform_3, window_bounds = array<i64: 768, 512>}, {pipeline_mode = #tpu.pipeline_mode<synchronous>, transform_indices = @transform_4, window_bounds = array<i64: 1, 512>}, {pipeline_mode = #tpu.pipeline_mode<synchronous>, transform_indices = @transform_5, window_bounds = array<i64: 1, 512>}, {pipeline_mode = #tpu.pipeline_mode<synchronous>, transform_indices = @transform_6, window_bounds = array<i64: 1, 512>}, {pipeline_mode = #tpu.pipeline_mode<synchronous>, transform_indices = @transform_7, window_bounds = array<i64: 1792, 128>}, {pipeline_mode = #tpu.pipeline_mode<synchronous>, transform_indices = @transform_8, window_bounds = array<i64: 1, 128>}, {transform_indices = @transform_9, window_bounds = array<i64: 8, 128>}]} {
    %c0 = arith.constant 0 : index
    %c0_0 = arith.constant 0 : index
    %0 = vector.load %arg1[%c0, %c0_0] : memref<16x256xf32, #tpu.memory_space<vmem>>, vector<16x256xf32>
    %1 = tpu.iota {dimensions = array<i32: 0>} : vector<16x1xi32>
    %c8_i32 = arith.constant 8 : i32
    %c0_i32 = arith.constant 0 : i32
    %2 = arith.cmpi eq, %c8_i32, %c0_i32 : i32
    %c1_i32 = arith.constant 1 : i32
    %3 = arith.select %2, %c1_i32, %c8_i32 : i32
    %4 = vector.broadcast %3 : i32 to vector<16x1xi32>
    %5 = arith.remsi %1, %4 : vector<16x1xi32>
    %c0_i32_1 = arith.constant 0 : i32
    %6 = vector.broadcast %c0_i32_1 : i32 to vector<16x1xi32>
    %7 = arith.cmpi ne, %5, %6 : vector<16x1xi32>
    %c0_i32_2 = arith.constant 0 : i32
    %8 = vector.broadcast %c0_i32_2 : i32 to vector<16x1xi32>
    %9 = arith.cmpi slt, %5, %8 : vector<16x1xi32>
    %c0_i32_3 = arith.constant 0 : i32
    %10 = arith.cmpi slt, %3, %c0_i32_3 : i32
    %11 = vector.broadcast %10 : i1 to vector<16x1xi1>
    %12 = vector.broadcast %11 : vector<16x1xi1> to vector<16x1xi1>
    %13 = arith.xori %9, %12 : vector<16x1xi1>
    %14 = arith.andi %13, %7 : vector<16x1xi1>
    %15 = vector.broadcast %3 : i32 to vector<16x1xi32>
    %16 = arith.addi %5, %15 : vector<16x1xi32>
    %17 = arith.select %14, %16, %5 : vector<16x1xi1>, vector<16x1xi32>
    %c0_4 = arith.constant 0 : index
    %c0_5 = arith.constant 0 : index
    %18 = vector.load %arg2[%c0_4, %c0_5] : memref<1x256xf32, #tpu.memory_space<vmem>>, vector<1x256xf32>
    %19 = vector.broadcast %18 : vector<1x256xf32> to vector<16x256xf32>
    %20 = arith.mulf %0, %19 : vector<16x256xf32>
    %c0_6 = arith.constant 0 : index
    %c0_7 = arith.constant 0 : index
    %21 = vector.load %arg3[%c0_6, %c0_7] : memref<1x256xf32, #tpu.memory_space<vmem>>, vector<1x256xf32>
    %22 = vector.broadcast %21 : vector<1x256xf32> to vector<16x256xf32>
    %23 = arith.addf %20, %22 : vector<16x256xf32>
    %cst = arith.constant 0.000000e+00 : f32
    %24 = vector.broadcast %cst : f32 to vector<8x256xf32>
    %c0_8 = arith.constant 0 : index
    %c0_9 = arith.constant 0 : index
    %25 = vector.load %arg11[%c0_8, %c0_9] : memref<24x256xf32, #tpu.memory_space<vmem>>, vector<8x256xf32>
    tpu.vector_store %arg11[%c0_8, %c0_9], %24 {strides = array<i32>} : memref<24x256xf32, #tpu.memory_space<vmem>>, vector<8x256xf32>,
    %c8 = arith.constant 8 : index
    %c0_10 = arith.constant 0 : index
    %26 = vector.load %arg11[%c8, %c0_10] : memref<24x256xf32, #tpu.memory_space<vmem>>, vector<16x256xf32>
    tpu.vector_store %arg11[%c8, %c0_10], %23 {strides = array<i32>} : memref<24x256xf32, #tpu.memory_space<vmem>>, vector<16x256xf32>,
    %c6 = arith.constant 6 : index
    %c0_11 = arith.constant 0 : index
    %27 = vector.load %arg11[%c6, %c0_11] : memref<24x256xf32, #tpu.memory_space<vmem>>, vector<16x256xf32>
    %c2_i32 = arith.constant 2 : i32
    %28 = vector.broadcast %c2_i32 : i32 to vector<16x1xi32>
    %29 = arith.cmpi slt, %17, %28 : vector<16x1xi32>
    %cst_12 = arith.constant 0.000000e+00 : f32
    %30 = vector.shape_cast %29 : vector<16x1xi1> to vector<16x1xi1>
    %31 = vector.broadcast %30 : vector<16x1xi1> to vector<16x256xi1>
    %32 = vector.broadcast %cst_12 : f32 to vector<16x256xf32>
    %33 = arith.select %31, %32, %27 : vector<16x256xi1>, vector<16x256xf32>
    %c7 = arith.constant 7 : index
    %c0_13 = arith.constant 0 : index
    %34 = vector.load %arg11[%c7, %c0_13] : memref<24x256xf32, #tpu.memory_space<vmem>>, vector<16x256xf32>
    %c1_i32_14 = arith.constant 1 : i32
    %35 = vector.broadcast %c1_i32_14 : i32 to vector<16x1xi32>
    %36 = arith.cmpi slt, %17, %35 : vector<16x1xi32>
    %cst_15 = arith.constant 0.000000e+00 : f32
    %37 = vector.shape_cast %36 : vector<16x1xi1> to vector<16x1xi1>
    %38 = vector.broadcast %37 : vector<16x1xi1> to vector<16x256xi1>
    %39 = vector.broadcast %cst_15 : f32 to vector<16x256xf32>
    %40 = arith.select %38, %39, %34 : vector<16x256xi1>, vector<16x256xf32>
    %41 = tpu.concatenate %33, %40, %23 in 1 : vector<16x256xf32>, vector<16x256xf32>, vector<16x256xf32> -> vector<16x768xf32>
    %c0_16 = arith.constant 0 : index
    %c0_17 = arith.constant 0 : index
    %42 = vector.load %arg4[%c0_16, %c0_17] : memref<768x512xf32, #tpu.memory_space<vmem>>, vector<768x512xf32>
    %cst_18 = arith.constant dense<0.000000e+00> : vector<16x512xf32>
    %43 = tpu.matmul %41, %42, %cst_18 {dimension_numbers = #tpu.dot_dimension_numbers<[1], [0], [0], [1], [0, 0, 1, 1], [], []>} : vector<16x768xf32>, vector<768x512xf32>, vector<16x512xf32> -> vector<16x512xf32>
    %c0_19 = arith.constant 0 : index
    %c0_20 = arith.constant 0 : index
    %44 = vector.load %arg5[%c0_19, %c0_20] : memref<1x512xf32, #tpu.memory_space<vmem>>, vector<1x512xf32>
    %45 = vector.broadcast %44 : vector<1x512xf32> to vector<16x512xf32>
    %46 = arith.addf %43, %45 : vector<16x512xf32>
    %c0_21 = arith.constant 0 : index
    %c0_22 = arith.constant 0 : index
    %47 = vector.load %arg6[%c0_21, %c0_22] : memref<1x512xf32, #tpu.memory_space<vmem>>, vector<1x512xf32>
    %48 = vector.broadcast %47 : vector<1x512xf32> to vector<16x512xf32>
    %49 = arith.mulf %46, %48 : vector<16x512xf32>
    %c0_23 = arith.constant 0 : index
    %c0_24 = arith.constant 0 : index
    %50 = vector.load %arg7[%c0_23, %c0_24] : memref<1x512xf32, #tpu.memory_space<vmem>>, vector<1x512xf32>
    %51 = vector.broadcast %50 : vector<1x512xf32> to vector<16x512xf32>
    %52 = arith.addf %49, %51 : vector<16x512xf32>
    %cst_25 = arith.constant 0.000000e+00 : f32
    %53 = vector.broadcast %cst_25 : f32 to vector<16x512xf32>
    %54 = arith.maximumf %52, %53 : vector<16x512xf32>
    %cst_26 = arith.constant 0.000000e+00 : f32
    %55 = vector.broadcast %cst_26 : f32 to vector<8x512xf32>
    %c0_27 = arith.constant 0 : index
    %c0_28 = arith.constant 0 : index
    %56 = vector.load %arg12[%c0_27, %c0_28] : memref<24x512xf32, #tpu.memory_space<vmem>>, vector<8x512xf32>
    tpu.vector_store %arg12[%c0_27, %c0_28], %55 {strides = array<i32>} : memref<24x512xf32, #tpu.memory_space<vmem>>, vector<8x512xf32>,
    %c8_29 = arith.constant 8 : index
    %c0_30 = arith.constant 0 : index
    %57 = vector.load %arg12[%c8_29, %c0_30] : memref<24x512xf32, #tpu.memory_space<vmem>>, vector<16x512xf32>
    tpu.vector_store %arg12[%c8_29, %c0_30], %54 {strides = array<i32>} : memref<24x512xf32, #tpu.memory_space<vmem>>, vector<16x512xf32>,
    %c6_31 = arith.constant 6 : index
    %c0_32 = arith.constant 0 : index
    %58 = vector.load %arg12[%c6_31, %c0_32] : memref<24x512xf32, #tpu.memory_space<vmem>>, vector<16x512xf32>
    %c2_i32_33 = arith.constant 2 : i32
    %59 = vector.broadcast %c2_i32_33 : i32 to vector<16x1xi32>
    %60 = arith.cmpi slt, %17, %59 : vector<16x1xi32>
    %cst_34 = arith.constant 0.000000e+00 : f32
    %61 = vector.shape_cast %60 : vector<16x1xi1> to vector<16x1xi1>
    %62 = vector.broadcast %61 : vector<16x1xi1> to vector<16x512xi1>
    %63 = vector.broadcast %cst_34 : f32 to vector<16x512xf32>
    %64 = arith.select %62, %63, %58 : vector<16x512xi1>, vector<16x512xf32>
    %c7_35 = arith.constant 7 : index
    %c0_36 = arith.constant 0 : index
    %65 = vector.load %arg12[%c7_35, %c0_36] : memref<24x512xf32, #tpu.memory_space<vmem>>, vector<16x512xf32>
    %c1_i32_37 = arith.constant 1 : i32
    %66 = vector.broadcast %c1_i32_37 : i32 to vector<16x1xi32>
    %67 = arith.cmpi slt, %17, %66 : vector<16x1xi32>
    %cst_38 = arith.constant 0.000000e+00 : f32
    %68 = vector.shape_cast %67 : vector<16x1xi1> to vector<16x1xi1>
    %69 = vector.broadcast %68 : vector<16x1xi1> to vector<16x512xi1>
    %70 = vector.broadcast %cst_38 : f32 to vector<16x512xf32>
    %71 = arith.select %69, %70, %65 : vector<16x512xi1>, vector<16x512xf32>
    %72 = tpu.concatenate %64, %71, %54, %0 in 1 : vector<16x512xf32>, vector<16x512xf32>, vector<16x512xf32>, vector<16x256xf32> -> vector<16x1792xf32>
    %c0_39 = arith.constant 0 : index
    %c0_40 = arith.constant 0 : index
    %73 = vector.load %arg8[%c0_39, %c0_40] : memref<1792x128xf32, #tpu.memory_space<vmem>>, vector<1792x128xf32>
    %cst_41 = arith.constant dense<0.000000e+00> : vector<16x128xf32>
    %74 = tpu.matmul %72, %73, %cst_41 {dimension_numbers = #tpu.dot_dimension_numbers<[1], [0], [0], [1], [0, 0, 1, 1], [], []>} : vector<16x1792xf32>, vector<1792x128xf32>, vector<16x128xf32> -> vector<16x128xf32>
    %c0_42 = arith.constant 0 : index
    %c0_43 = arith.constant 0 : index
    %75 = vector.load %arg13[%c0_42, %c0_43] : memref<16x128xf32, #tpu.memory_space<vmem>>, vector<16x128xf32>
    tpu.vector_store %arg13[%c0_42, %c0_43], %74 {strides = array<i32>} : memref<16x128xf32, #tpu.memory_space<vmem>>, vector<16x128xf32>,
    %c0_44 = arith.constant 0 : index
    %c0_45 = arith.constant 0 : index
    %76 = tpu.strided_load %arg13[%c0_44, %c0_45] {strides = array<i32: 2, 1>} : memref<16x128xf32, #tpu.memory_space<vmem>>, vector<8x128xf32>
    %c1 = arith.constant 1 : index
    %c0_46 = arith.constant 0 : index
    %77 = tpu.strided_load %arg13[%c1, %c0_46] {strides = array<i32: 2, 1>} : memref<16x128xf32, #tpu.memory_space<vmem>>, vector<8x128xf32>
    %78 = arith.addf %76, %77 : vector<8x128xf32>
    %c0_47 = arith.constant 0 : index
    %c0_48 = arith.constant 0 : index
    %79 = vector.load %arg9[%c0_47, %c0_48] : memref<1x128xf32, #tpu.memory_space<vmem>>, vector<1x128xf32>
    %80 = vector.broadcast %79 : vector<1x128xf32> to vector<8x128xf32>
    %81 = arith.addf %78, %80 : vector<8x128xf32>
    %c0_49 = arith.constant 0 : index
    %c0_50 = arith.constant 0 : index
    %82 = vector.load %arg10[%c0_49, %c0_50] : memref<8x128xf32, #tpu.memory_space<vmem>>, vector<8x128xf32>
    tpu.vector_store %arg10[%c0_49, %c0_50], %81 {strides = array<i32>} : memref<8x128xf32, #tpu.memory_space<vmem>>, vector<8x128xf32>,
    return
  }
  func.func @transform_0(%arg0: i32) -> (i32, i32) {
    %c0_i32 = arith.constant 0 : i32
    %c0_i32_0 = arith.constant 0 : i32
    return %arg0, %c0_i32 : i32, i32
  }
  func.func @transform_1(%arg0: i32) -> (i32, i32) {
    %c0_i32 = arith.constant 0 : i32
    %c0_i32_0 = arith.constant 0 : i32
    %c0_i32_1 = arith.constant 0 : i32
    return %c0_i32, %c0_i32_0 : i32, i32
  }
  func.func @transform_2(%arg0: i32) -> (i32, i32) {
    %c0_i32 = arith.constant 0 : i32
    %c0_i32_0 = arith.constant 0 : i32
    %c0_i32_1 = arith.constant 0 : i32
    return %c0_i32, %c0_i32_0 : i32, i32
  }
  func.func @transform_3(%arg0: i32) -> (i32, i32) {
    %c0_i32 = arith.constant 0 : i32
    %c0_i32_0 = arith.constant 0 : i32
    %c0_i32_1 = arith.constant 0 : i32
    return %c0_i32, %c0_i32_0 : i32, i32
  }
  func.func @transform_4(%arg0: i32) -> (i32, i32) {
    %c0_i32 = arith.constant 0 : i32
    %c0_i32_0 = arith.constant 0 : i32
    %c0_i32_1 = arith.constant 0 : i32
    return %c0_i32, %c0_i32_0 : i32, i32
  }
  func.func @transform_5(%arg0: i32) -> (i32, i32) {
    %c0_i32 = arith.constant 0 : i32
    %c0_i32_0 = arith.constant 0 : i32
    %c0_i32_1 = arith.constant 0 : i32
    return %c0_i32, %c0_i32_0 : i32, i32
  }
  func.func @transform_6(%arg0: i32) -> (i32, i32) {
    %c0_i32 = arith.constant 0 : i32
    %c0_i32_0 = arith.constant 0 : i32
    %c0_i32_1 = arith.constant 0 : i32
    return %c0_i32, %c0_i32_0 : i32, i32
  }
  func.func @transform_7(%arg0: i32) -> (i32, i32) {
    %c0_i32 = arith.constant 0 : i32
    %c0_i32_0 = arith.constant 0 : i32
    %c0_i32_1 = arith.constant 0 : i32
    return %c0_i32, %c0_i32_0 : i32, i32
  }
  func.func @transform_8(%arg0: i32) -> (i32, i32) {
    %c0_i32 = arith.constant 0 : i32
    %c0_i32_0 = arith.constant 0 : i32
    %c0_i32_1 = arith.constant 0 : i32
    return %c0_i32, %c0_i32_0 : i32, i32
  }
  func.func @transform_9(%arg0: i32) -> (i32, i32) {
    %c0_i32 = arith.constant 0 : i32
    %c0_i32_0 = arith.constant 0 : i32
    return %arg0, %c0_i32 : i32, i32
  }
}

</mosaic_0001>

<bundles_post_ra>
// kernel: tpu_custom_call.1
= control target key start
LH: loop header
LB: loop body
LE: loop exit
PB: predicated region body
PF: predicated region fallthrough
CT: control target
= control target key end

     0   :  { %s4181_s0 = inlined_call_operand.hbm [shape: f32[32,256], index: 0, kind: input, shape index: {}]   ;;  %s4182_s1 = inlined_call_operand.hbm [shape: f32[1,256], index: 1, kind: input, shape index: {}]   ;;  %s4183_s2 = inlined_call_operand.hbm [shape: f32[1,256], index: 2, kind: input, shape index: {}]   ;;  %s4184_s3 = inlined_call_operand.hbm [shape: f32[768,512], index: 3, kind: input, shape index: {}]   ;;  %s4185_s4 = inlined_call_operand.hbm [shape: f32[1,512], index: 4, kind: input, shape index: {}]   ;;  %s4186_s5 = inlined_call_operand.hbm [shape: f32[1,512], index: 5, kind: input, shape index: {}]   ;;  %s4187_s6 = inlined_call_operand.hbm [shape: f32[1,512], index: 6, kind: input, shape index: {}]   ;;  %s4188_s7 = inlined_call_operand.hbm [shape: f32[1792,128], index: 7, kind: input, shape index: {}]   ;;  %s4189_s8 = inlined_call_operand.hbm [shape: f32[1,128], index: 8, kind: input, shape index: {}]   ;;  %s4190_s9 = inlined_call_operand.hbm [shape: f32[16,128], index: 9, kind: output, shape index: {}]  }
   0x1   :  { %4195 = sst [smem:[#allocation27_spill]] %s4182_s1 }
   0x2   :  { %4196 = sst [smem:[#allocation28_spill]] %s4183_s2 }
   0x3   :  { %4197 = sst [smem:[#allocation29_spill]] %s4184_s3 }
   0x4   :  { %14 = vsyncpa [#allocation6], 0 }
   0x5   :  { %16 = vsyncpa [#allocation6 + $0x1], 0 }
   0x6   :  { %17 = vsyncpa [#allocation9], 0 }
   0x7   :  { %18 = vsyncpa [#allocation12], 0 }
   0x8   :  { %19 = vsyncpa [#allocation15], 0 }
   0x9   :  { %20 = vsyncpa [#allocation18], 0 }
   0xa   :  { %21 = vsyncpa [#allocation7], 0 }
   0xb   :  { %23 = vsyncpa [#allocation7 + $0x1], 0  ;;  %s3504_s30 = smov 0   ;;  %s3506_s10 = smov 0  }
   0xc   :  { %s3508_s11 = smov 0   ;;  %s3510_s12 = smov 0  }
   0xd LB: > { %s3437_s13 = smov [#allocation8]   ;;  %s3525_s15 = sadd.s32 4294967295, %s3435_s12   ;;  %s3435_s12 = sphi %s3510_s12, %s4234_s12   ;;  %s3431_s11 = sphi %s3508_s11, %s4233_s11   ;;  %s3427_s10 = sphi %s3506_s10, %s4232_s10   ;;  %s3423_s30 = sphi %s3504_s30, %s4231_s30  }
   0xe   : > { %s267_s14 = sshll.u32 %s3437_s13, 4  ;;  %p2581_p0 = scmp.ge.s32.totalorder %s3435_s12, 1  ;;  %s268_s14 = int_to_ptr.vmem [resolvable:$true] %s267_s14 }
   0xf   : > { %p4191_p1 = scmp.eq.s32.totalorder %s3525_s15, 0  ;;  %p254_p2 = scmp.lt.s32.totalorder %s3435_s12, 3 }
  0x10   : > { %s3438_s17 = smov [#allocation11]   ;;  %s3439_s20 = smov [#allocation14]  }
  0x11   : > { %p3530_p3 = pnand %p2581_p0, %p254_p2  ;;  %s288_s18 = sshll.u32 %s3438_s17, 4  ;;  %s3537_s18 = int_to_ptr.vmem [resolvable:$true] %s288_s18 }
  0x12   : > { %s313_s21 = sshll.u32 %s3439_s20, 4  ;;  %s3130_s23 = scalar_lea.vmem %s268_s14, 32  ;;  %s3545_s21 = int_to_ptr.vmem [resolvable:$true] %s313_s21 }
  0x13   : > { %s4198_s16 = scalar_select %p3530_p3, 1, 0 }
  0x14   : > { %p3015_p5 = pneg %p3530_p3  ;;  %p3131_p8 = scmp.ne.s32.totalorder %s268_s14, %s3130_s23 }
  0x15   : > { %p3138_p11 = scmp.lt.s32.totalorder %s268_s14, %s268_s14  ;;  %p3139_p12 = scmp.lt.s32.totalorder %s3130_s23, %s3130_s23 }
  0x16   : > { %p3541_p6 = pnand %p3015_p5, %p4191_p1 }
  0x17   : > { %p3140_p13 = por %p3139_p12, %p3138_p11 }
  0x18   : > { %p3549_p7 = pneg %p3541_p6 }
  0x1a   : > { %p3133_p9 = pnand %p3131_p8, %p3549_p7 }
  0x1c   : > { %p3134_p10 = pneg %p3133_p9 }
  0x1e   : > { %p3141_p0 = pnand %p3140_p13, %p3134_p10 }
  0x20   : > { %3144 = shalt.err (!%p3141_p0)
}
  0x21   : > { %s4201_s1 = sld [smem:[#allocation27_spill]]  ;;  %s3156_s26 = scalar_lea.vmem %s3537_s18, 49152 }
  0x22   : > { %p3157_p2 = scmp.ne.s32.totalorder %s3537_s18, %s3156_s26  ;;  %p3164_p9 = scmp.lt.s32.totalorder %s3537_s18, %s3537_s18 }
  0x23   : > { %p3165_p11 = scmp.lt.s32.totalorder %s3156_s26, %s3156_s26 }
  0x24   : > { %p3159_p5 = pnand %p3157_p2, %p3549_p7 }
  0x25   : > { %p3166_p10 = por %p3165_p11, %p3164_p9 }
  0x26   : > { %p3160_p8 = pneg %p3159_p5 }
  0x27   : > { %3018 = dma.hbm_to_vmem [thread:$0]  (!%p3541_p6), %s4201_s1, 32, %s268_s14, [#allocation9]  }
  0x28   : > { %p3167_p12 = pnand %p3166_p10, %p3160_p8 }
  0x2a   : > { %3170 = shalt.err (!%p3167_p12)
}
  0x2b   : > { %s3440_s27 = smov 512   ;;  %s3441_s28 = smov 32  }
  0x2c   : > { %s4202_s3 = sld [smem:[#allocation29_spill]]  ;;  %s3182_s14 = scalar_lea.vmem %s3545_s21, 64 }
  0x2d   : > { %p3183_p13 = scmp.ne.s32.totalorder %s3545_s21, %s3182_s14  ;;  %p3190_p5 = scmp.lt.s32.totalorder %s3545_s21, %s3545_s21 }
  0x2e   : > { %p3191_p8 = scmp.lt.s32.totalorder %s3182_s14, %s3182_s14 }
  0x2f   : > { %p3185_p0 = pnand %p3183_p13, %p3549_p7 }
  0x30   : > { %p3192_p9 = por %p3191_p8, %p3190_p5 }
  0x31   : > { %p3186_p2 = pneg %p3185_p0 }
  0x32   : > { %3024 = dma.hbm_to_vmem [thread:$0]  (!%p3541_p6), %s4202_s3, 49152, %s3537_s18, [#allocation12], %s3440_s27, %s3440_s27, %s3441_s28  }
  0x33   : > { %p3193_p11 = pnand %p3192_p9, %p3186_p2 }
  0x35   : > { %3196 = shalt.err (!%p3193_p11)
}
  0x36   : > { %3030 = dma.hbm_to_vmem [thread:$0]  (!%p3541_p6), %s4186_s5, 64, %s3545_s21, [#allocation15]  }
  0x37   : > { %s3442_s18 = smov [#allocation17]  }
  0x38   : > { %s334_s23 = sshll.u32 %s3442_s18, 4  ;;  %s335_s23 = int_to_ptr.vmem [resolvable:$true] %s334_s23 }
  0x39   : > { %s3208_s24 = scalar_lea.vmem %s335_s23, 28672  ;;  %p3216_p0 = scmp.lt.s32.totalorder %s335_s23, %s335_s23 }
  0x3a   : > { %p3209_p10 = scmp.ne.s32.totalorder %s335_s23, %s3208_s24  ;;  %p3217_p5 = scmp.lt.s32.totalorder %s3208_s24, %s3208_s24 }
  0x3c   : > { %p3211_p12 = pnand %p3209_p10, %p3549_p7  ;;  %p3218_p2 = por %p3217_p5, %p3216_p0 }
  0x3e   : > { %p3212_p13 = pneg %p3211_p12 }
  0x40   : > { %p3219_p8 = pnand %p3218_p2, %p3212_p13 }
  0x42   : > { %3222 = shalt.err (!%p3219_p8)
}
  0x43   : > { %s3443_s25 = smov 128   ;;  %s3444_s26 = smov 8  }
  0x44   : > { %3036 = dma.hbm_to_vmem [thread:$0]  (!%p3541_p6), %s4188_s7, 28672, %s335_s23, [#allocation18], %s3443_s25, %s3443_s25, %s3444_s26  }
  0x45   : > { %s3445_s28 = smov [#allocation10]   ;;  %s3446_s13 = smov [#allocation13]  }
  0x46   : > { %s278_s29 = sshll.u32 %s3445_s28, 4  ;;  %s302_s14 = sshll.u32 %s3446_s13, 4  ;;  %s279_s29 = int_to_ptr.vmem [resolvable:$true] %s278_s29  ;;  %s303_s14 = int_to_ptr.vmem [resolvable:$true] %s302_s14 }
  0x47   : > { %s3234_s17 = scalar_lea.vmem %s279_s29, 32  ;;  %p3242_p12 = scmp.lt.s32.totalorder %s279_s29, %s279_s29 }
  0x48   : > { %p3235_p9 = scmp.ne.s32.totalorder %s279_s29, %s3234_s17  ;;  %p3243_p13 = scmp.lt.s32.totalorder %s3234_s17, %s3234_s17 }
  0x4a   : > { %p3237_p11 = pnand %p3235_p9, %p3549_p7  ;;  %p3244_p0 = por %p3243_p13, %p3242_p12 }
  0x4c   : > { %p3238_p10 = pneg %p3237_p11 }
  0x4e   : > { %p3245_p5 = pnand %p3244_p0, %p3238_p10 }
  0x50   : > { %3248 = shalt.err (!%p3245_p5)
}
  0x51   : > { %s4203_s2 = sld [smem:[#allocation28_spill]]  ;;  %s3260_s23 = scalar_lea.vmem %s303_s14, 64 }
  0x52   : > { %p3261_p2 = scmp.ne.s32.totalorder %s303_s14, %s3260_s23  ;;  %p3268_p1 = scmp.lt.s32.totalorder %s303_s14, %s303_s14 }
  0x53   : > { %p3269_p9 = scmp.lt.s32.totalorder %s3260_s23, %s3260_s23 }
  0x54   : > { %p3263_p8 = pnand %p3261_p2, %p3549_p7 }
  0x55   : > { %p3270_p11 = por %p3269_p9, %p3268_p1 }
  0x56   : > { %p3264_p4 = pneg %p3263_p8 }
  0x57   : > { %3021 = dma.hbm_to_vmem [thread:$0]  (!%p3541_p6), %s4203_s2, 32, %s279_s29, [#allocation9]  }
  0x58   : > { %p3271_p3 = pnand %p3270_p11, %p3264_p4 }
  0x5a   : > { %3274 = shalt.err (!%p3271_p3)
}
  0x5b   : > { %3027 = dma.hbm_to_vmem [thread:$0]  (!%p3541_p6), %s4185_s4, 64, %s303_s14, [#allocation12]  }
  0x5c   : > { %s3447_s26 = smov [#allocation16]   ;;  %s3448_s21 = smov [#allocation19]  }
  0x5d   : > { %s324_s27 = sshll.u32 %s3447_s26, 4  ;;  %s348_s28 = sshll.u32 %s3448_s21, 4  ;;  %s325_s27 = int_to_ptr.vmem [resolvable:$true] %s324_s27  ;;  %s349_s28 = int_to_ptr.vmem [resolvable:$true] %s348_s28 }
  0x5e   : > { %s3286_s29 = scalar_lea.vmem %s325_s27, 64  ;;  %p3294_p4 = scmp.lt.s32.totalorder %s325_s27, %s325_s27 }
  0x5f   : > { %p3287_p10 = scmp.ne.s32.totalorder %s325_s27, %s3286_s29  ;;  %p3295_p3 = scmp.lt.s32.totalorder %s3286_s29, %s3286_s29 }
  0x61   : > { %p3289_p12 = pnand %p3287_p10, %p3549_p7  ;;  %p3296_p13 = por %p3295_p3, %p3294_p4 }
  0x63   : > { %p3290_p1 = pneg %p3289_p12 }
  0x65   : > { %p3297_p0 = pnand %p3296_p13, %p3290_p1 }
  0x67   : > { %3300 = shalt.err (!%p3297_p0)
}
  0x68   : > { %3033 = dma.hbm_to_vmem [thread:$0]  (!%p3541_p6), %s4187_s6, 64, %s325_s27, [#allocation15]  }
  0x69   : > { %s3312_s17 = scalar_lea.vmem %s349_s28, 16  ;;  %s3319_s20 = scalar_lea.vmem %s349_s28, 32 }
  0x6a   : > { %p3313_p5 = scmp.ne.s32.totalorder %s349_s28, %s3312_s17  ;;  %p3320_p9 = scmp.lt.s32.totalorder %s349_s28, %s349_s28 }
  0x6b   : > { %p3321_p11 = scmp.lt.s32.totalorder %s3319_s20, %s3312_s17 }
  0x6c   : > { %p3315_p2 = pnand %p3313_p5, %p3549_p7 }
  0x6d   : > { %p3322_p10 = por %p3321_p11, %p3320_p9 }
  0x6e   : > { %p3316_p8 = pneg %p3315_p2 }
  0x70   : > { %p3323_p12 = pnand %p3322_p10, %p3316_p8 }
  0x72   : > { %3326 = shalt.err (!%p3323_p12)
}
  0x73   : > { %3039 = dma.hbm_to_vmem [thread:$0]  (!%p3541_p6), %s4189_s8, 16, %s349_s28, [#allocation18]  }
  0x74   : > { %s2580_s22 = sadd.s32 4294967294, %s3435_s12   ;;  %s3621_s19 = sadd.s32 1, %s3435_s12  }
  0x75   : > { %s33_s24 = ssub.s32 %s3435_s12, %s3621_s19  ;;  %s36_s25 = sadd.s32 1, %s3431_s11 }
  0x76   : > { %p34_p7 = scmp.eq.s32.totalorder %s33_s24, 0  ;;  %p43_p1 = scmp.ne.s32.totalorder %s3431_s11, %s3427_s10 }
  0x77   : > { %p44_p4 = scmp.eq.s32.totalorder %s3435_s12, 0  ;;  %p49_p3 = scmp.ne.s32.totalorder %s3427_s10, %s3423_s30 }
  0x78   : > { %s3632_s26 = scalar_select %p34_p7, %s3431_s11, %s36_s25  }
  0x79   : > { %p3634_p13 = por %p44_p4, %p43_p1  ;;  %p4205_p0 = scmp.eq.s32.totalorder %s3525_s15, 0 }
  0x7a   : > { %p241_p5 = scmp.eq.s32.totalorder %s3525_s15, 1  ;;  %p247_p2 = scmp.eq.s32.totalorder %s2580_s22, 1 }
  0x7b   : > { %p3640_p6 = por %p4205_p0, %p49_p3  ;;  %p3056_p8 = scmp.lt.s32.totalorder %s3435_s12, 2 }
  0x7c   : > { %s359_s28 = sand.u32 1, %s3431_s11   ;;  %p3647_p9 = por %p241_p5, %p43_p1 }
  0x7d   : > { %s4206_s21 = scalar_select %p3640_p6, 1, 0 }
  0x7e   : > { %s4207_s29 = scalar_select %p3647_p9, 1, 0 }
  0x7f   : > { %p3651_p11 = por %p247_p2, %p49_p3  ;;  %s2591_s14 = sshll.u32 %s359_s28, 5 }
  0x80   : > { %s2676_s17 = sshll.u32 %s3435_s12, 9  ;;  %s363_s22 = scalar_lea.vmem [#allocation5], %s2591_s14 }
  0x81   : > { %s4208_s13 = scalar_select %p3651_p11, 1, 0 }
  0x82   : > { %s3659_s23 = scalar_lea.hbm %s4181_s0, %s2676_s17  ;;  %s371_s24 = sshll.u32 %s363_s22, 4  ;;  %s3661_s24 = int_to_ptr.vmem [resolvable:$true] %s371_s24 }
  0x83   : > { %p3665_p10 = pnand %p3056_p8, %p3634_p13  ;;  %s3669_s1 = scalar_lea.sflag [#allocation6], %s359_s28 }
  0x84   : > { %s3327_s2 = scalar_lea.hbm %s3659_s23, 512  ;;  %s3332_s14 = scalar_lea.hbm %s4181_s0, 1024 }
  0x85   : > { %p3328_p12 = scmp.ne.s32.totalorder %s3659_s23, %s3327_s2  ;;  %p3329_p7 = pneg %p3665_p10 }
  0x86   : > { %p3333_p3 = scmp.lt.s32.totalorder %s3659_s23, %s4181_s0  ;;  %p3334_p13 = scmp.lt.s32.totalorder %s3332_s14, %s3327_s2 }
  0x87   : > { %p3330_p1 = pnand %p3329_p7, %p3328_p12 }
  0x88   : > { %p3335_p0 = por %p3334_p13, %p3333_p3 }
  0x89   : > { %p3331_p4 = pneg %p3330_p1 }
  0x8b   : > { %p3336_p5 = pnand %p3335_p0, %p3331_p4 }
  0x8d   : > { %3339 = shalt.err (!%p3336_p5)
}
  0x8e   : > { %s3340_s27 = scalar_lea.vmem %s3661_s24, 512  ;;  %s3449_s28 = smov [#allocation5]  }
  0x8f   : > { %p3341_p2 = scmp.ne.s32.totalorder %s3661_s24, %s3340_s27  ;;  %s3345_s3 = sshll.u32 %s3449_s28, 4  ;;  %s3346_s3 = int_to_ptr.vmem [resolvable:$false] %s3345_s3 }
  0x90   : > { %s3347_s17 = scalar_lea.vmem %s3346_s3, 1024  ;;  %p3348_p1 = scmp.lt.s32.totalorder %s3661_s24, %s3346_s3 }
  0x91   : > { %p3343_p8 = pnand %p3341_p2, %p3329_p7  ;;  %p3349_p11 = scmp.lt.s32.totalorder %s3347_s17, %s3340_s27 }
  0x93   : > { %p3344_p12 = pneg %p3343_p8  ;;  %p3350_p9 = por %p3349_p11, %p3348_p1 }
  0x95   : > { %p3351_p6 = pnand %p3350_p9, %p3344_p12 }
  0x97   : > { %3354 = shalt.err (!%p3351_p6)
}
  0x98   : > { %s3450_s2 = smov 256   ;;  %s3451_s20 = smov 16  }
  0x99   : > { %3043 = dma.hbm_to_vmem [thread:$0]  (!%p3665_p10), %s3659_s23, 512, %s3661_s24, %s3669_s1, %s3450_s2, %s3450_s2, %s3451_s20  }
  0x9a   : > { %p4210_p7 = scmp.ne.s32.totalorder %s4198_s16, 0 }
  0x9b   : > { %s3693_s14 = sand.u32 (!%p4210_p7), 1, %s3427_s10   ;;  %p4211_p6 = scmp.ne.s32.totalorder (!%p4210_p7), %s4206_s21, 0 }
  0x9c   : > { %383 = sbr.rel (%p4210_p7) target bundleno = 909 (0x38d), region = 56  ;;  %s2596_s3 = sshll.u32 (!%p4210_p7), %s3693_s14, 5 }
  0x9d   : > { %s386_s18 = scalar_lea.sflag (!%p4210_p7), [#allocation6], %s3693_s14  ;;  %s3697_s22 = scalar_lea.vmem (!%p4210_p7), [#allocation5], %s2596_s3 }
  0xa1   : > { %3398 = dma.done.wait (%p4211_p6), %s386_s18, 512  }
  0xa2   : > { %3400 = vsyncadd (%p4211_p6), %s386_s18, 4294966784  ;;  %p4212_p9 = scmp.eq.s32.totalorder %s3525_s15, 0 }
  0xa4   : > { %3402 = dma.done.wait (%p4212_p9), [#allocation9], 64   ;;  %p4213_p11 = pmov %p4212_p9 }
  0xa5   : > { %p4214_p10 = pmov %p4212_p9 }
  0xa6   : > { %3404 = vsyncadd (%p4213_p11), [#allocation9], 4294967232 }
  0xa7   : > { %3406 = dma.done.wait (%p4214_p10), [#allocation12], 49216   ;;  %p4215_p4 = pmov %p4212_p9 }
  0xa9   : > { %3408 = vsyncadd (%p4215_p4), [#allocation12], 4294918080  ;;  %p4216_p3 = pmov %p4215_p4 }
  0xab   : > { %3410 = dma.done.wait (%p4216_p3), [#allocation15], 128   ;;  %p4217_p13 = pmov %p4216_p3 }
  0xac   : > { %p4218_p0 = pmov %p4216_p3 }
  0xad   : > { %3412 = vsyncadd (%p4217_p13), [#allocation15], 4294967168 }
  0xae   : > { %3414 = dma.done.wait (%p4218_p0), [#allocation18], 28688   ;;  %p4219_p5 = pmov %p4218_p0 }
  0xaf   : > { %v3452_v0 = vmov 0.0   ;;  %v657_v1 = vld [vmem:[#allocation11 + $0x1e8] sm:$0xff]  ;;  %v656_v3 = vld [vmem:[#allocation11 + $0x1e0] sm:$0xff]  ;;  %vm544_vm0 = vcmask 1041408   ;;  %vm577_vm1 = vcmask 1040384   ;;  %s2605_s1 = sshll.u32 %s3693_s14, 3 }
  0xb0   : > { %3416 = vsyncadd (%p4219_p5), [#allocation18], 4294938608  ;;  %521 = vst [vmem:[#allocation2 + $0x10] sm:$0xff] %v3452_v0  ;;  %v785_v2 = vld [vmem:[#allocation11 + $0x5e8] sm:$0xff]  ;;  %1002 = vmatprep.subr.mxu0 %v657_v1  ;;  %v784_v4 = vld [vmem:[#allocation11 + $0x5e0] sm:$0xff]  ;;  %s2672_s16 = sshll.u32 %s3525_s15, 7 }
  0xb1   : > { %520 = vst [vmem:[#allocation2 + $0x28] sm:$0xff] %v3452_v0  ;;  %1532 = vst [vmem:[#allocation3 + $0x40] sm:$0xff] %v3452_v0  ;;  %1079 = vmatprep.subr.mxu1 %v785_v2  ;;  %v653_v5 = vld [vmem:[#allocation11 + $0x1c8] sm:$0xff]  ;;  %1003 = vmatpush1.msra.mxu0 %v656_v3  ;;  %v652_v7 = vld [vmem:[#allocation11 + $0x1c0] sm:$0xff]  ;;  %s455_s21 = scalar_lea.vmem [#allocation20], %s2605_s1  ;;  %s2432_s27 = scalar_lea.hbm %s4190_s9, %s2672_s16 }
  0xb2   : > { %1533 = vst [vmem:[#allocation3 + $0x8] sm:$0xff] %v3452_v0  ;;  %1534 = vst [vmem:[#allocation3 + $0x20] sm:$0xff] %v3452_v0  ;;  %v781_v6 = vld [vmem:[#allocation11 + $0x5c8] sm:$0xff]  ;;  %1080 = vmatpush1.msra.mxu1 %v784_v4  ;;  %v780_v8 = vld [vmem:[#allocation11 + $0x5c0] sm:$0xff]  ;;  %1004 = vmatprep.subr.mxu0 %v653_v5  ;;  %v461_v5 = vlaneseq  ;;  %s2434_s23 = sshll.u32 %s455_s21, 4  ;;  %s2421_s28 = scalar_lea.sflag [#allocation7], %s3693_s14  ;;  %s2435_s23 = int_to_ptr.vmem [resolvable:$true] %s2434_s23 }
  0xb3   : > { %1535 = vst [vmem:[#allocation3 + $0x58] sm:$0xff] %v3452_v0  ;;  %v649_v9 = vld [vmem:[#allocation11 + $0x1a8] sm:$0xff]  ;;  %1081 = vmatprep.subr.mxu1 %v781_v6  ;;  %v648_v11 = vld [vmem:[#allocation11 + $0x1a0] sm:$0xff]  ;;  %1005 = vmatpush1.msra.mxu0 %v652_v7  ;;  %s3355_s17 = scalar_lea.vmem %s2435_s23, 128  ;;  %p4228_p8 = scmp.ne.s32.totalorder %s4207_s29, 0 }
  0xb4   : > { %v777_v10 = vld [vmem:[#allocation11 + $0x5a8] sm:$0xff]  ;;  %v776_v12 = vld [vmem:[#allocation11 + $0x5a0] sm:$0xff]  ;;  %1082 = vmatpush1.msra.mxu1 %v780_v8  ;;  %1006 = vmatprep.subr.mxu0 %v649_v9  ;;  %p3356_p2 = scmp.ne.s32.totalorder %s2435_s23, %s3355_s17  ;;  %s3453_s2 = smov [#allocation20]  }
  0xb5   : > { %v645_v13 = vld [vmem:[#allocation11 + $0x188] sm:$0xff]  ;;  %1083 = vmatprep.subr.mxu1 %v777_v10  ;;  %v644_v15 = vld [vmem:[#allocation11 + $0x180] sm:$0xff]  ;;  %1007 = vmatpush1.msra.mxu0 %v648_v11  ;;  %s3359_s20 = sshll.u32 %s3453_s2, 4  ;;  %s3360_s20 = int_to_ptr.vmem [resolvable:$false] %s3359_s20 }
  0xb6   : > { %v773_v14 = vld [vmem:[#allocation11 + $0x588] sm:$0xff]  ;;  %v772_v16 = vld [vmem:[#allocation11 + $0x580] sm:$0xff]  ;;  %1084 = vmatpush1.msra.mxu1 %v776_v12  ;;  %1008 = vmatprep.subr.mxu0 %v645_v13  ;;  %p3357_p12 = pnand %p3356_p2, %p4228_p8  ;;  %s3361_s15 = scalar_lea.vmem %s3360_s20, 256 }
  0xb7   : > { %v641_v17 = vld [vmem:[#allocation11 + $0x168] sm:$0xff]  ;;  %1085 = vmatprep.subr.mxu1 %v773_v14  ;;  %v640_v19 = vld [vmem:[#allocation11 + $0x160] sm:$0xff]  ;;  %1009 = vmatpush1.msra.mxu0 %v644_v15  ;;  %v3719_v14 = vshrl.u32 %v461_v5, 7  ;;  %p3362_p7 = scmp.lt.s32.totalorder %s2435_s23, %s3360_s20  ;;  %p3363_p6 = scmp.lt.s32.totalorder %s3361_s15, %s3355_s17 }
  0xb8   : > { %v769_v18 = vld [vmem:[#allocation11 + $0x568] sm:$0xff]  ;;  %v768_v20 = vld [vmem:[#allocation11 + $0x560] sm:$0xff]  ;;  %1086 = vmatpush1.msra.mxu1 %v772_v16  ;;  %1010 = vmatprep.subr.mxu0 %v641_v17  ;;  %p3358_p1 = pneg %p3357_p12 }
  0xb9   : > { %v637_v21 = vld [vmem:[#allocation11 + $0x148] sm:$0xff]  ;;  %1087 = vmatprep.subr.mxu1 %v769_v18  ;;  %v636_v23 = vld [vmem:[#allocation11 + $0x140] sm:$0xff]  ;;  %1011 = vmatpush1.msra.mxu0 %v640_v19  ;;  %p3364_p9 = por %p3363_p6, %p3362_p7 }
  0xba   : > { %v765_v22 = vld [vmem:[#allocation11 + $0x548] sm:$0xff]  ;;  %v764_v24 = vld [vmem:[#allocation11 + $0x540] sm:$0xff]  ;;  %1088 = vmatpush1.msra.mxu1 %v768_v20  ;;  %1012 = vmatprep.subr.mxu0 %v637_v21 }
  0xbb   : > { %v633_v25 = vld [vmem:[#allocation11 + $0x128] sm:$0xff]  ;;  %1089 = vmatprep.subr.mxu1 %v765_v22  ;;  %v632_v27 = vld [vmem:[#allocation11 + $0x120] sm:$0xff]  ;;  %1013 = vmatpush1.msra.mxu0 %v636_v23  ;;  %v3722_v23 = vsub.s32 0, %v3719_v14  ;;  %p3365_p11 = pnand %p3364_p9, %p3358_p1 }
  0xbc   : > { %v761_v26 = vld [vmem:[#allocation11 + $0x528] sm:$0xff]  ;;  %v760_v28 = vld [vmem:[#allocation11 + $0x520] sm:$0xff]  ;;  %1090 = vmatpush1.msra.mxu1 %v764_v24  ;;  %1014 = vmatprep.subr.mxu0 %v633_v25  ;;  %v3725_v24 = vsub.s32 1, %v3719_v14 }
  0xbd   : > { %v629_v29 = vld [vmem:[#allocation11 + $0x108] sm:$0xff]  ;;  %1091 = vmatprep.subr.mxu1 %v761_v26  ;;  %v628_v31 = vld [vmem:[#allocation11 + $0x100] sm:$0xff]  ;;  %1015 = vmatpush1.msra.mxu0 %v632_v27 }
  0xbe   : > { %v757_v30 = vld [vmem:[#allocation11 + $0x508] sm:$0xff]  ;;  %v756_v32 = vld [vmem:[#allocation11 + $0x500] sm:$0xff]  ;;  %1092 = vmatpush1.msra.mxu1 %v760_v28  ;;  %1016 = vmatprep.subr.mxu0 %v629_v29 }
  0xbf   : > { %v625_v33 = vld [vmem:[#allocation11 + $0xe8] sm:$0xff]  ;;  %1093 = vmatprep.subr.mxu1 %v757_v30  ;;  %v624_v35 = vld [vmem:[#allocation11 + $0xe0] sm:$0xff]  ;;  %1017 = vmatpush1.msra.mxu0 %v628_v31 }
  0xc0   : > { %v753_v34 = vld [vmem:[#allocation11 + $0x4e8] sm:$0xff]  ;;  %v752_v36 = vld [vmem:[#allocation11 + $0x4e0] sm:$0xff]  ;;  %1094 = vmatpush1.msra.mxu1 %v756_v32  ;;  %1018 = vmatprep.subr.mxu0 %v625_v33  ;;  %v488_v32 = vld [vmem:[#allocation8] sm:$0x3] }
  0xc1   : > { %v621_v37 = vld [vmem:[#allocation11 + $0xc8] sm:$0xff]  ;;  %1095 = vmatprep.subr.mxu1 %v753_v34  ;;  %v620_v39 = vld [vmem:[#allocation11 + $0xc0] sm:$0xff]  ;;  %1019 = vmatpush1.msra.mxu0 %v624_v35  ;;  %v3729_v35 = vrot.slane %v488_v32, %v3722_v23 }
  0xc2   : > { %v749_v38 = vld [vmem:[#allocation11 + $0x4c8] sm:$0xff]  ;;  %v748_v40 = vld [vmem:[#allocation11 + $0x4c0] sm:$0xff]  ;;  %1096 = vmatpush1.msra.mxu1 %v752_v36  ;;  %1020 = vmatprep.subr.mxu0 %v621_v37  ;;  %v3732_v36 = vrot.slane %v488_v32, %v3725_v24  ;;  %v504_v37 = vld [vmem:[#allocation10] sm:$0x3] }
  0xc3   : > { %v617_v41 = vld [vmem:[#allocation11 + $0xa8] sm:$0xff]  ;;  %1097 = vmatprep.subr.mxu1 %v749_v38  ;;  %v616_v43 = vld [vmem:[#allocation11 + $0xa0] sm:$0xff]  ;;  %1021 = vmatpush1.msra.mxu0 %v620_v39 }
  0xc4   : > { %v745_v42 = vld [vmem:[#allocation11 + $0x4a8] sm:$0xff]  ;;  %v744_v44 = vld [vmem:[#allocation11 + $0x4a0] sm:$0xff]  ;;  %1098 = vmatpush1.msra.mxu1 %v748_v40  ;;  %1022 = vmatprep.subr.mxu0 %v617_v41  ;;  %v3735_v40 = vrot.slane %v504_v37, %v3722_v23  ;;  %v3738_v41 = vrot.slane %v504_v37, %v3725_v24 }
  0xc5   : > { %v613_v45 = vld [vmem:[#allocation11 + $0x88] sm:$0xff]  ;;  %1099 = vmatprep.subr.mxu1 %v745_v42  ;;  %v612_v47 = vld [vmem:[#allocation11 + $0x80] sm:$0xff]  ;;  %1023 = vmatpush1.msra.mxu0 %v616_v43 }
  0xc6   : > { %v741_v46 = vld [vmem:[#allocation11 + $0x488] sm:$0xff]  ;;  %v740_v48 = vld [vmem:[#allocation11 + $0x480] sm:$0xff]  ;;  %1100 = vmatpush1.msra.mxu1 %v744_v44  ;;  %1024 = vmatprep.subr.mxu0 %v613_v45 }
  0xc7   : > { %v609_v49 = vld [vmem:[#allocation11 + $0x68] sm:$0xff]  ;;  %1101 = vmatprep.subr.mxu1 %v741_v46  ;;  %v608_v51 = vld [vmem:[#allocation11 + $0x60] sm:$0xff]  ;;  %1025 = vmatpush1.msra.mxu0 %v612_v47 }
  0xc8   : > { %v737_v50 = vld [vmem:[#allocation11 + $0x468] sm:$0xff]  ;;  %v736_v52 = vld [vmem:[#allocation11 + $0x460] sm:$0xff]  ;;  %1102 = vmatpush1.msra.mxu1 %v740_v48  ;;  %1026 = vmatprep.subr.mxu0 %v609_v49 }
  0xc9   : > { %v605_v53 = vld [vmem:[#allocation11 + $0x48] sm:$0xff]  ;;  %1103 = vmatprep.subr.mxu1 %v737_v50  ;;  %v604_v55 = vld [vmem:[#allocation11 + $0x40] sm:$0xff]  ;;  %1027 = vmatpush1.msra.mxu0 %v608_v51 }
  0xca   : > { %v733_v54 = vld [vmem:[#allocation11 + $0x448] sm:$0xff]  ;;  %v732_v56 = vld [vmem:[#allocation11 + $0x440] sm:$0xff]  ;;  %1104 = vmatpush1.msra.mxu1 %v736_v52  ;;  %1028 = vmatprep.subr.mxu0 %v605_v53 }
  0xcb   : > { %v601_v57 = vld [vmem:[#allocation11 + $0x28] sm:$0xff]  ;;  %1105 = vmatprep.subr.mxu1 %v733_v54  ;;  %v600_v59 = vld [vmem:[#allocation11 + $0x20] sm:$0xff]  ;;  %1029 = vmatpush1.msra.mxu0 %v604_v55 }
  0xcc   : > { %v729_v58 = vld [vmem:[#allocation11 + $0x428] sm:$0xff]  ;;  %v728_v60 = vld [vmem:[#allocation11 + $0x420] sm:$0xff]  ;;  %1106 = vmatpush1.msra.mxu1 %v732_v56  ;;  %1030 = vmatprep.subr.mxu0 %v601_v57 }
  0xcd   : > { %v597_v61 = vld [vmem:[#allocation11 + $0x8] sm:$0xff]  ;;  %1107 = vmatprep.subr.mxu1 %v729_v58  ;;  %v596_v63 = vld [vmem:[#allocation11] sm:$0xff]  ;;  %1031 = vmatpush1.msra.mxu0 %v600_v59 }
  0xce   : > { %v725_v62 = vld [vmem:[#allocation11 + $0x408] sm:$0xff]  ;;  %v724_v0 = vld [vmem:[#allocation11 + $0x400] sm:$0xff]  ;;  %1108 = vmatpush1.msra.mxu1 %v728_v60  ;;  %1032 = vmatprep.subr.mxu0 %v597_v61 }
  0xcf   : > { %v721_v1 = vld [vmem:[#allocation11 + $0x3e8] sm:$0xff]  ;;  %1109 = vmatprep.subr.mxu1 %v725_v62  ;;  %v720_v3 = vld [vmem:[#allocation11 + $0x3e0] sm:$0xff]  ;;  %1033 = vmatpush1.msra.mxu0 %v596_v63 }
  0xd0   : > { %v849_v2 = vld [vmem:[#allocation11 + $0x7e8] sm:$0xff]  ;;  %v848_v4 = vld [vmem:[#allocation11 + $0x7e0] sm:$0xff]  ;;  %1110 = vmatpush1.msra.mxu1 %v724_v0  ;;  %1034 = vmatprep.subr.mxu0 %v721_v1 }
  0xd1   : > { %v717_v6 = vld [vmem:[#allocation11 + $0x3c8] sm:$0xff]  ;;  %1111 = vmatprep.subr.mxu1 %v849_v2  ;;  %v716_v8 = vld [vmem:[#allocation11 + $0x3c0] sm:$0xff]  ;;  %1035 = vmatpush2.msra.mxu0 %v720_v3  ;;  %v527_v3 = vld [vmem:[#allocation2 + $0x10] sm:$0xc0] }
  0xd2   : > { %v845_v7 = vld [vmem:[#allocation11 + $0x7c8] sm:$0xff]  ;;  %v844_v9 = vld [vmem:[#allocation11 + $0x7c0] sm:$0xff]  ;;  %1112 = vmatpush2.msra.mxu1 %v848_v4  ;;  %1036 = vmatprep.subr.mxu0 %v717_v6 }
  0xd3   : > { %v713_v10 = vld [vmem:[#allocation11 + $0x3a8] sm:$0xff]  ;;  %1113 = vmatprep.subr.mxu1 %v845_v7  ;;  %v712_v12 = vld [vmem:[#allocation11 + $0x3a0] sm:$0xff]  ;;  %1037 = vmatpush2.msra.mxu0 %v716_v8 }
  0xd4   : > { %v841_v11 = vld [vmem:[#allocation11 + $0x7a8] sm:$0xff]  ;;  %v840_v13 = vld [vmem:[#allocation11 + $0x7a0] sm:$0xff]  ;;  %1114 = vmatpush2.msra.mxu1 %v844_v9  ;;  %1038 = vmatprep.subr.mxu0 %v713_v10  ;;  %v468_v9 = vand.u32 7, %v3719_v14  ;;  %v564_v10 = vld [vmem:[#allocation2 + $0x10] sm:$0x80] }
  0xd5   : > { %v709_v15 = vld [vmem:[#allocation11 + $0x388] sm:$0xff]  ;;  %1115 = vmatprep.subr.mxu1 %v841_v11  ;;  %v708_v17 = vld [vmem:[#allocation11 + $0x380] sm:$0xff]  ;;  %1039 = vmatpush2.msra.mxu0 %v712_v12 }
  0xd6   : > { %v837_v16 = vld [vmem:[#allocation11 + $0x788] sm:$0xff]  ;;  %v836_v18 = vld [vmem:[#allocation11 + $0x780] sm:$0xff]  ;;  %1116 = vmatpush2.msra.mxu1 %v840_v13  ;;  %1040 = vmatprep.subr.mxu0 %v709_v15  ;;  %v548_v13 = vrot.slane %v527_v3, 6  ;;  %vm3761_vm2 = vcmp.ge.s32.totalorder %v468_v9, 2  ;;  %vm3775_vm3 = vcmp.ge.s32.totalorder %v468_v9, 1 }
  0xd7   : > { %v705_v19 = vld [vmem:[#allocation11 + $0x368] sm:$0xff]  ;;  %1117 = vmatprep.subr.mxu1 %v837_v16  ;;  %v704_v21 = vld [vmem:[#allocation11 + $0x360] sm:$0xff]  ;;  %1041 = vmatpush2.msra.mxu0 %v708_v17 }
  0xd8   : > { %v833_v20 = vld [vmem:[#allocation11 + $0x768] sm:$0xff]  ;;  %v832_v22 = vld [vmem:[#allocation11 + $0x760] sm:$0xff]  ;;  %1118 = vmatpush2.msra.mxu1 %v836_v18  ;;  %1042 = vmatprep.subr.mxu0 %v705_v19 }
  0xd9   : > { %v701_v25 = vld [vmem:[#allocation11 + $0x348] sm:$0xff]  ;;  %1119 = vmatprep.subr.mxu1 %v833_v20  ;;  %v700_v27 = vld [vmem:[#allocation11 + $0x340] sm:$0xff]  ;;  %1043 = vmatpush2.msra.mxu0 %v704_v21 }
  0xda   : > { %v829_v26 = vld [vmem:[#allocation11 + $0x748] sm:$0xff]  ;;  %v828_v28 = vld [vmem:[#allocation11 + $0x740] sm:$0xff]  ;;  %1120 = vmatpush2.msra.mxu1 %v832_v22  ;;  %1044 = vmatprep.subr.mxu0 %v701_v25  ;;  %v581_v25 = vrot.slane %v564_v10, 7  ;;  %v631_v10 = vld [vmem:[#allocation11 + $0x118] sm:$0xff] }
  0xdb   : > { %v697_v29 = vld [vmem:[#allocation11 + $0x328] sm:$0xff]  ;;  %1121 = vmatprep.subr.mxu1 %v829_v26  ;;  %v696_v33 = vld [vmem:[#allocation11 + $0x320] sm:$0xff]  ;;  %1045 = vmatpush2.msra.mxu0 %v700_v27 }
  0xdc   : > { %v825_v30 = vld [vmem:[#allocation11 + $0x728] sm:$0xff]  ;;  %v824_v34 = vld [vmem:[#allocation11 + $0x720] sm:$0xff]  ;;  %1122 = vmatpush2.msra.mxu1 %v828_v28  ;;  %1046 = vmatprep.subr.mxu0 %v697_v29 }
  0xdd   : > { %v458_v31 = vld [vmem:[%s3697_s22 + $0x8] sm:$0xff]  ;;  %v457_v42 = vld [vmem:[%s3697_s22] sm:$0xff]  ;;  %1123 = vmatprep.subr.mxu1 %v825_v30  ;;  %1047 = vmatpush2.msra.mxu0 %v696_v33  ;;  %v1780_v33 = vld [vmem:[#allocation17 + $0x3e0] sm:$0xff] }
  0xde   : > { %v693_v38 = vld [vmem:[#allocation11 + $0x308] sm:$0xff]  ;;  %v692_v43 = vld [vmem:[#allocation11 + $0x300] sm:$0xff]  ;;  %v501_v45 = vmul.f32 %v3732_v36, %v458_v31  ;;  %v500_v46 = vmul.f32 %v3729_v35, %v457_v42  ;;  %1124 = vmatpush2.msra.mxu1 %v824_v34 }
  0xdf   : > { %v821_v39 = vld [vmem:[#allocation11 + $0x708] sm:$0xff]  ;;  %v820_v44 = vld [vmem:[#allocation11 + $0x700] sm:$0xff]  ;;  %1048 = vmatprep.subr.mxu0 %v693_v38 }
  0xe0   : > { %v689_v47 = vld [vmem:[#allocation11 + $0x2e8] sm:$0xff]  ;;  %1125 = vmatprep.subr.mxu1 %v821_v39  ;;  %v688_v49 = vld [vmem:[#allocation11 + $0x2e0] sm:$0xff]  ;;  %v3744_v51 = vadd.f32 %v3738_v41, %v501_v45  ;;  %v3747_v52 = vadd.f32 %v3735_v40, %v500_v46  ;;  %1049 = vmatpush2.msra.mxu0 %v692_v43  ;;  %v659_v43 = vld [vmem:[#allocation11 + $0x1f8] sm:$0xff] }
  0xe1   : > { %v817_v48 = vld [vmem:[#allocation11 + $0x6e8] sm:$0xff]  ;;  %v816_v50 = vld [vmem:[#allocation11 + $0x6e0] sm:$0xff]  ;;  %1126 = vmatpush2.msra.mxu1 %v820_v44  ;;  %1050 = vmatprep.subr.mxu0 %v689_v47  ;;  %v658_v46 = vld [vmem:[#allocation11 + $0x1f0] sm:$0xff] }
  0xe2   : > { %v685_v53 = vld [vmem:[#allocation11 + $0x2c8] sm:$0xff]  ;;  %1127 = vmatprep.subr.mxu1 %v817_v48  ;;  %v684_v55 = vld [vmem:[#allocation11 + $0x2c0] sm:$0xff]  ;;  %523 = vst [vmem:[#allocation2] sm:$0xff] %v3744_v51  ;;  %522 = vst [vmem:[#allocation2 + $0x8] sm:$0xff] %v3747_v52  ;;  %1051 = vmatpush2.msra.mxu0 %v688_v49  ;;  %v549_v15 = vrot.slane %v3744_v51, 6  ;;  %v546_v20 = vrot.slane %v3747_v52, 6 }
  0xe3   : > { %v813_v54 = vld [vmem:[#allocation11 + $0x6c8] sm:$0xff]  ;;  %v812_v56 = vld [vmem:[#allocation11 + $0x6c0] sm:$0xff]  ;;  %1128 = vmatpush2.msra.mxu1 %v816_v50  ;;  %1052 = vmatprep.subr.mxu0 %v685_v53  ;;  %v582_v26 = vrot.slane %v3744_v51, 7  ;;  %v579_v30 = vrot.slane %v3747_v52, 7  ;;  %v655_v48 = vld [vmem:[#allocation11 + $0x1d8] sm:$0xff] }
  0xe4   : > { %v681_v57 = vld [vmem:[#allocation11 + $0x2a8] sm:$0xff]  ;;  %1129 = vmatprep.subr.mxu1 %v813_v54  ;;  %v680_v59 = vld [vmem:[#allocation11 + $0x2a0] sm:$0xff]  ;;  %1053 = vmatpush2.msra.mxu0 %v684_v55  ;;  %v3759_v32 = vsel %vm544_vm0, %v548_v13, %v549_v15  ;;  %v654_v50 = vld [vmem:[#allocation11 + $0x1d0] sm:$0xff] }
  0xe5   : > { %v809_v58 = vld [vmem:[#allocation11 + $0x6a8] sm:$0xff]  ;;  %v808_v60 = vld [vmem:[#allocation11 + $0x6a0] sm:$0xff]  ;;  %1130 = vmatpush2.msra.mxu1 %v812_v56  ;;  %1054 = vmatprep.subr.mxu0 %v681_v57  ;;  %v3773_v38 = vsel %vm577_vm1, %v581_v25, %v582_v26  ;;  %v651_v54 = vld [vmem:[#allocation11 + $0x1b8] sm:$0xff] }
  0xe6   : > { %v677_v61 = vld [vmem:[#allocation11 + $0x288] sm:$0xff]  ;;  %1131 = vmatprep.subr.mxu1 %v809_v58  ;;  %v676_v63 = vld [vmem:[#allocation11 + $0x280] sm:$0xff]  ;;  %1055 = vmatpush2.msra.mxu0 %v680_v59  ;;  %v650_v56 = vld [vmem:[#allocation11 + $0x1b0] sm:$0xff] }
  0xe7   : > { %v805_v62 = vld [vmem:[#allocation11 + $0x688] sm:$0xff]  ;;  %v804_v0 = vld [vmem:[#allocation11 + $0x680] sm:$0xff]  ;;  %1132 = vmatpush2.msra.mxu1 %v808_v60  ;;  %1056 = vmatprep.subr.mxu0 %v677_v61  ;;  %v647_v58 = vld [vmem:[#allocation11 + $0x198] sm:$0xff] }
  0xe8   : > { %v673_v1 = vld [vmem:[#allocation11 + $0x268] sm:$0xff]  ;;  %1133 = vmatprep.subr.mxu1 %v805_v62  ;;  %v672_v4 = vld [vmem:[#allocation11 + $0x260] sm:$0xff]  ;;  %1057 = vmatpush2.msra.mxu0 %v676_v63  ;;  %v646_v60 = vld [vmem:[#allocation11 + $0x190] sm:$0xff] }
  0xe9   : > { %v801_v2 = vld [vmem:[#allocation11 + $0x668] sm:$0xff]  ;;  %v800_v5 = vld [vmem:[#allocation11 + $0x660] sm:$0xff]  ;;  %1134 = vmatpush2.msra.mxu1 %v804_v0  ;;  %1058 = vmatprep.subr.mxu0 %v673_v1  ;;  %v643_v62 = vld [vmem:[#allocation11 + $0x178] sm:$0xff] }
  0xea   : > { %v526_v6 = vld [vmem:[#allocation2 + $0x28] sm:$0xc0]  ;;  %1135 = vmatprep.subr.mxu1 %v801_v2  ;;  %v668_v11 = vld [vmem:[#allocation11 + $0x240] sm:$0xff]  ;;  %1059 = vmatpush2.msra.mxu0 %v672_v4  ;;  %v642_v0 = vld [vmem:[#allocation11 + $0x170] sm:$0xff] }
  0xeb   : > { %v669_v7 = vld [vmem:[#allocation11 + $0x248] sm:$0xff]  ;;  %v796_v12 = vld [vmem:[#allocation11 + $0x640] sm:$0xff]  ;;  %1136 = vmatpush2.msra.mxu1 %v800_v5  ;;  %v545_v19 = vrot.slane %v526_v6, 6  ;;  %2607 = vmatprep.mubr.msk.f32.mxu0 %vm3761_vm2, %v3759_v32  ;;  %v639_v2 = vld [vmem:[#allocation11 + $0x158] sm:$0xff] }
  0xec   : > { %v797_v8 = vld [vmem:[#allocation11 + $0x648] sm:$0xff]  ;;  %1060 = vmatprep.subr.mxu0 %v669_v7  ;;  %v664_v21 = vld [vmem:[#allocation11 + $0x220] sm:$0xff]  ;;  %2615 = vmatprep.mubr.msk.f32.mxu1 %vm3775_vm3, %v3773_v38  ;;  %v638_v4 = vld [vmem:[#allocation11 + $0x150] sm:$0xff] }
  0xed   : > { %v563_v16 = vld [vmem:[#allocation2 + $0x28] sm:$0x80]  ;;  %1137 = vmatprep.subr.mxu1 %v797_v8  ;;  %v792_v22 = vld [vmem:[#allocation11 + $0x620] sm:$0xff]  ;;  %1061 = vmatpush2.msra.mxu0 %v668_v11  ;;  %v3768_v37 = vsel %vm544_vm0, %v545_v19, %v546_v20  ;;  %v635_v6 = vld [vmem:[#allocation11 + $0x138] sm:$0xff] }
  0xee   : > { %v665_v17 = vld [vmem:[#allocation11 + $0x228] sm:$0xff]  ;;  %1138 = vmatpush2.msra.mxu1 %v796_v12  ;;  %v578_v29 = vrot.slane %v563_v16, 7  ;;  %v660_v31 = vld [vmem:[#allocation11 + $0x200] sm:$0xff]  ;;  %v634_v8 = vld [vmem:[#allocation11 + $0x130] sm:$0xff] }
  0xef   : > { %v793_v18 = vld [vmem:[#allocation11 + $0x628] sm:$0xff]  ;;  %1062 = vmatprep.subr.mxu0 %v665_v17  ;;  %v788_v34 = vld [vmem:[#allocation11 + $0x600] sm:$0xff]  ;;  %v630_v12 = vld [vmem:[#allocation11 + $0x110] sm:$0xff] }
  0xf0   : > { %v661_v27 = vld [vmem:[#allocation11 + $0x208] sm:$0xff]  ;;  %1139 = vmatprep.subr.mxu1 %v793_v18  ;;  %1063 = vmatpush2.msra.mxu0 %v664_v21  ;;  %v3785_v44 = vsel %vm577_vm1, %v578_v29, %v579_v30  ;;  %v912_v45 = vld [vmem:[#allocation11 + $0x9e0] sm:$0xff]  ;;  %v627_v16 = vld [vmem:[#allocation11 + $0xf8] sm:$0xff] }
  0xf1   : > { %v789_v28 = vld [vmem:[#allocation11 + $0x608] sm:$0xff]  ;;  %1140 = vmatpush2.msra.mxu1 %v792_v22  ;;  %1064 = vmatprep.subr.mxu0 %v661_v27  ;;  %v908_v49 = vld [vmem:[#allocation11 + $0x9c0] sm:$0xff]  ;;  %v626_v18 = vld [vmem:[#allocation11 + $0xf0] sm:$0xff] }
  0xf2   : > { %1141 = vmatprep.subr.mxu1 %v789_v28  ;;  %v913_v42 = vld [vmem:[#allocation11 + $0x9e8] sm:$0xff]  ;;  %1065 = vmatpush2.msra.mxu0 %v660_v31  ;;  %v904_v55 = vld [vmem:[#allocation11 + $0x9a0] sm:$0xff]  ;;  %v623_v21 = vld [vmem:[#allocation11 + $0xd8] sm:$0xff] }
  0xf3   : > { %1142 = vmatpush2.msra.mxu1 %v788_v34  ;;  %2609 = vmatmul.mubr.msk.f32.vlgmr.msra.gmra.mxu0 %vm3761_vm2, %v3768_v37  ;;  %v909_v47 = vld [vmem:[#allocation11 + $0x9c8] sm:$0xff]  ;;  %v900_v59 = vld [vmem:[#allocation11 + $0x980] sm:$0xff]  ;;  %v622_v25 = vld [vmem:[#allocation11 + $0xd0] sm:$0xff] }
  0xf4   : > { %1156 = vmatprep.subr.mxu0 %v913_v42  ;;  %1233 = vmatprep.subr.mxu1 %v659_v43  ;;  %v905_v53 = vld [vmem:[#allocation11 + $0x9a8] sm:$0xff]  ;;  %v896_v63 = vld [vmem:[#allocation11 + $0x960] sm:$0xff]  ;;  %v619_v28 = vld [vmem:[#allocation11 + $0xb8] sm:$0xff] }
  0xf5   : > { %2617 = vmatmul.mubr.msk.f32.vlgmr.msra.gmra.mxu1 %vm3775_vm3, %v3785_v44  ;;  %1157 = vmatpush1.msra.mxu0 %v912_v45  ;;  %v901_v57 = vld [vmem:[#allocation11 + $0x988] sm:$0xff]  ;;  %v892_v3 = vld [vmem:[#allocation11 + $0x940] sm:$0xff]  ;;  %v460_v29 = vld [vmem:[%s3697_s22 + $0x18] sm:$0xff] }
  0xf6   : > { %1234 = vmatpush1.msra.mxu1 %v658_v46  ;;  %1158 = vmatprep.subr.mxu0 %v909_v47  ;;  %v897_v61 = vld [vmem:[#allocation11 + $0x968] sm:$0xff]  ;;  %v888_v7 = vld [vmem:[#allocation11 + $0x920] sm:$0xff]  ;;  %v618_v34 = vld [vmem:[#allocation11 + $0xb0] sm:$0xff]  ;;  %v503_v42 = vmul.f32 %v3732_v36, %v460_v29 }
  0xf7   : > { %1235 = vmatprep.subr.mxu1 %v655_v48  ;;  %1159 = vmatpush1.msra.mxu0 %v908_v49  ;;  %v893_v1 = vld [vmem:[#allocation11 + $0x948] sm:$0xff]  ;;  %v884_v11 = vld [vmem:[#allocation11 + $0x900] sm:$0xff]  ;;  %v615_v46 = vld [vmem:[#allocation11 + $0x98] sm:$0xff] }
  0xf8   : > { %1236 = vmatpush1.msra.mxu1 %v654_v50  ;;  %1160 = vmatprep.subr.mxu0 %v905_v53  ;;  %v889_v5 = vld [vmem:[#allocation11 + $0x928] sm:$0xff]  ;;  %v880_v17 = vld [vmem:[#allocation11 + $0x8e0] sm:$0xff]  ;;  %v614_v49 = vld [vmem:[#allocation11 + $0x90] sm:$0xff]  ;;  %v3801_v50 = vadd.f32 %v3738_v41, %v503_v42 }
  0xf9   : > { %1237 = vmatprep.subr.mxu1 %v651_v54  ;;  %1161 = vmatpush1.msra.mxu0 %v904_v55  ;;  %v885_v9 = vld [vmem:[#allocation11 + $0x908] sm:$0xff]  ;;  %v876_v22 = vld [vmem:[#allocation11 + $0x8c0] sm:$0xff]  ;;  %v611_v54 = vld [vmem:[#allocation11 + $0x78] sm:$0xff] }
  0xfa   : > { %1238 = vmatpush1.msra.mxu1 %v650_v56  ;;  %1162 = vmatprep.subr.mxu0 %v901_v57  ;;  %v881_v13 = vld [vmem:[#allocation11 + $0x8e8] sm:$0xff]  ;;  %v872_v31 = vld [vmem:[#allocation11 + $0x8a0] sm:$0xff]  ;;  %v610_v56 = vld [vmem:[#allocation11 + $0x70] sm:$0xff]  ;;  %525 = vst [vmem:[#allocation2 + $0x20] sm:$0xff] %v3801_v50 }
  0xfb   : > { %1239 = vmatprep.subr.mxu1 %v647_v58  ;;  %1163 = vmatpush1.msra.mxu0 %v900_v59  ;;  %v877_v19 = vld [vmem:[#allocation11 + $0x8c8] sm:$0xff]  ;;  %v868_v48 = vld [vmem:[#allocation11 + $0x880] sm:$0xff]  ;;  %v607_v57 = vld [vmem:[#allocation11 + $0x58] sm:$0xff] }
  0xfc   : > { %1240 = vmatpush1.msra.mxu1 %v646_v60  ;;  %1164 = vmatprep.subr.mxu0 %v897_v61  ;;  %v873_v27 = vld [vmem:[#allocation11 + $0x8a8] sm:$0xff]  ;;  %v864_v55 = vld [vmem:[#allocation11 + $0x860] sm:$0xff]  ;;  %v606_v58 = vld [vmem:[#allocation11 + $0x50] sm:$0xff] }
  0xfd   : > { %1241 = vmatprep.subr.mxu1 %v643_v62  ;;  %1165 = vmatpush1.msra.mxu0 %v896_v63  ;;  %v459_v43 = vld [vmem:[%s3697_s22 + $0x10] sm:$0xff]  ;;  %v860_v41 = vld [vmem:[#allocation11 + $0x840] sm:$0xff]  ;;  %v603_v59 = vld [vmem:[#allocation11 + $0x38] sm:$0xff] }
  0xfe   : > { %1242 = vmatpush1.msra.mxu1 %v642_v0  ;;  %1166 = vmatprep.subr.mxu0 %v893_v1  ;;  %v869_v45 = vld [vmem:[#allocation11 + $0x888] sm:$0xff]  ;;  %v502_v47 = vmul.f32 %v3729_v35, %v459_v43  ;;  %v856_v60 = vld [vmem:[#allocation11 + $0x820] sm:$0xff]  ;;  %v602_v61 = vld [vmem:[#allocation11 + $0x30] sm:$0xff] }
  0xff   : > { %1243 = vmatprep.subr.mxu1 %v639_v2  ;;  %1167 = vmatpush1.msra.mxu0 %v892_v3  ;;  %v865_v53 = vld [vmem:[#allocation11 + $0x868] sm:$0xff]  ;;  %v599_v63 = vld [vmem:[#allocation11 + $0x18] sm:$0xff]  ;;  %v852_v0 = vld [vmem:[#allocation11 + $0x800] sm:$0xff] }
 0x100   : > { %1244 = vmatpush1.msra.mxu1 %v638_v4  ;;  %1168 = vmatprep.subr.mxu0 %v889_v5  ;;  %v3804_v36 = vadd.f32 %v3735_v40, %v502_v47  ;;  %v861_v35 = vld [vmem:[#allocation11 + $0x848] sm:$0xff]  ;;  %v598_v1 = vld [vmem:[#allocation11 + $0x10] sm:$0xff]  ;;  %v723_v3 = vld [vmem:[#allocation11 + $0x3f8] sm:$0xff] }
 0x101   : > { %1245 = vmatprep.subr.mxu1 %v635_v6  ;;  %1169 = vmatpush1.msra.mxu0 %v888_v7  ;;  %v857_v40 = vld [vmem:[#allocation11 + $0x828] sm:$0xff]  ;;  %v976_v4 = vld [vmem:[#allocation11 + $0xbe0] sm:$0xff]  ;;  %v722_v5 = vld [vmem:[#allocation11 + $0x3f0] sm:$0xff] }
 0x102   : > { %1246 = vmatpush1.msra.mxu1 %v634_v8  ;;  %1170 = vmatprep.subr.mxu0 %v885_v9  ;;  %524 = vst [vmem:[#allocation2 + $0x18] sm:$0xff] %v3804_v36  ;;  %v853_v62 = vld [vmem:[#allocation11 + $0x808] sm:$0xff]  ;;  %v719_v7 = vld [vmem:[#allocation11 + $0x3d8] sm:$0xff]  ;;  %v972_v8 = vld [vmem:[#allocation11 + $0xbc0] sm:$0xff] }
 0x103   : > { %1247 = vmatprep.subr.mxu1 %v631_v10  ;;  %1171 = vmatpush1.msra.mxu0 %v884_v11  ;;  %v977_v2 = vld [vmem:[#allocation11 + $0xbe8] sm:$0xff]  ;;  %v718_v9 = vld [vmem:[#allocation11 + $0x3d0] sm:$0xff]  ;;  %v715_v11 = vld [vmem:[#allocation11 + $0x3b8] sm:$0xff] }
 0x104   : > { %1248 = vmatpush1.msra.mxu1 %v630_v12  ;;  %1172 = vmatprep.subr.mxu0 %v881_v13  ;;  %v973_v6 = vld [vmem:[#allocation11 + $0xbc8] sm:$0xff]  ;;  %v968_v12 = vld [vmem:[#allocation11 + $0xba0] sm:$0xff]  ;;  %v714_v13 = vld [vmem:[#allocation11 + $0x3b0] sm:$0xff] }
 0x105   : > { %1249 = vmatprep.subr.mxu1 %v627_v16  ;;  %1173 = vmatpush1.msra.mxu0 %v880_v17  ;;  %v969_v10 = vld [vmem:[#allocation11 + $0xba8] sm:$0xff]  ;;  %v711_v17 = vld [vmem:[#allocation11 + $0x398] sm:$0xff] }
 0x106   : > { %1250 = vmatpush1.msra.mxu1 %v626_v18  ;;  %1174 = vmatprep.subr.mxu0 %v877_v19  ;;  %v965_v16 = vld [vmem:[#allocation11 + $0xb88] sm:$0xff]  ;;  %v964_v18 = vld [vmem:[#allocation11 + $0xb80] sm:$0xff]  ;;  %v710_v19 = vld [vmem:[#allocation11 + $0x390] sm:$0xff] }
 0x107   : > { %1251 = vmatprep.subr.mxu1 %v623_v21  ;;  %1175 = vmatpush1.msra.mxu0 %v876_v22  ;;  %v961_v21 = vld [vmem:[#allocation11 + $0xb68] sm:$0xff]  ;;  %v707_v22 = vld [vmem:[#allocation11 + $0x378] sm:$0xff] }
 0x108   : > { %1252 = vmatpush1.msra.mxu1 %v622_v25  ;;  %1176 = vmatprep.subr.mxu0 %v873_v27  ;;  %v960_v25 = vld [vmem:[#allocation11 + $0xb60] sm:$0xff]  ;;  %v706_v27 = vld [vmem:[#allocation11 + $0x370] sm:$0xff]  ;;  %v703_v29 = vld [vmem:[#allocation11 + $0x358] sm:$0xff] }
 0x109   : > { %1253 = vmatprep.subr.mxu1 %v619_v28  ;;  %1177 = vmatpush1.msra.mxu0 %v872_v31  ;;  %v957_v28 = vld [vmem:[#allocation11 + $0xb48] sm:$0xff]  ;;  %v956_v31 = vld [vmem:[#allocation11 + $0xb40] sm:$0xff]  ;;  %v699_v43 = vld [vmem:[#allocation11 + $0x338] sm:$0xff] }
 0x10a   : > { %1254 = vmatpush1.msra.mxu1 %v618_v34  ;;  %1178 = vmatprep.subr.mxu0 %v869_v45  ;;  %v702_v34 = vld [vmem:[#allocation11 + $0x350] sm:$0xff]  ;;  %v953_v42 = vld [vmem:[#allocation11 + $0xb28] sm:$0xff]  ;;  %v952_v45 = vld [vmem:[#allocation11 + $0xb20] sm:$0xff] }
 0x10b   : > { %1255 = vmatprep.subr.mxu1 %v615_v46  ;;  %1179 = vmatpush1.msra.mxu0 %v868_v48  ;;  %v698_v46 = vld [vmem:[#allocation11 + $0x330] sm:$0xff]  ;;  %v949_v47 = vld [vmem:[#allocation11 + $0xb08] sm:$0xff]  ;;  %v695_v48 = vld [vmem:[#allocation11 + $0x318] sm:$0xff] }
 0x10c   : > { %1256 = vmatpush1.msra.mxu1 %v614_v49  ;;  %1180 = vmatprep.subr.mxu0 %v865_v53  ;;  %v948_v49 = vld [vmem:[#allocation11 + $0xb00] sm:$0xff]  ;;  %v694_v53 = vld [vmem:[#allocation11 + $0x310] sm:$0xff] }
 0x10d   : > { %1257 = vmatprep.subr.mxu1 %v611_v54  ;;  %1181 = vmatpush1.msra.mxu0 %v864_v55  ;;  %v945_v54 = vld [vmem:[#allocation11 + $0xae8] sm:$0xff]  ;;  %v691_v55 = vld [vmem:[#allocation11 + $0x2f8] sm:$0xff] }
 0x10e   : > { %1258 = vmatpush1.msra.mxu1 %v610_v56  ;;  %1182 = vmatprep.subr.mxu0 %v861_v35  ;;  %v944_v56 = vld [vmem:[#allocation11 + $0xae0] sm:$0xff]  ;;  %v690_v35 = vld [vmem:[#allocation11 + $0x2f0] sm:$0xff] }
 0x10f   : > { %1259 = vmatprep.subr.mxu1 %v607_v57  ;;  %1183 = vmatpush1.msra.mxu0 %v860_v41  ;;  %v941_v57 = vld [vmem:[#allocation11 + $0xac8] sm:$0xff]  ;;  %v687_v41 = vld [vmem:[#allocation11 + $0x2d8] sm:$0xff] }
 0x110   : > { %1260 = vmatpush1.msra.mxu1 %v606_v58  ;;  %1184 = vmatprep.subr.mxu0 %v857_v40  ;;  %v463_v58 = vadd.s32 8, %v3719_v14  ;;  %v940_v40 = vld [vmem:[#allocation11 + $0xac0] sm:$0xff]  ;;  %v1828_v39 = vld [vmem:[#allocation17 + $0x560] sm:$0xff] }
 0x111   : > { %1261 = vmatprep.subr.mxu1 %v603_v59  ;;  %1185 = vmatpush1.msra.mxu0 %v856_v60  ;;  %v686_v59 = vld [vmem:[#allocation11 + $0x2d0] sm:$0xff]  ;;  %v531_v60 = vld [vmem:[#allocation2 + $0x20] sm:$0x3f] }
 0x112   : > { %1262 = vmatpush1.msra.mxu1 %v602_v61  ;;  %1186 = vmatprep.subr.mxu0 %v853_v62  ;;  %v937_v61 = vld [vmem:[#allocation11 + $0xaa8] sm:$0xff]  ;;  %v683_v62 = vld [vmem:[#allocation11 + $0x2b8] sm:$0xff] }
 0x113   : > { %1263 = vmatprep.subr.mxu1 %v599_v63  ;;  %1187 = vmatpush1.msra.mxu0 %v852_v0  ;;  %v530_v63 = vld [vmem:[#allocation2 + $0x18] sm:$0x3f]  ;;  %v936_v0 = vld [vmem:[#allocation11 + $0xaa0] sm:$0xff] }
 0x114   : > { %1264 = vmatpush1.msra.mxu1 %v598_v1  ;;  %1188 = vmatprep.subr.mxu0 %v977_v2  ;;  %v682_v1 = vld [vmem:[#allocation11 + $0x2b0] sm:$0xff]  ;;  %v933_v2 = vld [vmem:[#allocation11 + $0xa88] sm:$0xff] }
 0x115   : > { %1265 = vmatprep.subr.mxu1 %v723_v3  ;;  %1189 = vmatpush2.msra.mxu0 %v976_v4  ;;  %v679_v3 = vld [vmem:[#allocation11 + $0x298] sm:$0xff]  ;;  %v475_v4 = vand.u32 7, %v463_v58 }
 0x116   : > { %1266 = vmatpush2.msra.mxu1 %v722_v5  ;;  %1190 = vmatprep.subr.mxu0 %v973_v6  ;;  %v553_v5 = vrot.slane %v531_v60, 6  ;;  %v566_v6 = vld [vmem:[#allocation2 + $0x20] sm:$0x7f] }
 0x117   : > { %1267 = vmatprep.subr.mxu1 %v719_v7  ;;  %1191 = vmatpush2.msra.mxu0 %v972_v8  ;;  %v932_v7 = vld [vmem:[#allocation11 + $0xa80] sm:$0xff]  ;;  %v678_v8 = vld [vmem:[#allocation11 + $0x290] sm:$0xff]  ;;  %vm3814_vm4 = vcmp.ge.s32.totalorder %v475_v4, 2  ;;  %vm3831_vm5 = vcmp.ge.s32.totalorder %v475_v4, 1  ;;  %v775_v58 = vld [vmem:[#allocation11 + $0x598] sm:$0xff] }
 0x118   : > { %1268 = vmatpush2.msra.mxu1 %v718_v9  ;;  %1192 = vmatprep.subr.mxu0 %v969_v10  ;;  %v551_v9 = vrot.slane %v530_v63, 6  ;;  %v565_v10 = vld [vmem:[#allocation2 + $0x18] sm:$0x7f] }
 0x119   : > { %1269 = vmatprep.subr.mxu1 %v715_v11  ;;  %1193 = vmatpush2.msra.mxu0 %v968_v12  ;;  %v929_v11 = vld [vmem:[#allocation11 + $0xa68] sm:$0xff]  ;;  %v675_v12 = vld [vmem:[#allocation11 + $0x278] sm:$0xff]  ;;  %v898_v63 = vld [vmem:[#allocation11 + $0x970] sm:$0xff] }
 0x11a   : > { %1270 = vmatpush2.msra.mxu1 %v714_v13  ;;  %1194 = vmatprep.subr.mxu0 %v965_v16  ;;  %v928_v13 = vld [vmem:[#allocation11 + $0xa60] sm:$0xff]  ;;  %v674_v16 = vld [vmem:[#allocation11 + $0x270] sm:$0xff]  ;;  %v771_v60 = vld [vmem:[#allocation11 + $0x578] sm:$0xff] }
 0x11b   : > { %1271 = vmatprep.subr.mxu1 %v711_v17  ;;  %1195 = vmatpush2.msra.mxu0 %v964_v18  ;;  %v586_v17 = vrot.slane %v566_v6, 7  ;;  %v3812_v18 = vsel %vm544_vm0, %v549_v15, %v553_v5  ;;  %v763_v4 = vld [vmem:[#allocation11 + $0x538] sm:$0xff]  ;;  %v762_v6 = vld [vmem:[#allocation11 + $0x530] sm:$0xff] }
 0x11c   : > { %1272 = vmatpush2.msra.mxu1 %v710_v19  ;;  %1196 = vmatprep.subr.mxu0 %v961_v21  ;;  %v925_v21 = vld [vmem:[#allocation11 + $0xa48] sm:$0xff]  ;;  %v891_v5 = vld [vmem:[#allocation11 + $0x938] sm:$0xff] }
 0x11d   : > { %1273 = vmatprep.subr.mxu1 %v707_v22  ;;  %1197 = vmatpush2.msra.mxu0 %v960_v25  ;;  %v584_v22 = vrot.slane %v565_v10, 7  ;;  %v671_v25 = vld [vmem:[#allocation11 + $0x258] sm:$0xff]  ;;  %v3829_v15 = vsel %vm577_vm1, %v582_v26, %v586_v17  ;;  %v920_v26 = vld [vmem:[#allocation11 + $0xa20] sm:$0xff]  ;;  %v758_v10 = vld [vmem:[#allocation11 + $0x510] sm:$0xff] }
 0x11e   : > { %1274 = vmatpush2.msra.mxu1 %v706_v27  ;;  %1198 = vmatprep.subr.mxu0 %v957_v28  ;;  %v3821_v27 = vsel %vm544_vm0, %v546_v20, %v551_v9  ;;  %v924_v28 = vld [vmem:[#allocation11 + $0xa40] sm:$0xff]  ;;  %v921_v20 = vld [vmem:[#allocation11 + $0xa28] sm:$0xff]  ;;  %v887_v9 = vld [vmem:[#allocation11 + $0x918] sm:$0xff] }
 0x11f   : > { %1275 = vmatprep.subr.mxu1 %v703_v29  ;;  %1199 = vmatpush2.msra.mxu0 %v956_v31  ;;  %v670_v29 = vld [vmem:[#allocation11 + $0x250] sm:$0xff] }
 0x120   : > { %1276 = vmatpush2.msra.mxu1 %v702_v34  ;;  %1200 = vmatprep.subr.mxu0 %v953_v42  ;;  %v667_v34 = vld [vmem:[#allocation11 + $0x238] sm:$0xff]  ;;  %v3841_v42 = vsel %vm577_vm1, %v579_v30, %v584_v22  ;;  %v662_v30 = vld [vmem:[#allocation11 + $0x210] sm:$0xff] }
 0x121   : > { %1277 = vmatprep.subr.mxu1 %v699_v43  ;;  %1201 = vmatpush2.msra.mxu0 %v952_v45  ;;  %v666_v43 = vld [vmem:[#allocation11 + $0x230] sm:$0xff]  ;;  %v917_v45 = vld [vmem:[#allocation11 + $0xa08] sm:$0xff]  ;;  %v879_v22 = vld [vmem:[#allocation11 + $0x8d8] sm:$0xff] }
 0x122   : > { %1278 = vmatpush2.msra.mxu1 %v698_v46  ;;  %1202 = vmatprep.subr.mxu0 %v949_v47  ;;  %v663_v46 = vld [vmem:[#allocation11 + $0x218] sm:$0xff]  ;;  %v916_v47 = vld [vmem:[#allocation11 + $0xa00] sm:$0xff]  ;;  %v882_v17 = vld [vmem:[#allocation11 + $0x8f0] sm:$0xff] }
 0x123   : > { %1279 = vmatprep.subr.mxu1 %v695_v48  ;;  %1203 = vmatpush2.msra.mxu0 %v948_v49  ;;  %v787_v48 = vld [vmem:[#allocation11 + $0x5f8] sm:$0xff]  ;;  %v1824_v31 = vld [vmem:[#allocation17 + $0x540] sm:$0xff] }
 0x124   : > { %1280 = vmatpush2.msra.mxu1 %v694_v53  ;;  %1204 = vmatprep.subr.mxu0 %v945_v54  ;;  %v915_v49 = vld [vmem:[#allocation11 + $0x9f8] sm:$0xff]  ;;  %v786_v53 = vld [vmem:[#allocation11 + $0x5f0] sm:$0xff] }
 0x125   : > { %1281 = vmatprep.subr.mxu1 %v691_v55  ;;  %1205 = vmatpush2.msra.mxu0 %v944_v56  ;;  %v914_v54 = vld [vmem:[#allocation11 + $0x9f0] sm:$0xff]  ;;  %v783_v55 = vld [vmem:[#allocation11 + $0x5d8] sm:$0xff] }
 0x126   : > { %1282 = vmatpush2.msra.mxu1 %v690_v35  ;;  %1206 = vmatprep.subr.mxu0 %v941_v57  ;;  %v911_v56 = vld [vmem:[#allocation11 + $0x9d8] sm:$0xff]  ;;  %v782_v35 = vld [vmem:[#allocation11 + $0x5d0] sm:$0xff] }
 0x127   : > { %1283 = vmatprep.subr.mxu1 %v687_v41  ;;  %1207 = vmatpush2.msra.mxu0 %v940_v40  ;;  %v907_v57 = vld [vmem:[#allocation11 + $0x9b8] sm:$0xff]  ;;  %v906_v41 = vld [vmem:[#allocation11 + $0x9b0] sm:$0xff] }
 0x128   : > { %1284 = vmatpush2.msra.mxu1 %v686_v59  ;;  %1208 = vmatprep.subr.mxu0 %v937_v61  ;;  %v903_v40 = vld [vmem:[#allocation11 + $0x998] sm:$0xff]  ;;  %v902_v59 = vld [vmem:[#allocation11 + $0x990] sm:$0xff] }
 0x129   : > { %1285 = vmatprep.subr.mxu1 %v683_v62  ;;  %1209 = vmatpush2.msra.mxu0 %v936_v0  ;;  %v899_v61 = vld [vmem:[#allocation11 + $0x978] sm:$0xff]  ;;  %v770_v62 = vld [vmem:[#allocation11 + $0x570] sm:$0xff] }
 0x12a   : > { %1286 = vmatpush2.msra.mxu1 %v682_v1  ;;  %1210 = vmatprep.subr.mxu0 %v933_v2  ;;  %v767_v0 = vld [vmem:[#allocation11 + $0x558] sm:$0xff]  ;;  %v766_v2 = vld [vmem:[#allocation11 + $0x550] sm:$0xff] }
 0x12b   : > { %1287 = vmatprep.subr.mxu1 %v679_v3  ;;  %1211 = vmatpush2.msra.mxu0 %v932_v7  ;;  %v895_v1 = vld [vmem:[#allocation11 + $0x958] sm:$0xff]  ;;  %v894_v3 = vld [vmem:[#allocation11 + $0x950] sm:$0xff] }
 0x12c   : > { %1288 = vmatpush2.msra.mxu1 %v678_v8  ;;  %1212 = vmatprep.subr.mxu0 %v929_v11  ;;  %v890_v7 = vld [vmem:[#allocation11 + $0x930] sm:$0xff]  ;;  %v759_v8 = vld [vmem:[#allocation11 + $0x518] sm:$0xff] }
 0x12d   : > { %1289 = vmatprep.subr.mxu1 %v675_v12  ;;  %1213 = vmatpush2.msra.mxu0 %v928_v13  ;;  %v886_v11 = vld [vmem:[#allocation11 + $0x910] sm:$0xff]  ;;  %v755_v12 = vld [vmem:[#allocation11 + $0x4f8] sm:$0xff] }
 0x12e   : > { %1290 = vmatpush2.msra.mxu1 %v674_v16  ;;  %2611 = vmatprep.mubr.msk.f32.mxu0 %vm3814_vm4, %v3812_v18  ;;  %v883_v13 = vld [vmem:[#allocation11 + $0x8f8] sm:$0xff]  ;;  %v754_v16 = vld [vmem:[#allocation11 + $0x4f0] sm:$0xff] }
 0x12f   : > { %1214 = vmatprep.subr.mxu0 %v925_v21  ;;  %1291 = vmatprep.subr.mxu1 %v671_v25  ;;  %v751_v21 = vld [vmem:[#allocation11 + $0x4d8] sm:$0xff]  ;;  %v750_v25 = vld [vmem:[#allocation11 + $0x4d0] sm:$0xff] }
 0x130   : > { %2613 = vmatmul.mubr.msk.f32.gmra.mxu0 %vm3814_vm4, %v3821_v27  ;;  %1292 = vmatpush2.msra.mxu1 %v670_v29  ;;  %v747_v29 = vld [vmem:[#allocation11 + $0x4b8] sm:$0xff] }
 0x131   : > { %1215 = vmatpush2.msra.mxu0 %v924_v28  ;;  %2619 = vmatprep.mubr.msk.f32.mxu1 %vm3831_vm5, %v3829_v15  ;;  %v878_v28 = vld [vmem:[#allocation11 + $0x8d0] sm:$0xff] }
 0x132   : > { %1216 = vmatprep.subr.mxu0 %v921_v20  ;;  %1293 = vmatprep.subr.mxu1 %v667_v34  ;;  %v875_v20 = vld [vmem:[#allocation11 + $0x8b8] sm:$0xff]  ;;  %v746_v34 = vld [vmem:[#allocation11 + $0x4b0] sm:$0xff] }
 0x133   : > { %2621 = vmatmul.mubr.msk.f32.gmra.mxu1 %vm3831_vm5, %v3841_v42  ;;  %1217 = vmatpush2.msra.mxu0 %v920_v26  ;;  %v874_v26 = vld [vmem:[#allocation11 + $0x8b0] sm:$0xff] }
 0x134   : > { %1294 = vmatpush2.msra.mxu1 %v666_v43  ;;  %1218 = vmatprep.subr.mxu0 %v917_v45  ;;  %v743_v43 = vld [vmem:[#allocation11 + $0x498] sm:$0xff] }
 0x135   : > { %1295 = vmatprep.subr.mxu1 %v663_v46  ;;  %1219 = vmatpush2.msra.mxu0 %v916_v47  ;;  %v871_v45 = vld [vmem:[#allocation11 + $0x898] sm:$0xff]  ;;  %v742_v46 = vld [vmem:[#allocation11 + $0x490] sm:$0xff] }
 0x136   : > { %1220 = vmatprep.mubr.f32.mxu0 %v3744_v51  ;;  %1296 = vmatpush2.msra.mxu1 %v662_v30  ;;  %v910_v51 = vld [vmem:[#allocation11 + $0x9d0] sm:$0xff]  ;;  %v739_v30 = vld [vmem:[#allocation11 + $0x478] sm:$0xff] }
 0x137   : > { %1221 = vmatmul.mubr.f32.vlgmr.msra.gmra.mxu0 %v3747_v52  ;;  %2623 = vmatprep.mubr.msk.f32.mxu1 %vm3761_vm2, %v3759_v32  ;;  %v779_v52 = vld [vmem:[#allocation11 + $0x5b8] sm:$0xff]  ;;  %v778_v32 = vld [vmem:[#allocation11 + $0x5b0] sm:$0xff] }
 0x138   : > { %1310 = vmatprep.subr.mxu0 %v787_v48  ;;  %1387 = vmatprep.subr.mxu1 %v915_v49  ;;  %v870_v47 = vld [vmem:[#allocation11 + $0x890] sm:$0xff]  ;;  %v867_v48 = vld [vmem:[#allocation11 + $0x878] sm:$0xff] }
 0x139   : > { %2625 = vmatmul.mubr.msk.f32.vlgmr.msra.gmra.mxu1 %vm3761_vm2, %v3768_v37  ;;  %1311 = vmatpush1.msra.mxu0 %v786_v53  ;;  %v774_v37 = vld [vmem:[#allocation11 + $0x590] sm:$0xff] }
 0x13a   : > { %1388 = vmatpush1.msra.mxu1 %v914_v54  ;;  %1312 = vmatprep.subr.mxu0 %v783_v55  ;;  %v738_v49 = vld [vmem:[#allocation11 + $0x470] sm:$0xff]  ;;  %v735_v54 = vld [vmem:[#allocation11 + $0x458] sm:$0xff] }
 0x13b   : > { %1389 = vmatprep.subr.mxu1 %v911_v56  ;;  %1226 = vmatprep.mubr.f32.mxu0 %v3801_v50  ;;  %v866_v53 = vld [vmem:[#allocation11 + $0x870] sm:$0xff]  ;;  %v863_v55 = vld [vmem:[#allocation11 + $0x858] sm:$0xff] }
 0x13c   : > { %1313 = vmatpush1.msra.mxu0 %v782_v35  ;;  %1390 = vmatpush1.msra.mxu1 %v910_v51  ;;  %v734_v56 = vld [vmem:[#allocation11 + $0x450] sm:$0xff]  ;;  %v731_v51 = vld [vmem:[#allocation11 + $0x438] sm:$0xff] }
 0x13d   : > { %1227 = vmatmul.mubr.f32.gmra.mxu0 %v3804_v36  ;;  %1314 = vmatprep.subr.mxu0 %v779_v52  ;;  %v862_v35 = vld [vmem:[#allocation11 + $0x850] sm:$0xff]  ;;  %v859_v52 = vld [vmem:[#allocation11 + $0x838] sm:$0xff] }
 0x13e   : > { %1391 = vmatprep.subr.mxu1 %v907_v57  ;;  %1315 = vmatpush1.msra.mxu0 %v778_v32  ;;  %v730_v57 = vld [vmem:[#allocation11 + $0x430] sm:$0xff] }
 0x13f   : > { %1392 = vmatpush1.msra.mxu1 %v906_v41  ;;  %1316 = vmatprep.subr.mxu0 %v775_v58  ;;  %v858_v32 = vld [vmem:[#allocation11 + $0x830] sm:$0xff]  ;;  %v727_v41 = vld [vmem:[#allocation11 + $0x418] sm:$0xff] }
 0x140   : > { %1393 = vmatprep.subr.mxu1 %v903_v40  ;;  %1317 = vmatpush1.msra.mxu0 %v774_v37  ;;  %v855_v58 = vld [vmem:[#allocation11 + $0x818] sm:$0xff]  ;;  %v726_v40 = vld [vmem:[#allocation11 + $0x410] sm:$0xff] }
 0x141   : > { %1394 = vmatpush1.msra.mxu1 %v902_v59  ;;  %1318 = vmatprep.subr.mxu0 %v771_v60  ;;  %v854_v37 = vld [vmem:[#allocation11 + $0x810] sm:$0xff]  ;;  %v851_v59 = vld [vmem:[#allocation11 + $0x7f8] sm:$0xff] }
 0x142   : > { %1395 = vmatprep.subr.mxu1 %v899_v61  ;;  %1319 = vmatpush1.msra.mxu0 %v770_v62  ;;  %v979_v60 = vld [vmem:[#allocation11 + $0xbf8] sm:$0xff]  ;;  %v850_v61 = vld [vmem:[#allocation11 + $0x7f0] sm:$0xff] }
 0x143   : > { %1396 = vmatpush1.msra.mxu1 %v898_v63  ;;  %1320 = vmatprep.subr.mxu0 %v767_v0  ;;  %v978_v62 = vld [vmem:[#allocation11 + $0xbf0] sm:$0xff]  ;;  %v847_v63 = vld [vmem:[#allocation11 + $0x7d8] sm:$0xff] }
 0x144   : > { %1397 = vmatprep.subr.mxu1 %v895_v1  ;;  %1321 = vmatpush1.msra.mxu0 %v766_v2  ;;  %v975_v0 = vld [vmem:[#allocation11 + $0xbd8] sm:$0xff]  ;;  %v846_v1 = vld [vmem:[#allocation11 + $0x7d0] sm:$0xff] }
 0x145   : > { %1398 = vmatpush1.msra.mxu1 %v894_v3  ;;  %1322 = vmatprep.subr.mxu0 %v763_v4  ;;  %v974_v2 = vld [vmem:[#allocation11 + $0xbd0] sm:$0xff]  ;;  %v843_v3 = vld [vmem:[#allocation11 + $0x7b8] sm:$0xff] }
 0x146   : > { %1399 = vmatprep.subr.mxu1 %v891_v5  ;;  %1323 = vmatpush1.msra.mxu0 %v762_v6  ;;  %v971_v4 = vld [vmem:[#allocation11 + $0xbb8] sm:$0xff]  ;;  %v842_v5 = vld [vmem:[#allocation11 + $0x7b0] sm:$0xff] }
 0x147   : > { %1400 = vmatpush1.msra.mxu1 %v890_v7  ;;  %1324 = vmatprep.subr.mxu0 %v759_v8  ;;  %v970_v6 = vld [vmem:[#allocation11 + $0xbb0] sm:$0xff]  ;;  %v839_v7 = vld [vmem:[#allocation11 + $0x798] sm:$0xff] }
 0x148   : > { %1401 = vmatprep.subr.mxu1 %v887_v9  ;;  %1325 = vmatpush1.msra.mxu0 %v758_v10  ;;  %v967_v8 = vld [vmem:[#allocation11 + $0xb98] sm:$0xff]  ;;  %v838_v9 = vld [vmem:[#allocation11 + $0x790] sm:$0xff] }
 0x149   : > { %1402 = vmatpush1.msra.mxu1 %v886_v11  ;;  %1326 = vmatprep.subr.mxu0 %v755_v12  ;;  %v966_v10 = vld [vmem:[#allocation11 + $0xb90] sm:$0xff]  ;;  %v835_v11 = vld [vmem:[#allocation11 + $0x778] sm:$0xff] }
 0x14a   : > { %1403 = vmatprep.subr.mxu1 %v883_v13  ;;  %1327 = vmatpush1.msra.mxu0 %v754_v16  ;;  %v963_v12 = vld [vmem:[#allocation11 + $0xb78] sm:$0xff]  ;;  %v834_v13 = vld [vmem:[#allocation11 + $0x770] sm:$0xff] }
 0x14b   : > { %1404 = vmatpush1.msra.mxu1 %v882_v17  ;;  %1328 = vmatprep.subr.mxu0 %v751_v21  ;;  %v962_v16 = vld [vmem:[#allocation11 + $0xb70] sm:$0xff]  ;;  %v831_v17 = vld [vmem:[#allocation11 + $0x758] sm:$0xff] }
 0x14c   : > { %1405 = vmatprep.subr.mxu1 %v879_v22  ;;  %1329 = vmatpush1.msra.mxu0 %v750_v25  ;;  %v959_v21 = vld [vmem:[#allocation11 + $0xb58] sm:$0xff]  ;;  %v830_v22 = vld [vmem:[#allocation11 + $0x750] sm:$0xff] }
 0x14d   : > { %1406 = vmatpush1.msra.mxu1 %v878_v28  ;;  %1330 = vmatprep.subr.mxu0 %v747_v29  ;;  %v958_v25 = vld [vmem:[#allocation11 + $0xb50] sm:$0xff]  ;;  %v827_v28 = vld [vmem:[#allocation11 + $0x738] sm:$0xff] }
 0x14e   : > { %1407 = vmatprep.subr.mxu1 %v875_v20  ;;  %1331 = vmatpush1.msra.mxu0 %v746_v34  ;;  %v955_v29 = vld [vmem:[#allocation11 + $0xb38] sm:$0xff]  ;;  %v826_v20 = vld [vmem:[#allocation11 + $0x730] sm:$0xff] }
 0x14f   : > { %1408 = vmatpush1.msra.mxu1 %v874_v26  ;;  %1332 = vmatprep.subr.mxu0 %v743_v43  ;;  %v954_v34 = vld [vmem:[#allocation11 + $0xb30] sm:$0xff]  ;;  %v823_v26 = vld [vmem:[#allocation11 + $0x718] sm:$0xff] }
 0x150   : > { %1409 = vmatprep.subr.mxu1 %v871_v45  ;;  %1333 = vmatpush1.msra.mxu0 %v742_v46  ;;  %v951_v43 = vld [vmem:[#allocation11 + $0xb18] sm:$0xff]  ;;  %v822_v45 = vld [vmem:[#allocation11 + $0x710] sm:$0xff] }
 0x151   : > { %1410 = vmatpush1.msra.mxu1 %v870_v47  ;;  %1334 = vmatprep.subr.mxu0 %v739_v30  ;;  %v950_v46 = vld [vmem:[#allocation11 + $0xb10] sm:$0xff]  ;;  %v819_v47 = vld [vmem:[#allocation11 + $0x6f8] sm:$0xff] }
 0x152   : > { %1411 = vmatprep.subr.mxu1 %v867_v48  ;;  %1335 = vmatpush1.msra.mxu0 %v738_v49  ;;  %v947_v30 = vld [vmem:[#allocation11 + $0xaf8] sm:$0xff]  ;;  %v818_v48 = vld [vmem:[#allocation11 + $0x6f0] sm:$0xff] }
 0x153   : > { %1412 = vmatpush1.msra.mxu1 %v866_v53  ;;  %1336 = vmatprep.subr.mxu0 %v735_v54  ;;  %v946_v49 = vld [vmem:[#allocation11 + $0xaf0] sm:$0xff]  ;;  %v815_v53 = vld [vmem:[#allocation11 + $0x6d8] sm:$0xff] }
 0x154   : > { %1413 = vmatprep.subr.mxu1 %v863_v55  ;;  %1337 = vmatpush1.msra.mxu0 %v734_v56  ;;  %v943_v54 = vld [vmem:[#allocation11 + $0xad8] sm:$0xff]  ;;  %v814_v55 = vld [vmem:[#allocation11 + $0x6d0] sm:$0xff] }
 0x155   : > { %1414 = vmatpush1.msra.mxu1 %v862_v35  ;;  %1338 = vmatprep.subr.mxu0 %v731_v51  ;;  %v942_v56 = vld [vmem:[#allocation11 + $0xad0] sm:$0xff]  ;;  %v811_v35 = vld [vmem:[#allocation11 + $0x6b8] sm:$0xff] }
 0x156   : > { %1415 = vmatprep.subr.mxu1 %v859_v52  ;;  %1339 = vmatpush1.msra.mxu0 %v730_v57  ;;  %v939_v51 = vld [vmem:[#allocation11 + $0xab8] sm:$0xff]  ;;  %v810_v52 = vld [vmem:[#allocation11 + $0x6b0] sm:$0xff] }
 0x157   : > { %1416 = vmatpush1.msra.mxu1 %v858_v32  ;;  %1340 = vmatprep.subr.mxu0 %v727_v41  ;;  %v938_v57 = vld [vmem:[#allocation11 + $0xab0] sm:$0xff]  ;;  %v807_v32 = vld [vmem:[#allocation11 + $0x698] sm:$0xff] }
 0x158   : > { %1417 = vmatprep.subr.mxu1 %v855_v58  ;;  %1341 = vmatpush1.msra.mxu0 %v726_v40  ;;  %v935_v41 = vld [vmem:[#allocation11 + $0xa98] sm:$0xff]  ;;  %v806_v58 = vld [vmem:[#allocation11 + $0x690] sm:$0xff] }
 0x159   : > { %1418 = vmatpush1.msra.mxu1 %v854_v37  ;;  %1342 = vmatprep.subr.mxu0 %v851_v59  ;;  %v934_v40 = vld [vmem:[#allocation11 + $0xa90] sm:$0xff]  ;;  %v803_v37 = vld [vmem:[#allocation11 + $0x678] sm:$0xff] }
 0x15a   : > { %1419 = vmatprep.subr.mxu1 %v979_v60  ;;  %1343 = vmatpush2.msra.mxu0 %v850_v61  ;;  %v931_v59 = vld [vmem:[#allocation11 + $0xa78] sm:$0xff]  ;;  %v802_v60 = vld [vmem:[#allocation11 + $0x670] sm:$0xff] }
 0x15b   : > { %1420 = vmatpush2.msra.mxu1 %v978_v62  ;;  %1344 = vmatprep.subr.mxu0 %v847_v63  ;;  %v930_v61 = vld [vmem:[#allocation11 + $0xa70] sm:$0xff]  ;;  %v799_v62 = vld [vmem:[#allocation11 + $0x658] sm:$0xff] }
 0x15c   : > { %1421 = vmatprep.subr.mxu1 %v975_v0  ;;  %1345 = vmatpush2.msra.mxu0 %v846_v1  ;;  %v927_v63 = vld [vmem:[#allocation11 + $0xa58] sm:$0xff]  ;;  %v798_v0 = vld [vmem:[#allocation11 + $0x650] sm:$0xff] }
 0x15d   : > { %1422 = vmatpush2.msra.mxu1 %v974_v2  ;;  %1346 = vmatprep.subr.mxu0 %v843_v3  ;;  %v926_v1 = vld [vmem:[#allocation11 + $0xa50] sm:$0xff]  ;;  %v795_v2 = vld [vmem:[#allocation11 + $0x638] sm:$0xff] }
 0x15e   : > { %1423 = vmatprep.subr.mxu1 %v971_v4  ;;  %1347 = vmatpush2.msra.mxu0 %v842_v5  ;;  %v923_v3 = vld [vmem:[#allocation11 + $0xa38] sm:$0xff]  ;;  %v794_v4 = vld [vmem:[#allocation11 + $0x630] sm:$0xff] }
 0x15f   : > { %1424 = vmatpush2.msra.mxu1 %v970_v6  ;;  %1348 = vmatprep.subr.mxu0 %v839_v7  ;;  %v922_v5 = vld [vmem:[#allocation11 + $0xa30] sm:$0xff]  ;;  %v791_v6 = vld [vmem:[#allocation11 + $0x618] sm:$0xff] }
 0x160   : > { %1425 = vmatprep.subr.mxu1 %v967_v8  ;;  %1349 = vmatpush2.msra.mxu0 %v838_v9  ;;  %v919_v7 = vld [vmem:[#allocation11 + $0xa18] sm:$0xff]  ;;  %v790_v8 = vld [vmem:[#allocation11 + $0x610] sm:$0xff] }
 0x161   : > { %1426 = vmatpush2.msra.mxu1 %v966_v10  ;;  %1350 = vmatprep.subr.mxu0 %v835_v11  ;;  %v918_v9 = vld [vmem:[#allocation11 + $0xa10] sm:$0xff]  ;;  %v1687_v10 = vld [vmem:[#allocation17 + $0xf8] sm:$0xff] }
 0x162   : > { %1427 = vmatprep.subr.mxu1 %v963_v12  ;;  %1351 = vmatpush2.msra.mxu0 %v834_v13  ;;  %v1671_v11 = vld [vmem:[#allocation17 + $0x78] sm:$0xff]  ;;  %v1686_v12 = vld [vmem:[#allocation17 + $0xf0] sm:$0xff]  ;;  %v1669_v13 = vld [vmem:[#allocation17 + $0x68] sm:$0xff] }
 0x163   : > { %1428 = vmatpush2.msra.mxu1 %v962_v16  ;;  %1352 = vmatprep.subr.mxu0 %v831_v17  ;;  %v1684_v16 = vld [vmem:[#allocation17 + $0xe0] sm:$0xff]  ;;  %v4057_v19 = vld [vmem:[#allocation17 + $0x628] sm:$0xff] }
 0x164   : > { %1429 = vmatprep.subr.mxu1 %v959_v21  ;;  %1353 = vmatpush2.msra.mxu0 %v830_v22  ;;  %v1668_v17 = vld [vmem:[#allocation17 + $0x60] sm:$0xff]  ;;  %v1682_v21 = vld [vmem:[#allocation17 + $0xd0] sm:$0xff] }
 0x165   : > { %1430 = vmatpush2.msra.mxu1 %v958_v25  ;;  %1354 = vmatprep.subr.mxu0 %v827_v28  ;;  %v1666_v22 = vld [vmem:[#allocation17 + $0x50] sm:$0xff]  ;;  %v1681_v25 = vld [vmem:[#allocation17 + $0xc8] sm:$0xff]  ;;  %v1664_v28 = vld [vmem:[#allocation17 + $0x40] sm:$0xff] }
 0x166   : > { %1431 = vmatprep.subr.mxu1 %v955_v29  ;;  %1355 = vmatpush2.msra.mxu0 %v826_v20  ;;  %v1679_v29 = vld [vmem:[#allocation17 + $0xb8] sm:$0xff] }
 0x167   : > { %1432 = vmatpush2.msra.mxu1 %v954_v34  ;;  %1356 = vmatprep.subr.mxu0 %v823_v26  ;;  %v1663_v20 = vld [vmem:[#allocation17 + $0x38] sm:$0xff]  ;;  %v1678_v34 = vld [vmem:[#allocation17 + $0xb0] sm:$0xff] }
 0x168   : > { %1433 = vmatprep.subr.mxu1 %v951_v43  ;;  %1357 = vmatpush2.msra.mxu0 %v822_v45  ;;  %v1662_v26 = vld [vmem:[#allocation17 + $0x30] sm:$0xff]  ;;  %v1677_v43 = vld [vmem:[#allocation17 + $0xa8] sm:$0xff] }
 0x169   : > { %1434 = vmatpush2.msra.mxu1 %v950_v46  ;;  %1358 = vmatprep.subr.mxu0 %v819_v47  ;;  %v1661_v45 = vld [vmem:[#allocation17 + $0x28] sm:$0xff]  ;;  %v1676_v46 = vld [vmem:[#allocation17 + $0xa0] sm:$0xff] }
 0x16a   : > { %1435 = vmatprep.subr.mxu1 %v947_v30  ;;  %1359 = vmatpush2.msra.mxu0 %v818_v48  ;;  %v1660_v47 = vld [vmem:[#allocation17 + $0x20] sm:$0xff]  ;;  %v1675_v30 = vld [vmem:[#allocation17 + $0x98] sm:$0xff] }
 0x16b   : > { %1436 = vmatpush2.msra.mxu1 %v946_v49  ;;  %1360 = vmatprep.subr.mxu0 %v815_v53  ;;  %v1659_v48 = vld [vmem:[#allocation17 + $0x18] sm:$0xff]  ;;  %v1674_v49 = vld [vmem:[#allocation17 + $0x90] sm:$0xff] }
 0x16c   : > { %1437 = vmatprep.subr.mxu1 %v943_v54  ;;  %1361 = vmatpush2.msra.mxu0 %v814_v55  ;;  %v1658_v53 = vld [vmem:[#allocation17 + $0x10] sm:$0xff]  ;;  %v1673_v54 = vld [vmem:[#allocation17 + $0x88] sm:$0xff] }
 0x16d   : > { %1438 = vmatpush2.msra.mxu1 %v942_v56  ;;  %1362 = vmatprep.subr.mxu0 %v811_v35  ;;  %v1657_v55 = vld [vmem:[#allocation17 + $0x8] sm:$0xff]  ;;  %v1672_v56 = vld [vmem:[#allocation17 + $0x80] sm:$0xff] }
 0x16e   : > { %1439 = vmatprep.subr.mxu1 %v939_v51  ;;  %1363 = vmatpush2.msra.mxu0 %v810_v52  ;;  %v1656_v35 = vld [vmem:[#allocation17] sm:$0xff]  ;;  %v1751_v51 = vld [vmem:[#allocation17 + $0x2f8] sm:$0xff] }
 0x16f   : > { %1440 = vmatpush2.msra.mxu1 %v938_v57  ;;  %1364 = vmatprep.subr.mxu0 %v807_v32  ;;  %v1719_v52 = vld [vmem:[#allocation17 + $0x1f8] sm:$0xff]  ;;  %v1718_v32 = vld [vmem:[#allocation17 + $0x1f0] sm:$0xff] }
 0x170   : > { %1441 = vmatprep.subr.mxu1 %v935_v41  ;;  %1365 = vmatpush2.msra.mxu0 %v806_v58  ;;  %v1703_v57 = vld [vmem:[#allocation17 + $0x178] sm:$0xff]  ;;  %v1702_v41 = vld [vmem:[#allocation17 + $0x170] sm:$0xff]  ;;  %v1717_v58 = vld [vmem:[#allocation17 + $0x1e8] sm:$0xff] }
 0x171   : > { %1442 = vmatpush2.msra.mxu1 %v934_v40  ;;  %1366 = vmatprep.subr.mxu0 %v803_v37  ;;  %v1701_v40 = vld [vmem:[#allocation17 + $0x168] sm:$0xff]  ;;  %v1716_v37 = vld [vmem:[#allocation17 + $0x1e0] sm:$0xff] }
 0x172   : > { %1443 = vmatprep.subr.mxu1 %v931_v59  ;;  %1367 = vmatpush2.msra.mxu0 %v802_v60  ;;  %v1700_v59 = vld [vmem:[#allocation17 + $0x160] sm:$0xff]  ;;  %v1715_v60 = vld [vmem:[#allocation17 + $0x1d8] sm:$0xff] }
 0x173   : > { %1444 = vmatpush2.msra.mxu1 %v930_v61  ;;  %1368 = vmatprep.subr.mxu0 %v799_v62  ;;  %v1699_v61 = vld [vmem:[#allocation17 + $0x158] sm:$0xff]  ;;  %v1714_v62 = vld [vmem:[#allocation17 + $0x1d0] sm:$0xff] }
 0x174   : > { %1445 = vmatprep.subr.mxu1 %v927_v63  ;;  %2627 = vmatprep.mubr.msk.f32.mxu1 %vm3814_vm4, %v3812_v18  ;;  %v3113_v18 = vld [vmem:[#allocation2] sm:$0xff] }
 0x175   : > { %1369 = vmatpush2.msra.mxu0 %v798_v0  ;;  %1446 = vmatpush2.msra.mxu1 %v926_v1  ;;  %v1698_v63 = vld [vmem:[#allocation17 + $0x150] sm:$0xff]  ;;  %v1713_v0 = vld [vmem:[#allocation17 + $0x1c8] sm:$0xff] }
 0x176   : > { %1370 = vmatprep.subr.mxu0 %v795_v2  ;;  %2629 = vmatmul.mubr.msk.f32.gmra.mxu1 %vm3814_vm4, %v3821_v27  ;;  %v3114_v27 = vld [vmem:[#allocation2 + $0x8] sm:$0xff]  ;;  %v1697_v1 = vld [vmem:[#allocation17 + $0x148] sm:$0xff]  ;;  %v1712_v2 = vld [vmem:[#allocation17 + $0x1c0] sm:$0xff] }
 0x177   : > { %1447 = vmatprep.subr.mxu1 %v923_v3  ;;  %1371 = vmatpush2.msra.mxu0 %v794_v4  ;;  %v1696_v3 = vld [vmem:[#allocation17 + $0x140] sm:$0xff]  ;;  %v1711_v4 = vld [vmem:[#allocation17 + $0x1b8] sm:$0xff] }
 0x178   : > { %1448 = vmatpush2.msra.mxu1 %v922_v5  ;;  %1372 = vmatprep.subr.mxu0 %v791_v6  ;;  %v1695_v5 = vld [vmem:[#allocation17 + $0x138] sm:$0xff]  ;;  %v1710_v6 = vld [vmem:[#allocation17 + $0x1b0] sm:$0xff] }
 0x179   : > { %1449 = vmatprep.subr.mxu1 %v919_v7  ;;  %1373 = vmatpush2.msra.mxu0 %v790_v8  ;;  %v1694_v7 = vld [vmem:[#allocation17 + $0x130] sm:$0xff]  ;;  %v1709_v8 = vld [vmem:[#allocation17 + $0x1a8] sm:$0xff] }
 0x17a   : > { %2631 = vmatprep.mubr.msk.f32.mxu0 %vm3775_vm3, %v3773_v38  ;;  %1450 = vmatpush2.msra.mxu1 %v918_v9  ;;  %v1670_v38 = vld [vmem:[#allocation17 + $0x70] sm:$0xff]  ;;  %v1693_v9 = vld [vmem:[#allocation17 + $0x128] sm:$0xff] }
 0x17b   : > { %1451 = vmatprep.mubr.f32.mxu1 %v3113_v18  ;;  %2633 = vmatmul.mubr.msk.f32.vlgmr.msra.gmra.mxu0 %vm3775_vm3, %v3785_v44  ;;  %v1685_v44 = vld [vmem:[#allocation17 + $0xe8] sm:$0xff]  ;;  %v1708_v18 = vld [vmem:[#allocation17 + $0x1a0] sm:$0xff] }
 0x17c   : > { %1452 = vmatmul.mubr.f32.vlgmr.msra.gmra.mxu1 %v3114_v27  ;;  %2635 = vmatprep.mubr.msk.f32.mxu0 %vm3831_vm5, %v3829_v15  ;;  %v1683_v15 = vld [vmem:[#allocation17 + $0xd8] sm:$0xff] }
 0x17d   : > { %1457 = vmatprep.mubr.f32.mxu1 %v3801_v50  ;;  %2681 = vmatprep.subr.mxu0 %v1687_v10  ;;  %v1667_v50 = vld [vmem:[#allocation17 + $0x58] sm:$0xff]  ;;  %v1692_v10 = vld [vmem:[#allocation17 + $0x120] sm:$0xff] }
 0x17e   : > { %2682 = vmatpush3.msra.mxu0 %v1671_v11  ;;  %2719 = vmatprep.subr.mxu1 %v1719_v52  ;;  %v1707_v27 = vld [vmem:[#allocation17 + $0x198] sm:$0xff] }
 0x17f   : > { %2637 = vmatmul.mubr.msk.f32.gmra.mxu0 %vm3831_vm5, %v3841_v42  ;;  %2683 = vmatprep.subr.mxu0 %v1686_v12  ;;  %v1665_v42 = vld [vmem:[#allocation17 + $0x48] sm:$0xff]  ;;  %v1691_v11 = vld [vmem:[#allocation17 + $0x118] sm:$0xff]  ;;  %v1706_v12 = vld [vmem:[#allocation17 + $0x190] sm:$0xff] }
 0x180   : > { %1458 = vmatmul.mubr.f32.gmra.mxu1 %v3804_v36  ;;  %2684 = vmatpush3.msra.mxu0 %v1670_v38  ;;  %v1680_v36 = vld [vmem:[#allocation17 + $0xc0] sm:$0xff]  ;;  %v1690_v38 = vld [vmem:[#allocation17 + $0x110] sm:$0xff] }
 0x181   : > { %2685 = vmatprep.subr.mxu0 %v1685_v44  ;;  %2720 = vmatpush3.msra.mxu1 %v1703_v57  ;;  %v1705_v44 = vld [vmem:[#allocation17 + $0x188] sm:$0xff] }
 0x182   : > { %2686 = vmatpush3.msra.mxu0 %v1669_v13  ;;  %2721 = vmatprep.subr.mxu1 %v1718_v32  ;;  %v1689_v13 = vld [vmem:[#allocation17 + $0x108] sm:$0xff] }
 0x183   : > { %2687 = vmatprep.subr.mxu0 %v1684_v16  ;;  %2722 = vmatpush3.msra.mxu1 %v1702_v41  ;;  %v1704_v16 = vld [vmem:[#allocation17 + $0x180] sm:$0xff] }
 0x184   : > { %2688 = vmatpush3.msra.mxu0 %v1668_v17  ;;  %2723 = vmatprep.subr.mxu1 %v1717_v58  ;;  %v1688_v17 = vld [vmem:[#allocation17 + $0x100] sm:$0xff] }
 0x185   : > { %2689 = vmatprep.subr.mxu0 %v1683_v15  ;;  %2724 = vmatpush3.msra.mxu1 %v1701_v40  ;;  %v1783_v15 = vld [vmem:[#allocation17 + $0x3f8] sm:$0xff] }
 0x186   : > { %2690 = vmatpush3.msra.mxu0 %v1667_v50  ;;  %2725 = vmatprep.subr.mxu1 %v1716_v37 }
 0x187   : > { %2691 = vmatprep.subr.mxu0 %v1682_v21  ;;  %2726 = vmatpush3.msra.mxu1 %v1700_v59  ;;  %v3879_v21 = vld [vmem:[#allocation13] sm:$0xf] }
 0x188   : > { %2692 = vmatpush3.msra.mxu0 %v1666_v22  ;;  %2727 = vmatprep.subr.mxu1 %v1715_v60  ;;  %v985_v22 = vrot.slane %v3879_v21, %v3722_v23  ;;  %v1545_v60 = vld [vmem:[#allocation3 + $0x8] sm:$0xc0] }
 0x189   : > { %2693 = vmatprep.subr.mxu0 %v1681_v25  ;;  %2728 = vmatpush3.msra.mxu1 %v1699_v61 }
 0x18a   : > { %2694 = vmatpush3.msra.mxu0 %v1665_v42  ;;  %2729 = vmatprep.subr.mxu1 %v1714_v62  ;;  %v989_v42 = vrot.slane %v3879_v21, %v3725_v24 }
 0x18b   : > { %2695 = vmatprep.subr.mxu0 %v1680_v36  ;;  %2730 = vmatpush3.msra.mxu1 %v1698_v63 }
 0x18c   : > { %2696 = vmatpush3.msra.mxu0 %v1664_v28  ;;  %2731 = vmatprep.subr.mxu1 %v1713_v0  ;;  %v1544_v0 = vld [vmem:[#allocation3 + $0x40] sm:$0xc0] }
 0x18d   : > { %2697 = vmatprep.subr.mxu0 %v1679_v29  ;;  %2732 = vmatpush3.msra.mxu1 %v1697_v1 }
 0x18e   : > { %2698 = vmatpush3.msra.mxu0 %v1663_v20  ;;  %2733 = vmatprep.subr.mxu1 %v1712_v2 }
 0x18f   : > { %2699 = vmatprep.subr.mxu0 %v1678_v34  ;;  %2734 = vmatpush3.msra.mxu1 %v1696_v3  ;;  %v3885_v34 = vld [vmem:[#allocation14] sm:$0xf] }
 0x190   : > { %2700 = vmatpush3.msra.mxu0 %v1662_v26  ;;  %2735 = vmatprep.subr.mxu1 %v1711_v4 }
 0x191   : > { %2701 = vmatprep.subr.mxu0 %v1677_v43  ;;  %2736 = vmatpush3.msra.mxu1 %v1695_v5  ;;  %v3887_v43 = vld [vmem:[#allocation16] sm:$0xf]  ;;  %v1571_v5 = vrot.slane %v1545_v60, 6  ;;  %v1738_v60 = vld [vmem:[#allocation17 + $0x290] sm:$0xff] }
 0x192   : > { %2702 = vmatpush3.msra.mxu0 %v1661_v45  ;;  %2737 = vmatprep.subr.mxu1 %v1710_v6  ;;  %v1503_v32 = vrot.slane %v3887_v43, %v3725_v24  ;;  %v1568_v6 = vrot.slane %v1544_v0, 6 }
 0x193   : > { %2703 = vmatprep.subr.mxu0 %v1676_v46  ;;  %2738 = vmatpush3.msra.mxu1 %v1694_v7 }
 0x194   : > { %2704 = vmatpush3.msra.mxu0 %v1660_v47  ;;  %2739 = vmatprep.subr.mxu1 %v1709_v8  ;;  %v1469_v47 = vrot.slane %v3885_v34, %v3722_v23 }
 0x195   : > { %2705 = vmatprep.subr.mxu0 %v1675_v30  ;;  %2740 = vmatpush3.msra.mxu1 %v1693_v9 }
 0x196   : > { %2706 = vmatpush3.msra.mxu0 %v1659_v48  ;;  %2741 = vmatprep.subr.mxu1 %v1708_v18 }
 0x197   : > { %2707 = vmatprep.subr.mxu0 %v1674_v49  ;;  %2742 = vmatpush3.msra.mxu1 %v1692_v10  ;;  %v1499_v49 = vrot.slane %v3887_v43, %v3722_v23 }
 0x198   : > { %2708 = vmatpush3.msra.mxu0 %v1658_v53  ;;  %2743 = vmatprep.subr.mxu1 %v1707_v27 }
 0x199   : > { %2709 = vmatprep.subr.mxu0 %v1673_v54  ;;  %2744 = vmatpush3.msra.mxu1 %v1691_v11  ;;  %v1735_v11 = vld [vmem:[#allocation17 + $0x278] sm:$0xff] }
 0x19a   : > { %2710 = vmatpush3.msra.mxu0 %v1657_v55  ;;  %2745 = vmatprep.subr.mxu1 %v1706_v12 }
 0x19b   : > { %2711 = vmatprep.subr.mxu0 %v1672_v56  ;;  %2746 = vmatpush3.msra.mxu1 %v1690_v38  ;;  %v1473_v56 = vrot.slane %v3885_v34, %v3725_v24  ;;  %v1750_v38 = vld [vmem:[#allocation17 + $0x2f0] sm:$0xff] }
 0x19c   : > { %2712 = vmatpush3.msra.mxu0 %v1656_v35  ;;  %2747 = vmatprep.subr.mxu1 %v1705_v44 }
 0x19d   : > { %2757 = vmatprep.subr.mxu0 %v1751_v51  ;;  %2748 = vmatpush3.msra.mxu1 %v1689_v13  ;;  %v1734_v13 = vld [vmem:[#allocation17 + $0x270] sm:$0xff] }
 0x19e   : > { %2749 = vmatprep.subr.mxu1 %v1704_v16  ;;  %v1749_v16 = vld [vmem:[#allocation17 + $0x2e8] sm:$0xff] }
 0x19f   : > { %2750 = vmatpush3.msra.mxu1 %v1688_v17  ;;  %v1733_v17 = vld [vmem:[#allocation17 + $0x268] sm:$0xff] }
 0x1a0   : > { %2795 = vmatprep.subr.mxu1 %v1783_v15  ;;  %v1748_v15 = vld [vmem:[#allocation17 + $0x2e0] sm:$0xff] }
 0x1b3   : > { %v1068_v50 = vpop.f32.mrf.mxu0 }
 0x1b4   : > { %v1069_v29 = vadd.f32 %v1068_v50, %v985_v22  ;;  %v1732_v50 = vld [vmem:[#allocation17 + $0x260] sm:$0xff] }
 0x1b5   : > { %v1070_v25 = vpop.f32.mrf.mxu0  ;;  %v1145_v28 = vpop.f32.mrf.mxu1 }
 0x1b6   : > { %v1071_v26 = vadd.f32 %v1070_v25, %v989_v42  ;;  %v1146_v46 = vadd.f32 %v1145_v28, %v1069_v29  ;;  %v1731_v25 = vld [vmem:[#allocation17 + $0x258] sm:$0xff]  ;;  %v1746_v28 = vld [vmem:[#allocation17 + $0x2d0] sm:$0xff] }
 0x1b7   : > { %v1147_v45 = vpop.f32.mrf.mxu1  ;;  %v1730_v29 = vld [vmem:[#allocation17 + $0x250] sm:$0xff] }
 0x1b8   : > { %v1148_v53 = vadd.f32 %v1147_v45, %v1071_v26  ;;  %v1745_v45 = vld [vmem:[#allocation17 + $0x2c8] sm:$0xff] }
 0x1f0   : > { %v1074_v36 = vpop.f32.mrf.mxu0 }
 0x1f1   : > { %v1075_v54 = vadd.f32 %v1074_v36, %v985_v22  ;;  %v1747_v22 = vld [vmem:[#allocation17 + $0x2d8] sm:$0xff]  ;;  %v1605_v36 = vld [vmem:[#allocation3 + $0x8] sm:$0x80] }
 0x1f2   : > { %v1076_v20 = vpop.f32.mrf.mxu0 }
 0x1f3   : > { %v1151_v30 = vpop.f32.mrf.mxu1  ;;  %v1077_v51 = vadd.f32 %v1076_v20, %v989_v42 }
 0x1f4   : > { %v1152_v58 = vadd.f32 %v1151_v30, %v1075_v54  ;;  %v1728_v54 = vld [vmem:[#allocation17 + $0x240] sm:$0xff] }
 0x1f5   : > { %v1153_v41 = vpop.f32.mrf.mxu1 }
 0x1f6   : > { %v1154_v23 = vadd.f32 %v1153_v41, %v1077_v51  ;;  %v1727_v51 = vld [vmem:[#allocation17 + $0x238] sm:$0xff]  ;;  %v1725_v41 = vld [vmem:[#allocation17 + $0x228] sm:$0xff] }
 0x1f7   : > { %v1222_v48 = vpop.f32.mrf.mxu0 }
 0x1f8   : > { %v1223_v55 = vadd.f32 %v1222_v48, %v1146_v46  ;;  %v1729_v48 = vld [vmem:[#allocation17 + $0x248] sm:$0xff] }
 0x1f9   : > { %v1224_v35 = vpop.f32.mrf.mxu0 }
 0x1fa   : > { %v1486_v52 = vmul.f32 %v1469_v47, %v1223_v55  ;;  %v1225_v57 = vadd.f32 %v1224_v35, %v1148_v53 }
 0x1fc   : > { %v1516_v40 = vadd.f32 %v1499_v49, %v1486_v52  ;;  %v1487_v37 = vmul.f32 %v1473_v56, %v1225_v57  ;;  %v1742_v52 = vld [vmem:[#allocation17 + $0x2b0] sm:$0xff] }
 0x1fd   : > { %v1228_v59 = vpop.f32.mrf.mxu0  ;;  %v1726_v57 = vld [vmem:[#allocation17 + $0x230] sm:$0xff] }
 0x1fe   : > { %v3897_v61 = vmax.f32 %v1516_v40, 0.0  ;;  %v1517_v62 = vadd.f32 %v1503_v32, %v1487_v37  ;;  %v1229_v63 = vadd.f32 %v1228_v59, %v1152_v58  ;;  %v1740_v58 = vld [vmem:[#allocation17 + $0x2a0] sm:$0xff]  ;;  %v1739_v37 = vld [vmem:[#allocation17 + $0x298] sm:$0xff] }
 0x1ff   : > { %v1230_v1 = vpop.f32.mrf.mxu0  ;;  %v1724_v40 = vld [vmem:[#allocation17 + $0x220] sm:$0xff]  ;;  %v1723_v59 = vld [vmem:[#allocation17 + $0x218] sm:$0xff] }
 0x200   : > { %v3899_v2 = vmax.f32 %v1517_v62, 0.0  ;;  %v1490_v3 = vmul.f32 %v1469_v47, %v1229_v63  ;;  %v1231_v4 = vadd.f32 %v1230_v1, %v1154_v23  ;;  %v1569_v24 = vrot.slane %v3897_v61, 6  ;;  %v1722_v23 = vld [vmem:[#allocation17 + $0x210] sm:$0xff]  ;;  %v1604_v62 = vld [vmem:[#allocation3 + $0x40] sm:$0x80]  ;;  %v1737_v63 = vld [vmem:[#allocation17 + $0x288] sm:$0xff] }
 0x201   : > { %v1623_v47 = vrot.slane %v1605_v36, 7  ;;  %v1721_v1 = vld [vmem:[#allocation17 + $0x208] sm:$0xff]  ;;  %v1795_v36 = vld [vmem:[#allocation17 + $0x458] sm:$0xff] }
 0x202   : > { %v3902_v7 = vadd.f32 %v1499_v49, %v1490_v3  ;;  %v1491_v8 = vmul.f32 %v1473_v56, %v1231_v4  ;;  %v1572_v9 = vrot.slane %v3899_v2, 6  ;;  %v1570_v12 = vsel %vm544_vm0, %v1568_v6, %v1569_v24  ;;  %v1744_v49 = vld [vmem:[#allocation17 + $0x2c0] sm:$0xff]  ;;  %v1743_v56 = vld [vmem:[#allocation17 + $0x2b8] sm:$0xff] }
 0x203   : > { %v1624_v30 = vrot.slane %v3899_v2, 7  ;;  %v1736_v3 = vld [vmem:[#allocation17 + $0x280] sm:$0xff]  ;;  %v1620_v4 = vrot.slane %v1604_v62, 7 }
 0x204   : > { %v1528_v18 = vmax.f32 %v3902_v7, 0.0  ;;  %v3906_v10 = vadd.f32 %v1503_v32, %v1491_v8  ;;  %v1573_v27 = vsel %vm544_vm0, %v1571_v5, %v1572_v9  ;;  %v1741_v32 = vld [vmem:[#allocation17 + $0x2a8] sm:$0xff]  ;;  %v1621_v5 = vrot.slane %v3897_v61, 7  ;;  %v1720_v6 = vld [vmem:[#allocation17 + $0x200] sm:$0xff]  ;;  %v3115_v7 = vld [vmem:[%s3697_s22 + $0x8] sm:$0xff] }
 0x205   : > { %2639 = vmatprep.mubr.msk.f32.mxu0 %vm3761_vm2, %v1573_v27  ;;  %v1625_v35 = vsel %vm577_vm1, %v1623_v47, %v1624_v30  ;;  %v1799_v27 = vld [vmem:[#allocation17 + $0x478] sm:$0xff]  ;;  %v1792_v47 = vld [vmem:[#allocation17 + $0x440] sm:$0xff] }
 0x206   : > { %1540 = vst [vmem:[#allocation3 + $0x48] sm:$0xff] %v1528_v18  ;;  %v1529_v44 = vmax.f32 %v3906_v10, 0.0  ;;  %2641 = vmatmul.mubr.msk.f32.vlgmr.msra.gmra.mxu0 %vm3761_vm2, %v1570_v12  ;;  %v1814_v12 = vld [vmem:[#allocation17 + $0x4f0] sm:$0xff] }
 0x207   : > { %2758 = vmatpush3.msra.mxu0 %v1735_v11  ;;  %v1622_v11 = vsel %vm577_vm1, %v1620_v4, %v1621_v5  ;;  %v1786_v4 = vld [vmem:[#allocation17 + $0x410] sm:$0xff] }
 0x208   : > { %1541 = vst [vmem:[#allocation3 + $0x50] sm:$0xff] %v1529_v44  ;;  %2759 = vmatprep.subr.mxu0 %v1750_v38 }
 0x209   : > { %2760 = vmatpush3.msra.mxu0 %v1734_v13 }
 0x20a   : > { %2761 = vmatprep.subr.mxu0 %v1749_v16  ;;  %v1798_v16 = vld [vmem:[#allocation17 + $0x470] sm:$0xff] }
 0x20b   : > { %2762 = vmatpush3.msra.mxu0 %v1733_v17  ;;  %v1813_v17 = vld [vmem:[#allocation17 + $0x4e8] sm:$0xff] }
 0x20c   : > { %2763 = vmatprep.subr.mxu0 %v1748_v15  ;;  %v1797_v15 = vld [vmem:[#allocation17 + $0x468] sm:$0xff] }
 0x20d   : > { %v1552_v42 = vld [vmem:[#allocation3 + $0x48] sm:$0x3f]  ;;  %2764 = vmatpush3.msra.mxu0 %v1732_v50 }
 0x20e   : > { %2765 = vmatprep.subr.mxu0 %v1747_v22  ;;  %v1580_v26 = vrot.slane %v1552_v42, 6  ;;  %v1608_v8 = vld [vmem:[#allocation3 + $0x48] sm:$0x7f]  ;;  %v1812_v22 = vld [vmem:[#allocation17 + $0x4e0] sm:$0xff]  ;;  %v1811_v42 = vld [vmem:[#allocation17 + $0x4d8] sm:$0xff] }
 0x20f   : > { %v1553_v20 = vld [vmem:[#allocation3 + $0x50] sm:$0x3f]  ;;  %2766 = vmatpush3.msra.mxu0 %v1731_v25  ;;  %v1632_v38 = vrot.slane %v1608_v8, 7  ;;  %v1796_v25 = vld [vmem:[#allocation17 + $0x460] sm:$0xff] }
 0x210   : > { %v1582_v46 = vrot.slane %v1553_v20, 6  ;;  %2767 = vmatprep.subr.mxu0 %v1746_v28  ;;  %v1581_v55 = vsel %vm544_vm0, %v1569_v24, %v1580_v26  ;;  %v1609_v0 = vld [vmem:[#allocation3 + $0x50] sm:$0x7f]  ;;  %v1809_v20 = vld [vmem:[#allocation17 + $0x4c8] sm:$0xff] }
 0x211   : > { %2768 = vmatpush3.msra.mxu0 %v1730_v29  ;;  %v1634_v24 = vrot.slane %v1609_v0, 7  ;;  %v1633_v50 = vsel %vm577_vm1, %v1621_v5, %v1632_v38  ;;  %v1810_v28 = vld [vmem:[#allocation17 + $0x4d0] sm:$0xff]  ;;  %v1793_v26 = vld [vmem:[#allocation17 + $0x448] sm:$0xff] }
 0x212   : > { %v1583_v53 = vsel %vm544_vm0, %v1572_v9, %v1582_v46  ;;  %2769 = vmatprep.subr.mxu0 %v1745_v45  ;;  %v1815_v9 = vld [vmem:[#allocation17 + $0x4f8] sm:$0xff]  ;;  %v1794_v29 = vld [vmem:[#allocation17 + $0x450] sm:$0xff]  ;;  %v1299_v45 = vpop.f32.mrf.mxu1  ;;  %v1808_v46 = vld [vmem:[#allocation17 + $0x4c0] sm:$0xff] }
 0x213   : > { %2643 = vmatprep.mubr.msk.f32.mxu0 %vm3814_vm4, %v1583_v53  ;;  %2770 = vmatpush3.msra.mxu0 %v1729_v48  ;;  %v1635_v13 = vsel %vm577_vm1, %v1624_v30, %v1634_v24  ;;  %v992_v30 = vsub.s32 2, %v3719_v14  ;;  %v1791_v48 = vld [vmem:[#allocation17 + $0x438] sm:$0xff]  ;;  %v1802_v0 = vld [vmem:[#allocation17 + $0x490] sm:$0xff]  ;;  %v1785_v38 = vld [vmem:[#allocation17 + $0x408] sm:$0xff] }
 0x214   : > { %2645 = vmatmul.mubr.msk.f32.gmra.mxu0 %vm3814_vm4, %v1581_v55  ;;  %2771 = vmatprep.subr.mxu0 %v1744_v49  ;;  %v996_v49 = vsub.s32 3, %v3719_v14  ;;  %v1301_v53 = vpop.f32.mrf.mxu1  ;;  %v1790_v55 = vld [vmem:[#allocation17 + $0x430] sm:$0xff] }
 0x215   : > { %2655 = vmatprep.mubr.msk.f32.mxu0 %vm3775_vm3, %v1625_v35  ;;  %2772 = vmatpush3.msra.mxu0 %v1728_v54  ;;  %v1806_v54 = vld [vmem:[#allocation17 + $0x4b0] sm:$0xff] }
 0x216   : > { %2773 = vmatprep.subr.mxu0 %v1743_v56  ;;  %v993_v56 = vrot.slane %v3879_v21, %v992_v30  ;;  %v1481_v8 = vrot.slane %v3885_v34, %v996_v49 }
 0x217   : > { %2774 = vmatpush3.msra.mxu0 %v1727_v51  ;;  %v1805_v51 = vld [vmem:[#allocation17 + $0x4a8] sm:$0xff] }
 0x218   : > { %2775 = vmatprep.subr.mxu0 %v1742_v52  ;;  %v1789_v52 = vld [vmem:[#allocation17 + $0x428] sm:$0xff]  ;;  %v1300_v14 = vadd.f32 %v1299_v45, %v993_v56 }
 0x219   : > { %2776 = vmatpush3.msra.mxu0 %v1726_v57  ;;  %v997_v57 = vrot.slane %v3879_v21, %v996_v49  ;;  %v1507_v21 = vrot.slane %v3887_v43, %v992_v30 }
 0x21a   : > { %2777 = vmatprep.subr.mxu0 %v1741_v32 }
 0x21b   : > { %2778 = vmatpush3.msra.mxu0 %v1725_v41  ;;  %v1804_v41 = vld [vmem:[#allocation17 + $0x4a0] sm:$0xff] }
 0x21c   : > { %2779 = vmatprep.subr.mxu0 %v1740_v58  ;;  %v1788_v58 = vld [vmem:[#allocation17 + $0x420] sm:$0xff] }
 0x21d   : > { %2780 = vmatpush3.msra.mxu0 %v1724_v40  ;;  %v1803_v40 = vld [vmem:[#allocation17 + $0x498] sm:$0xff] }
 0x21e   : > { %2781 = vmatprep.subr.mxu0 %v1739_v37 }
 0x21f   : > { %2782 = vmatpush3.msra.mxu0 %v1723_v59 }
 0x220   : > { %2783 = vmatprep.subr.mxu0 %v1738_v60  ;;  %v1787_v60 = vld [vmem:[#allocation17 + $0x418] sm:$0xff] }
 0x221   : > { %2784 = vmatpush3.msra.mxu0 %v1722_v23  ;;  %v1302_v23 = vadd.f32 %v1301_v53, %v997_v57 }
 0x222   : > { %2785 = vmatprep.subr.mxu0 %v1737_v63  ;;  %v1477_v63 = vrot.slane %v3885_v34, %v992_v30 }
 0x223   : > { %2786 = vmatpush3.msra.mxu0 %v1721_v1 }
 0x224   : > { %2787 = vmatprep.subr.mxu0 %v1736_v3 }
 0x225   : > { %2788 = vmatpush3.msra.mxu0 %v1720_v6 }
 0x226   : > { %2657 = vmatmul.mubr.msk.f32.vlgmr.msra.gmra.mxu0 %vm3775_vm3, %v1622_v11  ;;  %2833 = vmatprep.subr.mxu0 %v1815_v9  ;;  %v1801_v9 = vld [vmem:[#allocation17 + $0x488] sm:$0xff] }
 0x227   : > { %2659 = vmatprep.mubr.msk.f32.mxu0 %vm3831_vm5, %v1635_v13  ;;  %2834 = vmatpush3.msra.mxu0 %v1799_v27  ;;  %v1511_v27 = vrot.slane %v3887_v43, %v996_v49  ;;  %v3948_v43 = vld [vmem:[#allocation17 + $0x6f8] sm:$0xff]  ;;  %v3958_v49 = vld [vmem:[#allocation17 + $0x670] sm:$0xff] }
 0x228   : > { %2835 = vmatprep.subr.mxu0 %v1814_v12 }
 0x229   : > { %2836 = vmatpush3.msra.mxu0 %v1798_v16 }
 0x22a   : > { %2661 = vmatmul.mubr.msk.f32.gmra.mxu0 %vm3831_vm5, %v1633_v50  ;;  %2837 = vmatprep.subr.mxu0 %v1813_v17  ;;  %v1800_v50 = vld [vmem:[#allocation17 + $0x480] sm:$0xff] }
 0x22b   : > { %2838 = vmatpush3.msra.mxu0 %v1797_v15  ;;  %2244 = vmatprep.mubr.f32.mxu0 %v3899_v2  ;;  %v1807_v2 = vld [vmem:[#allocation17 + $0x4b8] sm:$0xff] }
 0x22c   : > { %2839 = vmatprep.subr.mxu0 %v1812_v22 }
 0x22d   : > { %2840 = vmatpush3.msra.mxu0 %v1796_v25 }
 0x22e   : > { %2841 = vmatprep.subr.mxu0 %v1811_v42  ;;  %v1784_v42 = vld [vmem:[#allocation17 + $0x400] sm:$0xff] }
 0x22f   : > { %2842 = vmatpush3.msra.mxu0 %v1795_v36 }
 0x230   : > { %2843 = vmatprep.subr.mxu0 %v1810_v28 }
 0x231   : > { %2844 = vmatpush3.msra.mxu0 %v1794_v29 }
 0x232   : > { %2845 = vmatprep.subr.mxu0 %v1809_v20  ;;  %v1547_v20 = vld [vmem:[#allocation3 + $0x58] sm:$0xc0] }
 0x233   : > { %2846 = vmatpush3.msra.mxu0 %v1793_v26  ;;  %v3950_v26 = vld [vmem:[#allocation17 + $0x678] sm:$0xff] }
 0x234   : > { %2847 = vmatprep.subr.mxu0 %v1808_v46 }
 0x235   : > { %2848 = vmatpush3.msra.mxu0 %v1792_v47 }
 0x236   : > { %2849 = vmatprep.subr.mxu0 %v1807_v2  ;;  %v1305_v35 = vpop.f32.mrf.mxu1  ;;  %v1546_v2 = vld [vmem:[#allocation3 + $0x20] sm:$0xc0] }
 0x237   : > { %2850 = vmatpush3.msra.mxu0 %v1791_v48  ;;  %v1306_v5 = vadd.f32 %v1305_v35, %v993_v56  ;;  %v3954_v48 = vld [vmem:[#allocation17 + $0x6f0] sm:$0xff]  ;;  %v1577_v56 = vrot.slane %v1547_v20, 6  ;;  %v3967_v35 = vld [vmem:[#allocation17 + $0x6e8] sm:$0xff] }
 0x238   : > { %2851 = vmatprep.subr.mxu0 %v1806_v54  ;;  %v1307_v32 = vpop.f32.mrf.mxu1 }
 0x239   : > { %2852 = vmatpush3.msra.mxu0 %v1790_v55  ;;  %v1308_v13 = vadd.f32 %v1307_v32, %v997_v57 }
 0x23a   : > { %2853 = vmatprep.subr.mxu0 %v1805_v51  ;;  %v1574_v51 = vrot.slane %v1546_v2, 6  ;;  %v4054_v2 = vld [vmem:[#allocation17 + $0x6a8] sm:$0xff] }
 0x23b   : > { %2854 = vmatpush3.msra.mxu0 %v1789_v52  ;;  %v1376_v37 = vpop.f32.mrf.mxu0  ;;  %v3971_v52 = vld [vmem:[#allocation17 + $0x668] sm:$0xff] }
 0x23c   : > { %v1453_v59 = vpop.f32.mrf.mxu1  ;;  %2855 = vmatprep.subr.mxu0 %v1804_v41  ;;  %v1377_v62 = vadd.f32 %v1376_v37, %v1300_v14  ;;  %v3983_v41 = vld [vmem:[#allocation17 + $0x660] sm:$0xff]  ;;  %v3992_v37 = vld [vmem:[#allocation17 + $0x6d8] sm:$0xff] }
 0x23d   : > { %2856 = vmatpush3.msra.mxu0 %v1788_v58  ;;  %v1378_v1 = vpop.f32.mrf.mxu0 }
 0x23e   : > { %v1455_v3 = vpop.f32.mrf.mxu1  ;;  %2857 = vmatprep.subr.mxu0 %v1803_v40  ;;  %v1454_v6 = vadd.f32 %v1453_v59, %v1377_v62  ;;  %v1379_v24 = vadd.f32 %v1378_v1, %v1302_v23  ;;  %v1767_v40 = vld [vmem:[#allocation17 + $0x378] sm:$0xff]  ;;  %v1782_v59 = vld [vmem:[#allocation17 + $0x3f0] sm:$0xff]  ;;  %v4014_v1 = vld [vmem:[#allocation17 + $0x6c8] sm:$0xff] }
 0x23f   : > { %2858 = vmatpush3.msra.mxu0 %v1787_v60  ;;  %v1382_v11 = vpop.f32.mrf.mxu0  ;;  %v4001_v60 = vld [vmem:[#allocation17 + $0x658] sm:$0xff]  ;;  %v1766_v23 = vld [vmem:[#allocation17 + $0x370] sm:$0xff] }
 0x240   : > { %v1459_v12 = vpop.f32.mrf.mxu1  ;;  %2859 = vmatprep.subr.mxu0 %v1802_v0  ;;  %v1488_v16 = vmul.f32 %v1477_v63, %v1454_v6  ;;  %v1456_v17 = vadd.f32 %v1455_v3, %v1379_v24  ;;  %v1383_v15 = vadd.f32 %v1382_v11, %v1306_v5  ;;  %v4008_v62 = vld [vmem:[#allocation17 + $0x6d0] sm:$0xff]  ;;  %v4017_v3 = vld [vmem:[#allocation17 + $0x648] sm:$0xff]  ;;  %v1764_v5 = vld [vmem:[#allocation17 + $0x360] sm:$0xff] }
 0x241   : > { %2860 = vmatpush3.msra.mxu0 %v1786_v4  ;;  %v1384_v22 = vpop.f32.mrf.mxu0  ;;  %v4011_v0 = vld [vmem:[#allocation17 + $0x650] sm:$0xff]  ;;  %v1607_v4 = vld [vmem:[#allocation3 + $0x58] sm:$0x80]  ;;  %v4020_v6 = vld [vmem:[#allocation17 + $0x6c0] sm:$0xff] }
 0x242   : > { %v1461_v25 = vpop.f32.mrf.mxu1  ;;  %2861 = vmatprep.subr.mxu0 %v1801_v9  ;;  %v1518_v36 = vadd.f32 %v1507_v21, %v1488_v16  ;;  %v1489_v34 = vmul.f32 %v1481_v8, %v1456_v17  ;;  %v1385_v28 = vadd.f32 %v1384_v22, %v1308_v13  ;;  %v1460_v29 = vadd.f32 %v1459_v12, %v1383_v15  ;;  %v4023_v9 = vld [vmem:[#allocation17 + $0x640] sm:$0xff]  ;;  %v4026_v11 = vld [vmem:[#allocation17 + $0x6b8] sm:$0xff]  ;;  %v1778_v13 = vld [vmem:[#allocation17 + $0x3d0] sm:$0xff] }
 0x243   : > { %2862 = vmatpush3.msra.mxu0 %v1785_v38  ;;  %v4029_v16 = vld [vmem:[#allocation17 + $0x638] sm:$0xff]  ;;  %v1629_v15 = vrot.slane %v1607_v4, 7  ;;  %v1762_v22 = vld [vmem:[#allocation17 + $0x350] sm:$0xff]  ;;  %v4078_v4 = vld [vmem:[#allocation17 + $0x688] sm:$0xff] }
 0x244   : > { %2863 = vmatprep.subr.mxu0 %v1800_v50  ;;  %v3952_v45 = vmax.f32 %v1518_v36, 0.0  ;;  %v1519_v46 = vadd.f32 %v1511_v27, %v1489_v34  ;;  %v1492_v47 = vmul.f32 %v1477_v63, %v1460_v29  ;;  %v1462_v30 = vadd.f32 %v1461_v25, %v1385_v28  ;;  %v1781_v63 = vld [vmem:[#allocation17 + $0x3e8] sm:$0xff]  ;;  %v1776_v28 = vld [vmem:[#allocation17 + $0x3c0] sm:$0xff]  ;;  %v4043_v29 = vld [vmem:[#allocation17 + $0x6b0] sm:$0xff] }
 0x245   : > { %2864 = vmatpush3.msra.mxu0 %v1784_v42  ;;  %v1777_v25 = vld [vmem:[#allocation17 + $0x3c8] sm:$0xff] }
 0x246   : > { %2245 = vmatmul.mubr.f32.vlgmr.msra.gmra.mxu0 %v3897_v61  ;;  %2909 = vmatprep.subr.mxu0 %v3948_v43  ;;  %v3960_v53 = vmax.f32 %v1519_v46, 0.0  ;;  %v3962_v54 = vadd.f32 %v1507_v21, %v1492_v47  ;;  %v1493_v55 = vmul.f32 %v1481_v8, %v1462_v30  ;;  %v1575_v61 = vrot.slane %v3952_v45, 6  ;;  %v1765_v21 = vld [vmem:[#allocation17 + $0x368] sm:$0xff]  ;;  %v1779_v8 = vld [vmem:[#allocation17 + $0x3d8] sm:$0xff]  ;;  %v1760_v46 = vld [vmem:[#allocation17 + $0x340] sm:$0xff] }
 0x247   : > { %2249 = vmatprep.mubr.f32.mxu0 %v1529_v44  ;;  %2910 = vmatpush3.msra.mxu0 %v3950_v26  ;;  %v3978_v44 = vld [vmem:[#allocation17 + $0x6e0] sm:$0xff]  ;;  %v1761_v36 = vld [vmem:[#allocation17 + $0x348] sm:$0xff]  ;;  %v4050_v47 = vld [vmem:[#allocation17 + $0x630] sm:$0xff] }
 0x248   : > { %2911 = vmatprep.subr.mxu0 %v3954_v48  ;;  %v1530_v57 = vmax.f32 %v3962_v54, 0.0  ;;  %v3974_v32 = vadd.f32 %v1511_v27, %v1493_v55  ;;  %v1578_v10 = vrot.slane %v3960_v53, 6  ;;  %v1763_v27 = vld [vmem:[#allocation17 + $0x358] sm:$0xff]  ;;  %v1630_v50 = vrot.slane %v3960_v53, 7 }
 0x249   : > { %2912 = vmatpush3.msra.mxu0 %v3958_v49  ;;  %v1775_v30 = vld [vmem:[#allocation17 + $0x3b8] sm:$0xff] }
 0x24a   : > { %2250 = vmatmul.mubr.f32.gmra.mxu0 %v1528_v18  ;;  %2913 = vmatprep.subr.mxu0 %v3967_v35  ;;  %1542 = vst [vmem:[#allocation3] sm:$0xff] %v1530_v57  ;;  %v1531_v58 = vmax.f32 %v3974_v32, 0.0  ;;  %v1579_v14 = vsel %vm544_vm0, %v1577_v56, %v1578_v10  ;;  %v1576_v18 = vsel %vm544_vm0, %v1574_v51, %v1575_v61  ;;  %v1759_v55 = vld [vmem:[#allocation17 + $0x338] sm:$0xff]  ;;  %v1774_v56 = vld [vmem:[#allocation17 + $0x3b0] sm:$0xff]  ;;  %v4060_v51 = vld [vmem:[#allocation17 + $0x6a0] sm:$0xff] }
 0x24b   : > { %2914 = vmatpush3.msra.mxu0 %v3971_v52  ;;  %2394 = vmatprep.mubr.f32.mxu0 %v3115_v7  ;;  %v1631_v20 = vsel %vm577_vm1, %v1629_v15, %v1630_v50  ;;  %v1757_v7 = vld [vmem:[#allocation17 + $0x328] sm:$0xff] }
 0x24c   : > { %2647 = vmatprep.mubr.msk.f32.mxu1 %vm3761_vm2, %v1579_v14  ;;  %2915 = vmatprep.subr.mxu0 %v3978_v44  ;;  %1543 = vst [vmem:[#allocation3 + $0x18] sm:$0xff] %v1531_v58  ;;  %v1773_v14 = vld [vmem:[#allocation17 + $0x3a8] sm:$0xff] }
 0x24d   : > { %2649 = vmatmul.mubr.msk.f32.vlgmr.msra.gmra.mxu1 %vm3761_vm2, %v1576_v18  ;;  %2916 = vmatpush3.msra.mxu0 %v3983_v41  ;;  %v4069_v18 = vld [vmem:[#allocation17 + $0x618] sm:$0xff] }
 0x24e   : > { %2796 = vmatpush3.msra.mxu1 %v1767_v40  ;;  %2917 = vmatprep.subr.mxu0 %v3992_v37  ;;  %v4066_v40 = vld [vmem:[#allocation17 + $0x698] sm:$0xff] }
 0x24f   : > { %2797 = vmatprep.subr.mxu1 %v1782_v59  ;;  %2918 = vmatpush3.msra.mxu0 %v4001_v60  ;;  %v1772_v59 = vld [vmem:[#allocation17 + $0x3a0] sm:$0xff] }
 0x250   : > { %2798 = vmatpush3.msra.mxu1 %v1766_v23  ;;  %2919 = vmatprep.subr.mxu0 %v4008_v62  ;;  %v4072_v23 = vld [vmem:[#allocation17 + $0x690] sm:$0xff] }
 0x251   : > { %2799 = vmatprep.subr.mxu1 %v1781_v63  ;;  %2920 = vmatpush3.msra.mxu0 %v4011_v0  ;;  %v1554_v24 = vld [vmem:[#allocation3] sm:$0x3f] }
 0x252   : > { %2800 = vmatpush3.msra.mxu1 %v1765_v21  ;;  %2921 = vmatprep.subr.mxu0 %v4014_v1  ;;  %v1584_v38 = vrot.slane %v1554_v24, 6  ;;  %v1756_v63 = vld [vmem:[#allocation17 + $0x320] sm:$0xff]  ;;  %v4075_v21 = vld [vmem:[#allocation17 + $0x610] sm:$0xff]  ;;  %v4081_v24 = vld [vmem:[#allocation17 + $0x608] sm:$0xff] }
 0x253   : > { %2801 = vmatprep.subr.mxu1 %v1780_v33  ;;  %2922 = vmatpush3.msra.mxu0 %v4017_v3  ;;  %v1555_v12 = vld [vmem:[#allocation3 + $0x18] sm:$0x3f] }
 0x254   : > { %2802 = vmatpush3.msra.mxu1 %v1764_v5  ;;  %2923 = vmatprep.subr.mxu0 %v4020_v6  ;;  %v1586_v17 = vrot.slane %v1555_v12, 6  ;;  %v1585_v34 = vsel %vm544_vm0, %v1575_v61, %v1584_v38  ;;  %v1758_v61 = vld [vmem:[#allocation17 + $0x330] sm:$0xff]  ;;  %v1771_v33 = vld [vmem:[#allocation17 + $0x398] sm:$0xff]  ;;  %v1606_v38 = vld [vmem:[#allocation3 + $0x20] sm:$0x80] }
 0x255   : > { %2803 = vmatprep.subr.mxu1 %v1779_v8  ;;  %2924 = vmatpush3.msra.mxu0 %v4023_v9  ;;  %v1755_v5 = vld [vmem:[#allocation17 + $0x318] sm:$0xff]  ;;  %v1770_v8 = vld [vmem:[#allocation17 + $0x390] sm:$0xff] }
 0x256   : > { %2804 = vmatpush3.msra.mxu1 %v1763_v27  ;;  %2925 = vmatprep.subr.mxu0 %v4026_v11  ;;  %v1587_v42 = vsel %vm544_vm0, %v1578_v10, %v1586_v17  ;;  %v4063_v10 = vld [vmem:[#allocation17 + $0x620] sm:$0xff]  ;;  %v1754_v12 = vld [vmem:[#allocation17 + $0x310] sm:$0xff]  ;;  %v1769_v17 = vld [vmem:[#allocation17 + $0x388] sm:$0xff] }
 0x257   : > { %2805 = vmatprep.subr.mxu1 %v1778_v13  ;;  %2926 = vmatpush3.msra.mxu0 %v4029_v16  ;;  %v4084_v27 = vld [vmem:[#allocation17 + $0x680] sm:$0xff]  ;;  %v1611_v15 = vld [vmem:[#allocation3 + $0x18] sm:$0x7f] }
 0x258   : > { %2651 = vmatprep.mubr.msk.f32.mxu1 %vm3814_vm4, %v1587_v42  ;;  %2806 = vmatpush3.msra.mxu1 %v1762_v22  ;;  %v4087_v13 = vld [vmem:[#allocation17 + $0x600] sm:$0xff]  ;;  %v1753_v22 = vld [vmem:[#allocation17 + $0x308] sm:$0xff]  ;;  %v1626_v42 = vrot.slane %v1606_v38, 7  ;;  %v1842_v38 = vld [vmem:[#allocation17 + $0x5d0] sm:$0xff] }
 0x259   : > { %2653 = vmatmul.mubr.msk.f32.gmra.mxu1 %vm3814_vm4, %v1585_v34  ;;  %2807 = vmatprep.subr.mxu1 %v1777_v25  ;;  %v1768_v25 = vld [vmem:[#allocation17 + $0x380] sm:$0xff] }
 0x25a   : > { %2663 = vmatprep.mubr.msk.f32.mxu1 %vm3775_vm3, %v1631_v20  ;;  %2808 = vmatpush3.msra.mxu1 %v1761_v36  ;;  %v1627_v36 = vrot.slane %v3952_v45, 7  ;;  %v1752_v34 = vld [vmem:[#allocation17 + $0x300] sm:$0xff] }
 0x25b   : > { %2809 = vmatprep.subr.mxu1 %v1776_v28  ;;  %2927 = vmatprep.subr.mxu0 %v4043_v29  ;;  %v1638_v28 = vrot.slane %v1611_v15, 7  ;;  %v1610_v20 = vld [vmem:[#allocation3] sm:$0x7f]  ;;  %v1841_v15 = vld [vmem:[#allocation17 + $0x5c8] sm:$0xff] }
 0x25c   : > { %2810 = vmatpush3.msra.mxu1 %v1760_v46  ;;  %2928 = vmatpush3.msra.mxu0 %v4050_v47  ;;  %v3116_v46 = vld [vmem:[%s3697_s22] sm:$0xff] }
 0x25d   : > { %2811 = vmatprep.subr.mxu1 %v1775_v30  ;;  %2929 = vmatprep.subr.mxu0 %v4054_v2  ;;  %v1847_v30 = vld [vmem:[#allocation17 + $0x5f8] sm:$0xff] }
 0x25e   : > { %2812 = vmatpush3.msra.mxu1 %v1759_v55  ;;  %2930 = vmatpush3.msra.mxu0 %v4057_v19  ;;  %v1831_v55 = vld [vmem:[#allocation17 + $0x578] sm:$0xff] }
 0x25f   : > { %2813 = vmatprep.subr.mxu1 %v1774_v56  ;;  %2931 = vmatprep.subr.mxu0 %v4060_v51  ;;  %v1628_v56 = vsel %vm577_vm1, %v1626_v42, %v1627_v36  ;;  %v1839_v42 = vld [vmem:[#allocation17 + $0x5b8] sm:$0xff] }
 0x260   : > { %2814 = vmatpush3.msra.mxu1 %v1758_v61  ;;  %2932 = vmatpush3.msra.mxu0 %v4063_v10  ;;  %v1846_v61 = vld [vmem:[#allocation17 + $0x5f0] sm:$0xff] }
 0x261   : > { %2815 = vmatprep.subr.mxu1 %v1773_v14  ;;  %2933 = vmatprep.subr.mxu0 %v4066_v40  ;;  %v1636_v14 = vrot.slane %v1610_v20, 7  ;;  %v1821_v20 = vld [vmem:[#allocation17 + $0x528] sm:$0xff] }
 0x262   : > { %2816 = vmatpush3.msra.mxu1 %v1757_v7  ;;  %2934 = vmatpush3.msra.mxu0 %v4069_v18  ;;  %v1639_v7 = vsel %vm577_vm1, %v1630_v50, %v1638_v28  ;;  %v1843_v50 = vld [vmem:[#allocation17 + $0x5d8] sm:$0xff]  ;;  %v1837_v28 = vld [vmem:[#allocation17 + $0x5a8] sm:$0xff] }
 0x263   : > { %2817 = vmatprep.subr.mxu1 %v1772_v59  ;;  %2935 = vmatprep.subr.mxu0 %v4072_v23  ;;  %v1830_v59 = vld [vmem:[#allocation17 + $0x570] sm:$0xff] }
 0x264   : > { %2818 = vmatpush3.msra.mxu1 %v1756_v63  ;;  %2936 = vmatpush3.msra.mxu0 %v4075_v21  ;;  %v1845_v63 = vld [vmem:[#allocation17 + $0x5e8] sm:$0xff] }
 0x265   : > { %2819 = vmatprep.subr.mxu1 %v1771_v33  ;;  %2937 = vmatprep.subr.mxu0 %v4078_v4  ;;  %v1829_v33 = vld [vmem:[#allocation17 + $0x568] sm:$0xff] }
 0x266   : > { %2820 = vmatpush3.msra.mxu1 %v1755_v5  ;;  %2938 = vmatpush3.msra.mxu0 %v4081_v24  ;;  %v1637_v5 = vsel %vm577_vm1, %v1627_v36, %v1636_v14  ;;  %v1823_v36 = vld [vmem:[#allocation17 + $0x538] sm:$0xff]  ;;  %v1818_v14 = vld [vmem:[#allocation17 + $0x510] sm:$0xff] }
 0x267   : > { %2821 = vmatprep.subr.mxu1 %v1770_v8  ;;  %2939 = vmatprep.subr.mxu0 %v4084_v27  ;;  %v1844_v8 = vld [vmem:[#allocation17 + $0x5e0] sm:$0xff] }
 0x268   : > { %2822 = vmatpush3.msra.mxu1 %v1754_v12  ;;  %2940 = vmatpush3.msra.mxu0 %v4087_v13  ;;  %v1827_v12 = vld [vmem:[#allocation17 + $0x558] sm:$0xff] }
 0x269   : > { %2823 = vmatprep.subr.mxu1 %v1769_v17  ;;  %2395 = vmatmul.mubr.f32.vlgmr.msra.gmra.mxu0 %v3116_v46  ;;  %v1826_v17 = vld [vmem:[#allocation17 + $0x550] sm:$0xff]  ;;  %v1836_v46 = vld [vmem:[#allocation17 + $0x5a0] sm:$0xff] }
 0x26a   : > { %2824 = vmatpush3.msra.mxu1 %v1753_v22  ;;  %v1825_v22 = vld [vmem:[#allocation17 + $0x548] sm:$0xff] }
 0x26b   : > { %2825 = vmatprep.subr.mxu1 %v1768_v25  ;;  %v1840_v25 = vld [vmem:[#allocation17 + $0x5c0] sm:$0xff] }
 0x26c   : > { %2826 = vmatpush3.msra.mxu1 %v1752_v34  ;;  %v1822_v34 = vld [vmem:[#allocation17 + $0x530] sm:$0xff] }
 0x26d   : > { %2665 = vmatmul.mubr.msk.f32.vlgmr.msra.gmra.mxu1 %vm3775_vm3, %v1628_v56  ;;  %2871 = vmatprep.subr.mxu1 %v1847_v30  ;;  %v1820_v30 = vld [vmem:[#allocation17 + $0x520] sm:$0xff]  ;;  %v1819_v56 = vld [vmem:[#allocation17 + $0x518] sm:$0xff] }
 0x26e   : > { %2667 = vmatprep.mubr.msk.f32.mxu1 %vm3831_vm5, %v1639_v7  ;;  %2872 = vmatpush3.msra.mxu1 %v1831_v55  ;;  %v1835_v55 = vld [vmem:[#allocation17 + $0x598] sm:$0xff]  ;;  %v1833_v7 = vld [vmem:[#allocation17 + $0x588] sm:$0xff] }
 0x26f   : > { %2873 = vmatprep.subr.mxu1 %v1846_v61  ;;  %v1834_v61 = vld [vmem:[#allocation17 + $0x590] sm:$0xff] }
 0x270   : > { %2874 = vmatpush3.msra.mxu1 %v1830_v59  ;;  %v1817_v59 = vld [vmem:[#allocation17 + $0x508] sm:$0xff] }
 0x271   : > { %2669 = vmatmul.mubr.msk.f32.gmra.mxu1 %vm3831_vm5, %v1637_v5  ;;  %2875 = vmatprep.subr.mxu1 %v1845_v63  ;;  %v1832_v63 = vld [vmem:[#allocation17 + $0x580] sm:$0xff]  ;;  %v3117_v5 = vld [vmem:[%s3697_s22 + $0x18] sm:$0xff] }
 0x272   : > { %2876 = vmatpush3.msra.mxu1 %v1829_v33  ;;  %2319 = vmatprep.mubr.f32.mxu1 %v3960_v53  ;;  %v1838_v53 = vld [vmem:[#allocation17 + $0x5b0] sm:$0xff]  ;;  %v1816_v33 = vld [vmem:[#allocation17 + $0x500] sm:$0xff] }
 0x273   : > { %2877 = vmatprep.subr.mxu1 %v1844_v8 }
 0x274   : > { %2878 = vmatpush3.msra.mxu1 %v1828_v39 }
 0x275   : > { %2879 = vmatprep.subr.mxu1 %v1843_v50 }
 0x276   : > { %2880 = vmatpush3.msra.mxu1 %v1827_v12 }
 0x277   : > { %2881 = vmatprep.subr.mxu1 %v1842_v38 }
 0x278   : > { %2882 = vmatpush3.msra.mxu1 %v1826_v17 }
 0x279   : > { %2883 = vmatprep.subr.mxu1 %v1841_v15 }
 0x27a   : > { %2884 = vmatpush3.msra.mxu1 %v1825_v22 }
 0x27b   : > { %2885 = vmatprep.subr.mxu1 %v1840_v25 }
 0x27c   : > { %2886 = vmatpush3.msra.mxu1 %v1824_v31 }
 0x27d   : > { %2887 = vmatprep.subr.mxu1 %v1839_v42 }
 0x27e   : > { %2888 = vmatpush3.msra.mxu1 %v1823_v36 }
 0x27f   : > { %2889 = vmatprep.subr.mxu1 %v1838_v53 }
 0x280   : > { %2890 = vmatpush3.msra.mxu1 %v1822_v34 }
 0x281   : > { %2891 = vmatprep.subr.mxu1 %v1837_v28 }
 0x282   : > { %2892 = vmatpush3.msra.mxu1 %v1821_v20 }
 0x283   : > { %2893 = vmatprep.subr.mxu1 %v1836_v46 }
 0x284   : > { %2894 = vmatpush3.msra.mxu1 %v1820_v30 }
 0x285   : > { %2895 = vmatprep.subr.mxu1 %v1835_v55  ;;  %v2670_v55 = vld [vmem:[#allocation19] ss:$0 sm:$0xff] }
 0x286   : > { %2896 = vmatpush3.msra.mxu1 %v1819_v56 }
 0x287   : > { %2897 = vmatprep.subr.mxu1 %v1834_v61 }
 0x288   : > { %2898 = vmatpush3.msra.mxu1 %v1818_v14 }
 0x289   : > { %2899 = vmatprep.subr.mxu1 %v1833_v7 }
 0x28a   : > { %2900 = vmatpush3.msra.mxu1 %v1817_v59 }
 0x28b   : > { %2901 = vmatprep.subr.mxu1 %v1832_v63 }
 0x28c   : > { %2902 = vmatpush3.msra.mxu1 %v1816_v33 }
 0x28d   : > { %2320 = vmatmul.mubr.f32.vlgmr.msra.gmra.mxu1 %v3952_v45  ;;  %2947 = vmatprep.subr.mxu1 %v3948_v43  ;;  %v3118_v43 = vld [vmem:[%s3697_s22 + $0x10] sm:$0xff] }
 0x28e   : > { %2324 = vmatprep.mubr.f32.mxu1 %v1531_v58  ;;  %2963 = vmatpush3.msra.mxu1 %v3950_v26 }
 0x28f   : > { %2948 = vmatprep.subr.mxu1 %v3954_v48 }
 0x290   : > { %2964 = vmatpush3.msra.mxu1 %v3958_v49 }
 0x291   : > { %2325 = vmatmul.mubr.f32.gmra.mxu1 %v1530_v57  ;;  %2949 = vmatprep.subr.mxu1 %v3967_v35 }
 0x292   : > { %2965 = vmatpush3.msra.mxu1 %v3971_v52  ;;  %2399 = vmatprep.mubr.f32.mxu1 %v3117_v5 }
 0x293   : > { %2950 = vmatprep.subr.mxu1 %v3978_v44 }
 0x294   : > { %2966 = vmatpush3.msra.mxu1 %v3983_v41 }
 0x295   : > { %2951 = vmatprep.subr.mxu1 %v3992_v37 }
 0x296   : > { %2967 = vmatpush3.msra.mxu1 %v4001_v60 }
 0x297   : > { %2952 = vmatprep.subr.mxu1 %v4008_v62 }
 0x298   : > { %2968 = vmatpush3.msra.mxu1 %v4011_v0 }
 0x299   : > { %2953 = vmatprep.subr.mxu1 %v4014_v1 }
 0x29a   : > { %2969 = vmatpush3.msra.mxu1 %v4017_v3 }
 0x29b   : > { %2954 = vmatprep.subr.mxu1 %v4020_v6 }
 0x29c   : > { %2970 = vmatpush3.msra.mxu1 %v4023_v9 }
 0x29d   : > { %2955 = vmatprep.subr.mxu1 %v4026_v11 }
 0x29e   : > { %2971 = vmatpush3.msra.mxu1 %v4029_v16 }
 0x29f   : > { %2956 = vmatprep.subr.mxu1 %v4043_v29 }
 0x2a0   : > { %2972 = vmatpush3.msra.mxu1 %v4050_v47 }
 0x2a1   : > { %2957 = vmatprep.subr.mxu1 %v4054_v2 }
 0x2a2   : > { %2973 = vmatpush3.msra.mxu1 %v4057_v19 }
 0x2a3   : > { %2958 = vmatprep.subr.mxu1 %v4060_v51 }
 0x2a4   : > { %2974 = vmatpush3.msra.mxu1 %v4063_v10 }
 0x2a5   : > { %2959 = vmatprep.subr.mxu1 %v4066_v40 }
 0x2a6   : > { %2975 = vmatpush3.msra.mxu1 %v4069_v18 }
 0x2a7   : > { %2960 = vmatprep.subr.mxu1 %v4072_v23 }
 0x2a8   : > { %2976 = vmatpush3.msra.mxu1 %v4075_v21 }
 0x2a9   : > { %2961 = vmatprep.subr.mxu1 %v4078_v4 }
 0x2aa   : > { %2977 = vmatpush3.msra.mxu1 %v4081_v24 }
 0x2ab   : > { %2962 = vmatprep.subr.mxu1 %v4084_v27 }
 0x2ac   : > { %2978 = vmatpush3.msra.mxu1 %v4087_v13 }
 0x2ad   : > { %2400 = vmatmul.mubr.f32.vlgmr.msra.gmra.mxu1 %v3118_v43 }
 0x2c6   : > { %v2713_v26 = vpop.f32.mrf.mxu0 }
 0x2c8   : > { %v2714_v45 = vpop.f32.mrf.mxu0 }
 0x2c9   : > { %v2715_v6 = vadd.f32 %v2714_v45, %v2713_v26 }
 0x2d4   : > { %v2716_v48 = vpop.f32.mrf.mxu0 }
 0x2d6   : > { %v2717_v49 = vpop.f32.mrf.mxu0 }
 0x2d7   : > { %v2718_v50 = vadd.f32 %v2717_v49, %v2716_v48 }
 0x2e6   : > { %v2789_v54 = vpop.f32.mrf.mxu0 }
 0x2e8   : > { %v2790_v35 = vpop.f32.mrf.mxu0 }
 0x2e9   : > { %v2791_v29 = vadd.f32 %v2790_v35, %v2789_v54 }
 0x2ea   : > { %v2792_v57 = vpop.f32.mrf.mxu0 }
 0x2ec   : > { %v2793_v44 = vpop.f32.mrf.mxu0 }
 0x2ed   : > { %v2794_v17 = vadd.f32 %v2793_v44, %v2792_v57 }
 0x306   : > { %v2865_v58 = vpop.f32.mrf.mxu0 }
 0x308   : > { %v2866_v60 = vpop.f32.mrf.mxu0 }
 0x309   : > { %v2867_v23 = vadd.f32 %v2866_v60, %v2865_v58 }
 0x30a   : > { %v2868_v1 = vpop.f32.mrf.mxu0 }
 0x30c   : > { %v2869_v11 = vpop.f32.mrf.mxu0 }
 0x30d   : > { %v2751_v52 = vpop.f32.mrf.mxu1  ;;  %v2870_v42 = vadd.f32 %v2869_v11, %v2868_v1 }
 0x30f   : > { %v2752_v32 = vpop.f32.mrf.mxu1 }
 0x310   : > { %v2753_v0 = vadd.f32 %v2752_v32, %v2751_v52 }
 0x312   : > { %v2022_v9 = vadd.f32 %v2753_v0, %v2715_v6 }
 0x314   : > { %v2097_v19 = vadd.f32 %v2791_v29, %v2022_v9 }
 0x319   : > { %v2754_v41 = vpop.f32.mrf.mxu1 }
 0x31b   : > { %v2755_v37 = vpop.f32.mrf.mxu1 }
 0x31c   : > { %v2756_v39 = vadd.f32 %v2755_v37, %v2754_v41 }
 0x31e   : > { %v2027_v12 = vadd.f32 %v2756_v39, %v2718_v50 }
 0x320   : > { %v2102_v22 = vadd.f32 %v2794_v17, %v2027_v12 }
 0x329   : > { %v2941_v2 = vpop.f32.mrf.mxu0 }
 0x32b   : > { %v2942_v18 = vpop.f32.mrf.mxu0 }
 0x32c   : > { %v2943_v27 = vadd.f32 %v2942_v18, %v2941_v2 }
 0x32d   : > { %v2827_v62 = vpop.f32.mrf.mxu1 }
 0x32f   : > { %v2828_v3 = vpop.f32.mrf.mxu1 }
 0x330   : > { %v2829_v47 = vadd.f32 %v2828_v3, %v2827_v62 }
 0x331   : > { %v2830_v16 = vpop.f32.mrf.mxu1 }
 0x332   : > { %v2172_v10 = vadd.f32 %v2829_v47, %v2097_v19 }
 0x333   : > { %v2831_v51 = vpop.f32.mrf.mxu1 }
 0x334   : > { %v2247_v4 = vadd.f32 %v2867_v23, %v2172_v10  ;;  %v2832_v15 = vadd.f32 %v2831_v51, %v2830_v16 }
 0x336   : > { %v2177_v31 = vadd.f32 %v2832_v15, %v2102_v22 }
 0x338   : > { %v2252_v34 = vadd.f32 %v2870_v42, %v2177_v31 }
 0x34d   : > { %v2903_v40 = vpop.f32.mrf.mxu1 }
 0x34f   : > { %v2904_v21 = vpop.f32.mrf.mxu1 }
 0x350   : > { %v2905_v24 = vadd.f32 %v2904_v21, %v2903_v40 }
 0x351   : > { %v2906_v38 = vpop.f32.mrf.mxu1 }
 0x352   : > { %v2322_v13 = vadd.f32 %v2905_v24, %v2247_v4 }
 0x353   : > { %v2907_v25 = vpop.f32.mrf.mxu1 }
 0x354   : > { %v2397_v8 = vadd.f32 %v2943_v27, %v2322_v13  ;;  %v2908_v36 = vadd.f32 %v2907_v25, %v2906_v38 }
 0x356   : > { %2405 = vst [vmem:[#allocation4] sm:$0xff] %v2397_v8  ;;  %v2327_v20 = vadd.f32 %v2908_v36, %v2252_v34 }
 0x36d   : > { %v2944_v53 = vpop.f32.mrf.mxu1 }
 0x36f   : > { %v2945_v28 = vpop.f32.mrf.mxu1 }
 0x370   : > { %v2946_v46 = vadd.f32 %v2945_v28, %v2944_v53 }
 0x372   : > { %v2402_v30 = vadd.f32 %v2946_v46, %v2327_v20 }
 0x374   : > { %2406 = vst [vmem:[#allocation4 + $0x8] sm:$0xff] %v2402_v30 }
 0x37b   : > { %v2407_v56 = vld [vmem:[#allocation4] ss:$2 sm:$0xff]  ;;  %v2409_v61 = vld [vmem:[#allocation4 + $0x1] ss:$2 sm:$0xff] }
 0x37c   : > { %v2410_v14 = vadd.f32 %v2409_v61, %v2407_v56 }
 0x37e   : > { %v2418_v7 = vadd.f32 %v2670_v55, %v2410_v14 }
 0x380   : > { %2419 = vst [vmem:[%s455_s21] sm:$0xff] %v2418_v7 }
 0x381   : > { %3368 = shalt.err (!%p3365_p11)
}
 0x382   : > { %s3369_s3 = scalar_lea.hbm %s2432_s27, 128  ;;  %s3373_s22 = scalar_lea.hbm %s4190_s9, 256 }
 0x383   : > { %p3370_p10 = scmp.ne.s32.totalorder %s2432_s27, %s3369_s3  ;;  %p3374_p13 = scmp.lt.s32.totalorder %s2432_s27, %s4190_s9 }
 0x384   : > { %p3375_p0 = scmp.lt.s32.totalorder %s3373_s22, %s3369_s3 }
 0x385   : > { %p3371_p4 = pnand %p3370_p10, %p4228_p8 }
 0x386   : > { %p3376_p5 = por %p3375_p0, %p3374_p13 }
 0x387   : > { %p3372_p3 = pneg %p3371_p4 }
 0x389   : > { %p3377_p2 = pnand %p3376_p5, %p3372_p3 }
 0x38b   : > { %3380 = shalt.err (!%p3377_p2)
}
 0x38c   : > { %3013 = dma.vmem_to_hbm [thread:$0]  (%p4228_p8), %s2435_s23, 128, %s2432_s27, %s2421_s28  }
 0x38d PF: > { %s2446_s21 = sand.u32 1, %s3423_s30   ;;  %p4229_p12 = scmp.ne.s32.totalorder %s4208_s13, 0 }
 0x38e   : > { %p4230_p1 = scmp.ge.s32.totalorder %s3435_s12, 2  ;;  %s2447_s24 = scalar_lea.sflag [#allocation7], %s2446_s21 }
 0x390   : > { %p3045_p7 = pnand %p4230_p1, %p4229_p12 }
 0x392   : > { %p3046_p6 = pneg %p3045_p7 }
 0x394   : > { %3418 = dma.done.wait (%p3046_p6), %s2447_s24, 128  }
 0x395   : > { %3420 = vsyncadd (%p3046_p6), %s2447_s24, 4294967168  ;;  %p26_p9 = scmp.ge.s32.totalorder %s3621_s19, 4   ;;  %s4231_s30 = smov %s3427_s10 }
 0x396   : > { %s4232_s10 = smov %s3431_s11  ;;  %s4233_s11 = smov %s3632_s26 }
 0x397   : > { %s4234_s12 = smov %s3621_s19  ;;  %28 = sbr.rel (!%p26_p9) target bundleno = 13 (0xd), region = 134 }
 0x39c   :  { %2452 = vsyncpa [#allocation6], 1 }
 0x39d   :  { %2454 = vsyncpa [#allocation6 + $0x1], 1 }
 0x39e   :  { %2455 = vsyncpa [#allocation9], 1 }
 0x39f   :  { %2456 = vsyncpa [#allocation12], 1 }
 0x3a0   :  { %2457 = vsyncpa [#allocation15], 1 }
 0x3a1   :  { %2458 = vsyncpa [#allocation18], 1 }
 0x3a2   :  { %2459 = vsyncpa [#allocation7], 1 }
 0x3a3   :  { %2461 = vsyncpa [#allocation7 + $0x1], 1 }

</bundles_post_ra>
